<compile_context>
chip_gen: v6e
topology: v6e:2x2x1
jax: 0.10.0
libtpu: 0.0.40
codegen_flags: <defaults>
</compile_context>

<pallas_src>
import functools
import math

import jax
import jax.numpy as jnp
from jax.experimental import pallas as pl
from jax.experimental.pallas import tpu as pltpu

# ----------------------------- small synthetic config -----------------------------
VOCAB = 1000
HIDDEN = 128
LAYERS = 2
HEADS = 4
HEAD_DIM = HIDDEN // HEADS
FFN = 256
MAX_POS = 64
NUM_LABELS = 2          # AutoModelForSequenceClassification default num_labels
PAD_IDX = 1             # RoBERTa padding idx
EPS = 1e-5
OUT_LANES = 128         # lane-dense padded output / logits width

# the lane-mask multi-head trick requires heads to exactly tile the hidden dim
assert HEADS * HEAD_DIM == HIDDEN, "HEADS * HEAD_DIM must equal HIDDEN"


# ----------------------------- in-kernel helpers -----------------------------------
def _layernorm(x, g, b):
    mu = jnp.mean(x, axis=-1, keepdims=True)
    var = jnp.mean((x - mu) * (x - mu), axis=-1, keepdims=True)
    return (x - mu) * jax.lax.rsqrt(var + EPS) * g + b


def _gelu(x):
    # tanh-approx GELU.  TODO(synk): HF RoBERTa uses exact erf-based GELU.
    c = math.sqrt(2.0 / math.pi)
    return 0.5 * x * (1.0 + jnp.tanh(c * (x + 0.044715 * x * x * x)))


def _bf16(x):
    return x.astype(jnp.bfloat16)


# ----------------------------- fused forward kernel --------------------------------
def _fused_forward_kernel(
    x_ref, bias_ref,                       # per-block activations / attention bias
    emb_g_ref, emb_b_ref,                  # embedding LayerNorm
    wqkv_ref, bqkv_ref,                    # (LAYERS, H, 3H) bf16 / (LAYERS, 1, 3H) f32
    wo_ref, bo_ref,                        # attention output proj
    ln1_g_ref, ln1_b_ref,                  # post-attention LN
    wi_ref, bi_ref,                        # FFN in
    wo2_ref, bo2_ref,                      # FFN out
    ln2_g_ref, ln2_b_ref,                  # post-FFN LN
    cls_dw_ref, cls_db_ref,                # classification head dense
    cls_ow_ref, cls_ob_ref,                # classification head out_proj (lane-padded)
    out_ref,                               # (1, SB, OUT_LANES)
):
    SB = bias_ref.shape[1]                 # sequences in this block
    S = bias_ref.shape[2]                  # sequence length
    scale = 1.0 / math.sqrt(HEAD_DIM)

    # --- embeddings LayerNorm over the whole (SB*S, H) slab (batch folded into M) ---
    x = x_ref[0]                                                        # (SB*S, H) f32
    h = _layernorm(x, emb_g_ref[...], emb_b_ref[...])                   # (SB*S, H) f32

    # per-head lane masks, built once (HEADS * HEAD_DIM == HIDDEN)
    lane = jax.lax.broadcasted_iota(jnp.int32, (1, HIDDEN), 1)
    head_masks = [
        jnp.logical_and(lane >= hd * HEAD_DIM,
                        lane < (hd + 1) * HEAD_DIM).astype(jnp.float32)
        for hd in range(HEADS)
    ]

    # hoist the additive attention-bias broadcast out of the head/layer loops:
    # one (HEADS*S, S) slab per sequence, reused by every layer.
    bias_all = bias_ref[0]                                              # (SB, S)
    seq_bias = [
        jnp.broadcast_to(bias_all[si:si + 1, :], (HEADS * S, S))
        for si in range(SB)
    ]

    for l in range(LAYERS):                # static unroll (toy depth); see scaling TODO
        # --- fused QKV projection, batched over all SB*S rows (bf16 MXU, f32 acc) ---
        qkv = (jnp.dot(_bf16(h), wqkv_ref[l], preferred_element_type=jnp.float32)
               + bqkv_ref[l])                                           # (SB*S, 3H) f32
        q = qkv[:, 0:HIDDEN]               # 128-aligned lane slices (full vregs)
        k = qkv[:, HIDDEN:2 * HIDDEN]
        v = qkv[:, 2 * HIDDEN:3 * HIDDEN]

        # --- attention: per sequence, all heads in two M-stacked matmuls ---
        ctx_parts = []
        for si in range(SB):
            r0 = si * S
            qs = q[r0:r0 + S, :]
            ks = k[r0:r0 + S, :]
            vs = v[r0:r0 + S, :]

            # stack heads along M: row block hd holds (q * mask_hd)
            q_stack = jnp.concatenate([qs * m for m in head_masks], axis=0)  # (H*S_h, H)
            s_all = jax.lax.dot_general(
                _bf16(q_stack), _bf16(ks), (((1,), (1,)), ((), ())),
                preferred_element_type=jnp.float32) * scale + seq_bias[si]   # (HEADS*S, S)

            # per-row softmax == per-head softmax (each row only sees its own head)
            s_max = jnp.max(s_all, axis=-1, keepdims=True)
            p = jnp.exp(s_all - s_max)
            p = p / jnp.sum(p, axis=-1, keepdims=True)      # exact normalization

            ctx_stack = jnp.dot(_bf16(p), _bf16(vs),
                                preferred_element_type=jnp.float32)          # (HEADS*S, H)
            # un-stack heads: head hd contributes only its own lane block
            ctx_s = ctx_stack[0:S, :] * head_masks[0]
            for hd in range(1, HEADS):
                ctx_s = ctx_s + ctx_stack[hd * S:(hd + 1) * S, :] * head_masks[hd]
            ctx_parts.append(ctx_s)
        ctx = jnp.concatenate(ctx_parts, axis=0)                             # (SB*S, H)

        attn_out = (jnp.dot(_bf16(ctx), wo_ref[l], preferred_element_type=jnp.float32)
                    + bo_ref[l])
        h = _layernorm(attn_out + h, ln1_g_ref[l], ln1_b_ref[l])             # post-LN

        inter = (jnp.dot(_bf16(h), wi_ref[l], preferred_element_type=jnp.float32)
                 + bi_ref[l])
        inter = _gelu(inter)
        ffn_out = (jnp.dot(_bf16(inter), wo2_ref[l], preferred_element_type=jnp.float32)
                   + bo2_ref[l])
        h = _layernorm(ffn_out + h, ln2_g_ref[l], ln2_b_ref[l])              # post-LN

    # --- classification head for ALL <s> rows of the block in one matmul ---
    # one-hot row gather of rows {0, S, 2S, ...} via a tiny MXU op (sublane-friendly)
    row_i = jax.lax.broadcasted_iota(jnp.int32, (SB, SB * S), 0)
    col_i = jax.lax.broadcasted_iota(jnp.int32, (SB, SB * S), 1)
    sel = (col_i == row_i * S).astype(jnp.float32)
    cls_rows = jnp.dot(sel, h, preferred_element_type=jnp.float32)           # (SB, H)

    cls = jnp.tanh(
        jnp.dot(_bf16(cls_rows), cls_dw_ref[...], preferred_element_type=jnp.float32)
        + cls_db_ref[...])                                                   # (SB, H)
    logits = (jnp.dot(_bf16(cls), cls_ow_ref[...], preferred_element_type=jnp.float32)
              + cls_ob_ref[...])                                             # (SB, OUT_LANES)

    # --- log_softmax over the first NUM_LABELS lanes, then mean -> scalar per seq ---
    lane_o = jax.lax.broadcasted_iota(jnp.int32, (SB, OUT_LANES), 1)
    valid = lane_o < NUM_LABELS
    masked = jnp.where(valid, logits, jnp.float32(-1e30))
    m = jnp.max(masked, axis=-1, keepdims=True)
    e = jnp.where(valid, jnp.exp(masked - m), 0.0)
    lse = jnp.log(jnp.sum(e, axis=-1, keepdims=True)) + m
    mean_lp = jnp.sum(jnp.where(valid, logits - lse, 0.0), axis=-1,
                      keepdims=True) * (1.0 / NUM_LABELS)                    # (SB, 1)
    out_ref[...] = jnp.broadcast_to(mean_lp.reshape(1, SB, 1), (1, SB, OUT_LANES))


# ----------------------------- parameters -------------------------------------------
def init_params(key):
    def normal(k, shape, scale=0.02):
        return scale * jax.random.normal(k, shape, jnp.float32)

    keys = iter(jax.random.split(key, 16))

    # classification out-proj padded to OUT_LANES lanes (only first NUM_LABELS used)
    cls_out_w = jnp.zeros((HIDDEN, OUT_LANES), jnp.float32)
    cls_out_w = cls_out_w.at[:, :NUM_LABELS].set(normal(next(keys), (HIDDEN, NUM_LABELS)))

    p = {
        "word_emb": normal(next(keys), (VOCAB, HIDDEN)),
        "pos_emb": normal(next(keys), (MAX_POS, HIDDEN)),
        "tok_emb": normal(next(keys), (1, HIDDEN)),
        "emb_ln_g": jnp.ones((1, HIDDEN), jnp.float32),
        "emb_ln_b": jnp.zeros((1, HIDDEN), jnp.float32),
        # stacked, QKV-fused per-layer weights; matmul weights stored in bf16
        "wqkv": normal(next(keys), (LAYERS, HIDDEN, 3 * HIDDEN)).astype(jnp.bfloat16),
        "bqkv": jnp.zeros((LAYERS, 1, 3 * HIDDEN), jnp.float32),
        "wo": normal(next(keys), (LAYERS, HIDDEN, HIDDEN)).astype(jnp.bfloat16),
        "bo": jnp.zeros((LAYERS, 1, HIDDEN), jnp.float32),
        "ln1_g": jnp.ones((LAYERS, 1, HIDDEN), jnp.float32),
        "ln1_b": jnp.zeros((LAYERS, 1, HIDDEN), jnp.float32),
        "wi": normal(next(keys), (LAYERS, HIDDEN, FFN)).astype(jnp.bfloat16),
        "bi": jnp.zeros((LAYERS, 1, FFN), jnp.float32),
        "wo2": normal(next(keys), (LAYERS, FFN, HIDDEN)).astype(jnp.bfloat16),
        "bo2": jnp.zeros((LAYERS, 1, HIDDEN), jnp.float32),
        "ln2_g": jnp.ones((LAYERS, 1, HIDDEN), jnp.float32),
        "ln2_b": jnp.zeros((LAYERS, 1, HIDDEN), jnp.float32),
        # classification head
        "cls_dense_w": normal(next(keys), (HIDDEN, HIDDEN)).astype(jnp.bfloat16),
        "cls_dense_b": jnp.zeros((1, HIDDEN), jnp.float32),
        "cls_out_w": cls_out_w.astype(jnp.bfloat16),
        "cls_out_b": jnp.zeros((1, OUT_LANES), jnp.float32),
    }
    return p


# ----------------------------- forward pass ------------------------------------------
def bertweet_classifier_forward(params, input_ids, attention_mask=None):
    B, S = input_ids.shape
    if attention_mask is None:
        attention_mask = jnp.ones((B, S), jnp.int32)
    maskf = attention_mask.astype(jnp.float32)

    # RoBERTa-style position ids (cumsum over non-pad tokens, offset by pad idx)
    pos_ids = (jnp.cumsum(attention_mask, axis=1) * attention_mask) + PAD_IDX

    # embedding gathers are JAX glue; everything downstream runs in ONE fused kernel
    # (see scaling TODO for in-kernel gather at real shapes).
    hemb = (params["word_emb"][input_ids]
            + params["pos_emb"][pos_ids]
            + params["tok_emb"][0]).astype(jnp.float32)                 # (B, S, H)
    bias = ((1.0 - maskf) * -1e9).astype(jnp.float32)                   # (B, S)

    # fold the batch into the matmul M dimension: SB sequences per grid step,
    # targeting ~128 activation rows per step; grid splits at larger batch (v7x TCs).
    sb = min(B, max(1, 128 // S))
    while B % sb != 0:
        sb -= 1
    nblk = B // sb

    x = hemb.reshape(nblk, sb * S, HIDDEN)
    bias = bias.reshape(nblk, sb, S)

    def full_spec(arr):
        zeros = (0,) * arr.ndim
        return pl.BlockSpec(arr.shape, lambda b, _z=zeros: _z)

    weights = (params["emb_ln_g"], params["emb_ln_b"],
               params["wqkv"], params["bqkv"],
               params["wo"], params["bo"],
               params["ln1_g"], params["ln1_b"],
               params["wi"], params["bi"],
               params["wo2"], params["bo2"],
               params["ln2_g"], params["ln2_b"],
               params["cls_dense_w"], params["cls_dense_b"],
               params["cls_out_w"], params["cls_out_b"])

    in_specs = ([pl.BlockSpec((1, sb * S, HIDDEN), lambda b: (b, 0, 0)),
                 pl.BlockSpec((1, sb, S), lambda b: (b, 0, 0))]
                + [full_spec(w) for w in weights])

    out = pl.pallas_call(
        _fused_forward_kernel,
        out_shape=jax.ShapeDtypeStruct((nblk, sb, OUT_LANES), jnp.float32),
        grid=(nblk,),
        in_specs=in_specs,
        out_specs=pl.BlockSpec((1, sb, OUT_LANES), lambda b: (b, 0, 0)),
        compiler_params=pltpu.CompilerParams(
            dimension_semantics=("parallel",)),   # batch blocks shard across v7x TCs
    )(x, bias, *weights)

    # log_softmax(dim=1) then mean(dim=1)  ->  (B,)
    return out.reshape(B, OUT_LANES)[:, 0]


# ----------------------------- main ----------------------------------------------------
if __name__ == "__main__":
    key = jax.random.PRNGKey(0)
    pkey, dkey = jax.random.split(key)
    params = init_params(pkey)

    B, S = 2, 16
    input_ids = jax.random.randint(dkey, (B, S), 2, VOCAB, dtype=jnp.int32)
    attention_mask = jnp.ones((B, S), jnp.int32).at[1, S - 3:].set(0)

    fwd = jax.jit(functools.partial(bertweet_classifier_forward, params))
    out = fwd(input_ids, attention_mask)
    jax.block_until_ready(out)
    assert out.shape == (B,) and out.dtype == jnp.float32
    assert bool(jnp.all(jnp.isfinite(out)))
    print("KERNEL_OK")
</pallas_src>

<mosaic_0001>
module attributes {stable_mosaic.version = 11 : i64} {
  func.func @_fused_forward_kernel(%arg0: i32, %arg1: memref<1x32x128xf32, #tpu.memory_space<vmem>>, %arg2: memref<1x2x16xf32, #tpu.memory_space<vmem>>, %arg3: memref<1x128xf32, #tpu.memory_space<vmem>>, %arg4: memref<1x128xf32, #tpu.memory_space<vmem>>, %arg5: memref<2x128x384xbf16, #tpu.memory_space<vmem>>, %arg6: memref<2x1x384xf32, #tpu.memory_space<vmem>>, %arg7: memref<2x128x128xbf16, #tpu.memory_space<vmem>>, %arg8: memref<2x1x128xf32, #tpu.memory_space<vmem>>, %arg9: memref<2x1x128xf32, #tpu.memory_space<vmem>>, %arg10: memref<2x1x128xf32, #tpu.memory_space<vmem>>, %arg11: memref<2x128x256xbf16, #tpu.memory_space<vmem>>, %arg12: memref<2x1x256xf32, #tpu.memory_space<vmem>>, %arg13: memref<2x256x128xbf16, #tpu.memory_space<vmem>>, %arg14: memref<2x1x128xf32, #tpu.memory_space<vmem>>, %arg15: memref<2x1x128xf32, #tpu.memory_space<vmem>>, %arg16: memref<2x1x128xf32, #tpu.memory_space<vmem>>, %arg17: memref<128x128xbf16, #tpu.memory_space<vmem>>, %arg18: memref<1x128xf32, #tpu.memory_space<vmem>>, %arg19: memref<128x128xbf16, #tpu.memory_space<vmem>>, %arg20: memref<1x128xf32, #tpu.memory_space<vmem>>, %arg21: memref<1x2x128xf32, #tpu.memory_space<vmem>>) attributes {dimension_semantics = [#tpu.dimension_semantics<parallel>], iteration_bounds = array<i64: 1>, scalar_prefetch = 0 : i64, scratch_operands = 0 : i64, tpu.core_type = #tpu.core_type<tc>, window_params = [{transform_indices = @transform_0, window_bounds = array<i64: 1, 32, 128>}, {transform_indices = @transform_1, window_bounds = array<i64: 1, 2, 16>}, {pipeline_mode = #tpu.pipeline_mode<synchronous>, transform_indices = @transform_2, window_bounds = array<i64: 1, 128>}, {pipeline_mode = #tpu.pipeline_mode<synchronous>, transform_indices = @transform_3, window_bounds = array<i64: 1, 128>}, {pipeline_mode = #tpu.pipeline_mode<synchronous>, transform_indices = @transform_4, window_bounds = array<i64: 2, 128, 384>}, {pipeline_mode = #tpu.pipeline_mode<synchronous>, transform_indices = @transform_5, window_bounds = array<i64: 2, 1, 384>}, {pipeline_mode = #tpu.pipeline_mode<synchronous>, transform_indices = @transform_6, window_bounds = array<i64: 2, 128, 128>}, {pipeline_mode = #tpu.pipeline_mode<synchronous>, transform_indices = @transform_7, window_bounds = array<i64: 2, 1, 128>}, {pipeline_mode = #tpu.pipeline_mode<synchronous>, transform_indices = @transform_8, window_bounds = array<i64: 2, 1, 128>}, {pipeline_mode = #tpu.pipeline_mode<synchronous>, transform_indices = @transform_9, window_bounds = array<i64: 2, 1, 128>}, {pipeline_mode = #tpu.pipeline_mode<synchronous>, transform_indices = @transform_10, window_bounds = array<i64: 2, 128, 256>}, {pipeline_mode = #tpu.pipeline_mode<synchronous>, transform_indices = @transform_11, window_bounds = array<i64: 2, 1, 256>}, {pipeline_mode = #tpu.pipeline_mode<synchronous>, transform_indices = @transform_12, window_bounds = array<i64: 2, 256, 128>}, {pipeline_mode = #tpu.pipeline_mode<synchronous>, transform_indices = @transform_13, window_bounds = array<i64: 2, 1, 128>}, {pipeline_mode = #tpu.pipeline_mode<synchronous>, transform_indices = @transform_14, window_bounds = array<i64: 2, 1, 128>}, {pipeline_mode = #tpu.pipeline_mode<synchronous>, transform_indices = @transform_15, window_bounds = array<i64: 2, 1, 128>}, {pipeline_mode = #tpu.pipeline_mode<synchronous>, transform_indices = @transform_16, window_bounds = array<i64: 128, 128>}, {pipeline_mode = #tpu.pipeline_mode<synchronous>, transform_indices = @transform_17, window_bounds = array<i64: 1, 128>}, {pipeline_mode = #tpu.pipeline_mode<synchronous>, transform_indices = @transform_18, window_bounds = array<i64: 128, 128>}, {pipeline_mode = #tpu.pipeline_mode<synchronous>, transform_indices = @transform_19, window_bounds = array<i64: 1, 128>}, {transform_indices = @transform_20, window_bounds = array<i64: 1, 2, 128>}]} {
    %c0 = arith.constant 0 : index
    %c0_0 = arith.constant 0 : index
    %c0_1 = arith.constant 0 : index
    %0 = vector.load %arg1[%c0, %c0_0, %c0_1] : memref<1x32x128xf32, #tpu.memory_space<vmem>>, vector<1x32x128xf32>
    %1 = vector.shape_cast %0 : vector<1x32x128xf32> to vector<32x128xf32>
    %c0_2 = arith.constant 0 : index
    %c0_3 = arith.constant 0 : index
    %2 = vector.load %arg3[%c0_2, %c0_3] : memref<1x128xf32, #tpu.memory_space<vmem>>, vector<1x128xf32>
    %c0_4 = arith.constant 0 : index
    %c0_5 = arith.constant 0 : index
    %3 = vector.load %arg4[%c0_4, %c0_5] : memref<1x128xf32, #tpu.memory_space<vmem>>, vector<1x128xf32>
    %cst = arith.constant dense<0.000000e+00> : vector<32xf32>
    %4 = vector.multi_reduction <add>, %1, %cst [1] : vector<32x128xf32> to vector<32xf32>
    %5 = vector.shape_cast %4 : vector<32xf32> to vector<32x1xf32>
    %cst_6 = arith.constant 1.280000e+02 : f32
    %6 = vector.broadcast %cst_6 : f32 to vector<32x1xf32>
    %7 = arith.divf %5, %6 : vector<32x1xf32>
    %8 = vector.broadcast %7 : vector<32x1xf32> to vector<32x128xf32>
    %9 = arith.subf %1, %8 : vector<32x128xf32>
    %10 = vector.broadcast %7 : vector<32x1xf32> to vector<32x128xf32>
    %11 = arith.subf %1, %10 : vector<32x128xf32>
    %12 = arith.mulf %9, %11 : vector<32x128xf32>
    %cst_7 = arith.constant dense<0.000000e+00> : vector<32xf32>
    %13 = vector.multi_reduction <add>, %12, %cst_7 [1] : vector<32x128xf32> to vector<32xf32>
    %14 = vector.shape_cast %13 : vector<32xf32> to vector<32x1xf32>
    %cst_8 = arith.constant 1.280000e+02 : f32
    %15 = vector.broadcast %cst_8 : f32 to vector<32x1xf32>
    %16 = arith.divf %14, %15 : vector<32x1xf32>
    %17 = vector.broadcast %7 : vector<32x1xf32> to vector<32x128xf32>
    %18 = arith.subf %1, %17 : vector<32x128xf32>
    %cst_9 = arith.constant 9.99999974E-6 : f32
    %19 = vector.broadcast %cst_9 : f32 to vector<32x1xf32>
    %20 = arith.addf %16, %19 : vector<32x1xf32>
    %21 = math.rsqrt %20 : vector<32x1xf32>
    %22 = vector.broadcast %21 : vector<32x1xf32> to vector<32x128xf32>
    %23 = arith.mulf %18, %22 : vector<32x128xf32>
    %24 = vector.broadcast %2 : vector<1x128xf32> to vector<32x128xf32>
    %25 = arith.mulf %23, %24 : vector<32x128xf32>
    %26 = vector.broadcast %3 : vector<1x128xf32> to vector<32x128xf32>
    %27 = arith.addf %25, %26 : vector<32x128xf32>
    %28 = tpu.iota {dimensions = array<i32: 1>} : vector<1x128xi32>
    %c0_i32 = arith.constant 0 : i32
    %29 = vector.broadcast %c0_i32 : i32 to vector<1x128xi32>
    %30 = arith.cmpi sge, %28, %29 : vector<1x128xi32>
    %c32_i32 = arith.constant 32 : i32
    %31 = vector.broadcast %c32_i32 : i32 to vector<1x128xi32>
    %32 = arith.cmpi slt, %28, %31 : vector<1x128xi32>
    %33 = arith.andi %30, %32 : vector<1x128xi1>
    %34 = arith.extui %33 : vector<1x128xi1> to vector<1x128xi32>
    %35 = arith.sitofp %34 : vector<1x128xi32> to vector<1x128xf32>
    %c32_i32_10 = arith.constant 32 : i32
    %36 = vector.broadcast %c32_i32_10 : i32 to vector<1x128xi32>
    %37 = arith.cmpi sge, %28, %36 : vector<1x128xi32>
    %c64_i32 = arith.constant 64 : i32
    %38 = vector.broadcast %c64_i32 : i32 to vector<1x128xi32>
    %39 = arith.cmpi slt, %28, %38 : vector<1x128xi32>
    %40 = arith.andi %37, %39 : vector<1x128xi1>
    %41 = arith.extui %40 : vector<1x128xi1> to vector<1x128xi32>
    %42 = arith.sitofp %41 : vector<1x128xi32> to vector<1x128xf32>
    %c64_i32_11 = arith.constant 64 : i32
    %43 = vector.broadcast %c64_i32_11 : i32 to vector<1x128xi32>
    %44 = arith.cmpi sge, %28, %43 : vector<1x128xi32>
    %c96_i32 = arith.constant 96 : i32
    %45 = vector.broadcast %c96_i32 : i32 to vector<1x128xi32>
    %46 = arith.cmpi slt, %28, %45 : vector<1x128xi32>
    %47 = arith.andi %44, %46 : vector<1x128xi1>
    %48 = arith.extui %47 : vector<1x128xi1> to vector<1x128xi32>
    %49 = arith.sitofp %48 : vector<1x128xi32> to vector<1x128xf32>
    %c96_i32_12 = arith.constant 96 : i32
    %50 = vector.broadcast %c96_i32_12 : i32 to vector<1x128xi32>
    %51 = arith.cmpi sge, %28, %50 : vector<1x128xi32>
    %c128_i32 = arith.constant 128 : i32
    %52 = vector.broadcast %c128_i32 : i32 to vector<1x128xi32>
    %53 = arith.cmpi slt, %28, %52 : vector<1x128xi32>
    %54 = arith.andi %51, %53 : vector<1x128xi1>
    %55 = arith.extui %54 : vector<1x128xi1> to vector<1x128xi32>
    %56 = arith.sitofp %55 : vector<1x128xi32> to vector<1x128xf32>
    %c0_13 = arith.constant 0 : index
    %c0_14 = arith.constant 0 : index
    %c0_15 = arith.constant 0 : index
    %57 = vector.load %arg2[%c0_13, %c0_14, %c0_15] : memref<1x2x16xf32, #tpu.memory_space<vmem>>, vector<1x2x16xf32>
    %58 = vector.shape_cast %57 : vector<1x2x16xf32> to vector<2x16xf32>
    %59 = vector.extract_strided_slice %58 {offsets = [0, 0], sizes = [1, 16], strides = [1, 1]} : vector<2x16xf32> to vector<1x16xf32>
    %60 = vector.shape_cast %59 : vector<1x16xf32> to vector<1x16xf32>
    %61 = vector.broadcast %60 : vector<1x16xf32> to vector<64x16xf32>
    %62 = vector.extract_strided_slice %58 {offsets = [1, 0], sizes = [1, 16], strides = [1, 1]} : vector<2x16xf32> to vector<1x16xf32>
    %63 = vector.shape_cast %62 : vector<1x16xf32> to vector<1x16xf32>
    %64 = vector.broadcast %63 : vector<1x16xf32> to vector<64x16xf32>
    %65 = arith.truncf %27 : vector<32x128xf32> to vector<32x128xbf16>
    %c0_16 = arith.constant 0 : index
    %c0_17 = arith.constant 0 : index
    %c0_18 = arith.constant 0 : index
    %66 = vector.load %arg5[%c0_16, %c0_17, %c0_18] : memref<2x128x384xbf16, #tpu.memory_space<vmem>>, vector<1x128x384xbf16>
    %67 = vector.shape_cast %66 : vector<1x128x384xbf16> to vector<128x384xbf16>
    %cst_19 = arith.constant dense<0.000000e+00> : vector<32x384xf32>
    %68 = tpu.matmul %65, %67, %cst_19 {dimension_numbers = #tpu.dot_dimension_numbers<[1], [0], [0], [1], [0, 0, 1, 1], [], []>} : vector<32x128xbf16>, vector<128x384xbf16>, vector<32x384xf32> -> vector<32x384xf32>
    %c0_20 = arith.constant 0 : index
    %c0_21 = arith.constant 0 : index
    %c0_22 = arith.constant 0 : index
    %69 = vector.load %arg6[%c0_20, %c0_21, %c0_22] : memref<2x1x384xf32, #tpu.memory_space<vmem>>, vector<1x1x384xf32>
    %70 = vector.shape_cast %69 : vector<1x1x384xf32> to vector<1x384xf32>
    %71 = vector.broadcast %70 : vector<1x384xf32> to vector<32x384xf32>
    %72 = arith.addf %68, %71 : vector<32x384xf32>
    %73 = vector.extract_strided_slice %72 {offsets = [0, 0], sizes = [32, 128], strides = [1, 1]} : vector<32x384xf32> to vector<32x128xf32>
    %74 = vector.extract_strided_slice %72 {offsets = [0, 128], sizes = [32, 128], strides = [1, 1]} : vector<32x384xf32> to vector<32x128xf32>
    %75 = vector.extract_strided_slice %72 {offsets = [0, 256], sizes = [32, 128], strides = [1, 1]} : vector<32x384xf32> to vector<32x128xf32>
    %76 = vector.extract_strided_slice %73 {offsets = [0, 0], sizes = [16, 128], strides = [1, 1]} : vector<32x128xf32> to vector<16x128xf32>
    %77 = vector.extract_strided_slice %74 {offsets = [0, 0], sizes = [16, 128], strides = [1, 1]} : vector<32x128xf32> to vector<16x128xf32>
    %78 = vector.extract_strided_slice %75 {offsets = [0, 0], sizes = [16, 128], strides = [1, 1]} : vector<32x128xf32> to vector<16x128xf32>
    %79 = vector.broadcast %35 : vector<1x128xf32> to vector<16x128xf32>
    %80 = arith.mulf %76, %79 : vector<16x128xf32>
    %81 = vector.broadcast %42 : vector<1x128xf32> to vector<16x128xf32>
    %82 = arith.mulf %76, %81 : vector<16x128xf32>
    %83 = vector.broadcast %49 : vector<1x128xf32> to vector<16x128xf32>
    %84 = arith.mulf %76, %83 : vector<16x128xf32>
    %85 = vector.broadcast %56 : vector<1x128xf32> to vector<16x128xf32>
    %86 = arith.mulf %76, %85 : vector<16x128xf32>
    %87 = tpu.concatenate %80, %82, %84, %86 in 0 : vector<16x128xf32>, vector<16x128xf32>, vector<16x128xf32>, vector<16x128xf32> -> vector<64x128xf32>
    %88 = arith.truncf %87 : vector<64x128xf32> to vector<64x128xbf16>
    %89 = arith.truncf %77 : vector<16x128xf32> to vector<16x128xbf16>
    %cst_23 = arith.constant dense<0.000000e+00> : vector<64x16xf32>
    %90 = tpu.matmul %88, %89, %cst_23 {dimension_numbers = #tpu.dot_dimension_numbers<[1], [1], [0], [0], [0, 0, 1, 0], [], []>} : vector<64x128xbf16>, vector<16x128xbf16>, vector<64x16xf32> -> vector<64x16xf32>
    %cst_24 = arith.constant 0.176776692 : f32
    %91 = vector.broadcast %cst_24 : f32 to vector<64x16xf32>
    %92 = arith.mulf %90, %91 : vector<64x16xf32>
    %93 = arith.addf %92, %61 : vector<64x16xf32>
    %cst_25 = arith.constant dense<0xFF800000> : vector<64xf32>
    %94 = vector.multi_reduction <maximumf>, %93, %cst_25 [1] : vector<64x16xf32> to vector<64xf32>
    %95 = vector.shape_cast %94 : vector<64xf32> to vector<64x1xf32>
    %96 = vector.broadcast %95 : vector<64x1xf32> to vector<64x16xf32>
    %97 = arith.subf %93, %96 : vector<64x16xf32>
    %98 = math.exp %97 : vector<64x16xf32>
    %cst_26 = arith.constant dense<0.000000e+00> : vector<64xf32>
    %99 = vector.multi_reduction <add>, %98, %cst_26 [1] : vector<64x16xf32> to vector<64xf32>
    %100 = vector.shape_cast %99 : vector<64xf32> to vector<64x1xf32>
    %101 = vector.broadcast %100 : vector<64x1xf32> to vector<64x16xf32>
    %102 = arith.divf %98, %101 : vector<64x16xf32>
    %103 = arith.truncf %102 : vector<64x16xf32> to vector<64x16xbf16>
    %104 = arith.truncf %78 : vector<16x128xf32> to vector<16x128xbf16>
    %cst_27 = arith.constant dense<0.000000e+00> : vector<64x128xf32>
    %105 = tpu.matmul %103, %104, %cst_27 {dimension_numbers = #tpu.dot_dimension_numbers<[1], [0], [0], [1], [0, 0, 1, 1], [], []>} : vector<64x16xbf16>, vector<16x128xbf16>, vector<64x128xf32> -> vector<64x128xf32>
    %106 = vector.extract_strided_slice %105 {offsets = [0, 0], sizes = [16, 128], strides = [1, 1]} : vector<64x128xf32> to vector<16x128xf32>
    %107 = vector.broadcast %35 : vector<1x128xf32> to vector<16x128xf32>
    %108 = arith.mulf %106, %107 : vector<16x128xf32>
    %109 = vector.extract_strided_slice %105 {offsets = [16, 0], sizes = [16, 128], strides = [1, 1]} : vector<64x128xf32> to vector<16x128xf32>
    %110 = vector.broadcast %42 : vector<1x128xf32> to vector<16x128xf32>
    %111 = arith.mulf %109, %110 : vector<16x128xf32>
    %112 = arith.addf %108, %111 : vector<16x128xf32>
    %113 = vector.extract_strided_slice %105 {offsets = [32, 0], sizes = [16, 128], strides = [1, 1]} : vector<64x128xf32> to vector<16x128xf32>
    %114 = vector.broadcast %49 : vector<1x128xf32> to vector<16x128xf32>
    %115 = arith.mulf %113, %114 : vector<16x128xf32>
    %116 = arith.addf %112, %115 : vector<16x128xf32>
    %117 = vector.extract_strided_slice %105 {offsets = [48, 0], sizes = [16, 128], strides = [1, 1]} : vector<64x128xf32> to vector<16x128xf32>
    %118 = vector.broadcast %56 : vector<1x128xf32> to vector<16x128xf32>
    %119 = arith.mulf %117, %118 : vector<16x128xf32>
    %120 = arith.addf %116, %119 : vector<16x128xf32>
    %121 = vector.extract_strided_slice %73 {offsets = [16, 0], sizes = [16, 128], strides = [1, 1]} : vector<32x128xf32> to vector<16x128xf32>
    %122 = vector.extract_strided_slice %74 {offsets = [16, 0], sizes = [16, 128], strides = [1, 1]} : vector<32x128xf32> to vector<16x128xf32>
    %123 = vector.extract_strided_slice %75 {offsets = [16, 0], sizes = [16, 128], strides = [1, 1]} : vector<32x128xf32> to vector<16x128xf32>
    %124 = vector.broadcast %35 : vector<1x128xf32> to vector<16x128xf32>
    %125 = arith.mulf %121, %124 : vector<16x128xf32>
    %126 = vector.broadcast %42 : vector<1x128xf32> to vector<16x128xf32>
    %127 = arith.mulf %121, %126 : vector<16x128xf32>
    %128 = vector.broadcast %49 : vector<1x128xf32> to vector<16x128xf32>
    %129 = arith.mulf %121, %128 : vector<16x128xf32>
    %130 = vector.broadcast %56 : vector<1x128xf32> to vector<16x128xf32>
    %131 = arith.mulf %121, %130 : vector<16x128xf32>
    %132 = tpu.concatenate %125, %127, %129, %131 in 0 : vector<16x128xf32>, vector<16x128xf32>, vector<16x128xf32>, vector<16x128xf32> -> vector<64x128xf32>
    %133 = arith.truncf %132 : vector<64x128xf32> to vector<64x128xbf16>
    %134 = arith.truncf %122 : vector<16x128xf32> to vector<16x128xbf16>
    %cst_28 = arith.constant dense<0.000000e+00> : vector<64x16xf32>
    %135 = tpu.matmul %133, %134, %cst_28 {dimension_numbers = #tpu.dot_dimension_numbers<[1], [1], [0], [0], [0, 0, 1, 0], [], []>} : vector<64x128xbf16>, vector<16x128xbf16>, vector<64x16xf32> -> vector<64x16xf32>
    %cst_29 = arith.constant 0.176776692 : f32
    %136 = vector.broadcast %cst_29 : f32 to vector<64x16xf32>
    %137 = arith.mulf %135, %136 : vector<64x16xf32>
    %138 = arith.addf %137, %64 : vector<64x16xf32>
    %cst_30 = arith.constant dense<0xFF800000> : vector<64xf32>
    %139 = vector.multi_reduction <maximumf>, %138, %cst_30 [1] : vector<64x16xf32> to vector<64xf32>
    %140 = vector.shape_cast %139 : vector<64xf32> to vector<64x1xf32>
    %141 = vector.broadcast %140 : vector<64x1xf32> to vector<64x16xf32>
    %142 = arith.subf %138, %141 : vector<64x16xf32>
    %143 = math.exp %142 : vector<64x16xf32>
    %cst_31 = arith.constant dense<0.000000e+00> : vector<64xf32>
    %144 = vector.multi_reduction <add>, %143, %cst_31 [1] : vector<64x16xf32> to vector<64xf32>
    %145 = vector.shape_cast %144 : vector<64xf32> to vector<64x1xf32>
    %146 = vector.broadcast %145 : vector<64x1xf32> to vector<64x16xf32>
    %147 = arith.divf %143, %146 : vector<64x16xf32>
    %148 = arith.truncf %147 : vector<64x16xf32> to vector<64x16xbf16>
    %149 = arith.truncf %123 : vector<16x128xf32> to vector<16x128xbf16>
    %cst_32 = arith.constant dense<0.000000e+00> : vector<64x128xf32>
    %150 = tpu.matmul %148, %149, %cst_32 {dimension_numbers = #tpu.dot_dimension_numbers<[1], [0], [0], [1], [0, 0, 1, 1], [], []>} : vector<64x16xbf16>, vector<16x128xbf16>, vector<64x128xf32> -> vector<64x128xf32>
    %151 = vector.extract_strided_slice %150 {offsets = [0, 0], sizes = [16, 128], strides = [1, 1]} : vector<64x128xf32> to vector<16x128xf32>
    %152 = vector.broadcast %35 : vector<1x128xf32> to vector<16x128xf32>
    %153 = arith.mulf %151, %152 : vector<16x128xf32>
    %154 = vector.extract_strided_slice %150 {offsets = [16, 0], sizes = [16, 128], strides = [1, 1]} : vector<64x128xf32> to vector<16x128xf32>
    %155 = vector.broadcast %42 : vector<1x128xf32> to vector<16x128xf32>
    %156 = arith.mulf %154, %155 : vector<16x128xf32>
    %157 = arith.addf %153, %156 : vector<16x128xf32>
    %158 = vector.extract_strided_slice %150 {offsets = [32, 0], sizes = [16, 128], strides = [1, 1]} : vector<64x128xf32> to vector<16x128xf32>
    %159 = vector.broadcast %49 : vector<1x128xf32> to vector<16x128xf32>
    %160 = arith.mulf %158, %159 : vector<16x128xf32>
    %161 = arith.addf %157, %160 : vector<16x128xf32>
    %162 = vector.extract_strided_slice %150 {offsets = [48, 0], sizes = [16, 128], strides = [1, 1]} : vector<64x128xf32> to vector<16x128xf32>
    %163 = vector.broadcast %56 : vector<1x128xf32> to vector<16x128xf32>
    %164 = arith.mulf %162, %163 : vector<16x128xf32>
    %165 = arith.addf %161, %164 : vector<16x128xf32>
    %166 = tpu.concatenate %120, %165 in 0 : vector<16x128xf32>, vector<16x128xf32> -> vector<32x128xf32>
    %167 = arith.truncf %166 : vector<32x128xf32> to vector<32x128xbf16>
    %c0_33 = arith.constant 0 : index
    %c0_34 = arith.constant 0 : index
    %c0_35 = arith.constant 0 : index
    %168 = vector.load %arg7[%c0_33, %c0_34, %c0_35] : memref<2x128x128xbf16, #tpu.memory_space<vmem>>, vector<1x128x128xbf16>
    %169 = vector.shape_cast %168 : vector<1x128x128xbf16> to vector<128x128xbf16>
    %cst_36 = arith.constant dense<0.000000e+00> : vector<32x128xf32>
    %170 = tpu.matmul %167, %169, %cst_36 {dimension_numbers = #tpu.dot_dimension_numbers<[1], [0], [0], [1], [0, 0, 1, 1], [], []>} : vector<32x128xbf16>, vector<128x128xbf16>, vector<32x128xf32> -> vector<32x128xf32>
    %c0_37 = arith.constant 0 : index
    %c0_38 = arith.constant 0 : index
    %c0_39 = arith.constant 0 : index
    %171 = vector.load %arg8[%c0_37, %c0_38, %c0_39] : memref<2x1x128xf32, #tpu.memory_space<vmem>>, vector<1x1x128xf32>
    %172 = vector.shape_cast %171 : vector<1x1x128xf32> to vector<1x128xf32>
    %173 = vector.broadcast %172 : vector<1x128xf32> to vector<32x128xf32>
    %174 = arith.addf %170, %173 : vector<32x128xf32>
    %175 = arith.addf %174, %27 : vector<32x128xf32>
    %c0_40 = arith.constant 0 : index
    %c0_41 = arith.constant 0 : index
    %c0_42 = arith.constant 0 : index
    %176 = vector.load %arg9[%c0_40, %c0_41, %c0_42] : memref<2x1x128xf32, #tpu.memory_space<vmem>>, vector<1x1x128xf32>
    %177 = vector.shape_cast %176 : vector<1x1x128xf32> to vector<1x128xf32>
    %c0_43 = arith.constant 0 : index
    %c0_44 = arith.constant 0 : index
    %c0_45 = arith.constant 0 : index
    %178 = vector.load %arg10[%c0_43, %c0_44, %c0_45] : memref<2x1x128xf32, #tpu.memory_space<vmem>>, vector<1x1x128xf32>
    %179 = vector.shape_cast %178 : vector<1x1x128xf32> to vector<1x128xf32>
    %cst_46 = arith.constant dense<0.000000e+00> : vector<32xf32>
    %180 = vector.multi_reduction <add>, %175, %cst_46 [1] : vector<32x128xf32> to vector<32xf32>
    %181 = vector.shape_cast %180 : vector<32xf32> to vector<32x1xf32>
    %cst_47 = arith.constant 1.280000e+02 : f32
    %182 = vector.broadcast %cst_47 : f32 to vector<32x1xf32>
    %183 = arith.divf %181, %182 : vector<32x1xf32>
    %184 = vector.broadcast %183 : vector<32x1xf32> to vector<32x128xf32>
    %185 = arith.subf %175, %184 : vector<32x128xf32>
    %186 = vector.broadcast %183 : vector<32x1xf32> to vector<32x128xf32>
    %187 = arith.subf %175, %186 : vector<32x128xf32>
    %188 = arith.mulf %185, %187 : vector<32x128xf32>
    %cst_48 = arith.constant dense<0.000000e+00> : vector<32xf32>
    %189 = vector.multi_reduction <add>, %188, %cst_48 [1] : vector<32x128xf32> to vector<32xf32>
    %190 = vector.shape_cast %189 : vector<32xf32> to vector<32x1xf32>
    %cst_49 = arith.constant 1.280000e+02 : f32
    %191 = vector.broadcast %cst_49 : f32 to vector<32x1xf32>
    %192 = arith.divf %190, %191 : vector<32x1xf32>
    %193 = vector.broadcast %183 : vector<32x1xf32> to vector<32x128xf32>
    %194 = arith.subf %175, %193 : vector<32x128xf32>
    %cst_50 = arith.constant 9.99999974E-6 : f32
    %195 = vector.broadcast %cst_50 : f32 to vector<32x1xf32>
    %196 = arith.addf %192, %195 : vector<32x1xf32>
    %197 = math.rsqrt %196 : vector<32x1xf32>
    %198 = vector.broadcast %197 : vector<32x1xf32> to vector<32x128xf32>
    %199 = arith.mulf %194, %198 : vector<32x128xf32>
    %200 = vector.broadcast %177 : vector<1x128xf32> to vector<32x128xf32>
    %201 = arith.mulf %199, %200 : vector<32x128xf32>
    %202 = vector.broadcast %179 : vector<1x128xf32> to vector<32x128xf32>
    %203 = arith.addf %201, %202 : vector<32x128xf32>
    %204 = arith.truncf %203 : vector<32x128xf32> to vector<32x128xbf16>
    %c0_51 = arith.constant 0 : index
    %c0_52 = arith.constant 0 : index
    %c0_53 = arith.constant 0 : index
    %205 = vector.load %arg11[%c0_51, %c0_52, %c0_53] : memref<2x128x256xbf16, #tpu.memory_space<vmem>>, vector<1x128x256xbf16>
    %206 = vector.shape_cast %205 : vector<1x128x256xbf16> to vector<128x256xbf16>
    %cst_54 = arith.constant dense<0.000000e+00> : vector<32x256xf32>
    %207 = tpu.matmul %204, %206, %cst_54 {dimension_numbers = #tpu.dot_dimension_numbers<[1], [0], [0], [1], [0, 0, 1, 1], [], []>} : vector<32x128xbf16>, vector<128x256xbf16>, vector<32x256xf32> -> vector<32x256xf32>
    %c0_55 = arith.constant 0 : index
    %c0_56 = arith.constant 0 : index
    %c0_57 = arith.constant 0 : index
    %208 = vector.load %arg12[%c0_55, %c0_56, %c0_57] : memref<2x1x256xf32, #tpu.memory_space<vmem>>, vector<1x1x256xf32>
    %209 = vector.shape_cast %208 : vector<1x1x256xf32> to vector<1x256xf32>
    %210 = vector.broadcast %209 : vector<1x256xf32> to vector<32x256xf32>
    %211 = arith.addf %207, %210 : vector<32x256xf32>
    %cst_58 = arith.constant 5.000000e-01 : f32
    %212 = vector.broadcast %cst_58 : f32 to vector<32x256xf32>
    %213 = arith.mulf %212, %211 : vector<32x256xf32>
    %cst_59 = arith.constant 4.471500e-02 : f32
    %214 = vector.broadcast %cst_59 : f32 to vector<32x256xf32>
    %215 = arith.mulf %214, %211 : vector<32x256xf32>
    %216 = arith.mulf %215, %211 : vector<32x256xf32>
    %217 = arith.mulf %216, %211 : vector<32x256xf32>
    %218 = arith.addf %211, %217 : vector<32x256xf32>
    %cst_60 = arith.constant 0.797884583 : f32
    %219 = vector.broadcast %cst_60 : f32 to vector<32x256xf32>
    %220 = arith.mulf %219, %218 : vector<32x256xf32>
    %221 = math.tanh %220 : vector<32x256xf32>
    %cst_61 = arith.constant 1.000000e+00 : f32
    %222 = vector.broadcast %cst_61 : f32 to vector<32x256xf32>
    %223 = arith.addf %222, %221 : vector<32x256xf32>
    %224 = arith.mulf %213, %223 : vector<32x256xf32>
    %225 = arith.truncf %224 : vector<32x256xf32> to vector<32x256xbf16>
    %c0_62 = arith.constant 0 : index
    %c0_63 = arith.constant 0 : index
    %c0_64 = arith.constant 0 : index
    %226 = vector.load %arg13[%c0_62, %c0_63, %c0_64] : memref<2x256x128xbf16, #tpu.memory_space<vmem>>, vector<1x256x128xbf16>
    %227 = vector.shape_cast %226 : vector<1x256x128xbf16> to vector<256x128xbf16>
    %cst_65 = arith.constant dense<0.000000e+00> : vector<32x128xf32>
    %228 = tpu.matmul %225, %227, %cst_65 {dimension_numbers = #tpu.dot_dimension_numbers<[1], [0], [0], [1], [0, 0, 1, 1], [], []>} : vector<32x256xbf16>, vector<256x128xbf16>, vector<32x128xf32> -> vector<32x128xf32>
    %c0_66 = arith.constant 0 : index
    %c0_67 = arith.constant 0 : index
    %c0_68 = arith.constant 0 : index
    %229 = vector.load %arg14[%c0_66, %c0_67, %c0_68] : memref<2x1x128xf32, #tpu.memory_space<vmem>>, vector<1x1x128xf32>
    %230 = vector.shape_cast %229 : vector<1x1x128xf32> to vector<1x128xf32>
    %231 = vector.broadcast %230 : vector<1x128xf32> to vector<32x128xf32>
    %232 = arith.addf %228, %231 : vector<32x128xf32>
    %233 = arith.addf %232, %203 : vector<32x128xf32>
    %c0_69 = arith.constant 0 : index
    %c0_70 = arith.constant 0 : index
    %c0_71 = arith.constant 0 : index
    %234 = vector.load %arg15[%c0_69, %c0_70, %c0_71] : memref<2x1x128xf32, #tpu.memory_space<vmem>>, vector<1x1x128xf32>
    %235 = vector.shape_cast %234 : vector<1x1x128xf32> to vector<1x128xf32>
    %c0_72 = arith.constant 0 : index
    %c0_73 = arith.constant 0 : index
    %c0_74 = arith.constant 0 : index
    %236 = vector.load %arg16[%c0_72, %c0_73, %c0_74] : memref<2x1x128xf32, #tpu.memory_space<vmem>>, vector<1x1x128xf32>
    %237 = vector.shape_cast %236 : vector<1x1x128xf32> to vector<1x128xf32>
    %cst_75 = arith.constant dense<0.000000e+00> : vector<32xf32>
    %238 = vector.multi_reduction <add>, %233, %cst_75 [1] : vector<32x128xf32> to vector<32xf32>
    %239 = vector.shape_cast %238 : vector<32xf32> to vector<32x1xf32>
    %cst_76 = arith.constant 1.280000e+02 : f32
    %240 = vector.broadcast %cst_76 : f32 to vector<32x1xf32>
    %241 = arith.divf %239, %240 : vector<32x1xf32>
    %242 = vector.broadcast %241 : vector<32x1xf32> to vector<32x128xf32>
    %243 = arith.subf %233, %242 : vector<32x128xf32>
    %244 = vector.broadcast %241 : vector<32x1xf32> to vector<32x128xf32>
    %245 = arith.subf %233, %244 : vector<32x128xf32>
    %246 = arith.mulf %243, %245 : vector<32x128xf32>
    %cst_77 = arith.constant dense<0.000000e+00> : vector<32xf32>
    %247 = vector.multi_reduction <add>, %246, %cst_77 [1] : vector<32x128xf32> to vector<32xf32>
    %248 = vector.shape_cast %247 : vector<32xf32> to vector<32x1xf32>
    %cst_78 = arith.constant 1.280000e+02 : f32
    %249 = vector.broadcast %cst_78 : f32 to vector<32x1xf32>
    %250 = arith.divf %248, %249 : vector<32x1xf32>
    %251 = vector.broadcast %241 : vector<32x1xf32> to vector<32x128xf32>
    %252 = arith.subf %233, %251 : vector<32x128xf32>
    %cst_79 = arith.constant 9.99999974E-6 : f32
    %253 = vector.broadcast %cst_79 : f32 to vector<32x1xf32>
    %254 = arith.addf %250, %253 : vector<32x1xf32>
    %255 = math.rsqrt %254 : vector<32x1xf32>
    %256 = vector.broadcast %255 : vector<32x1xf32> to vector<32x128xf32>
    %257 = arith.mulf %252, %256 : vector<32x128xf32>
    %258 = vector.broadcast %235 : vector<1x128xf32> to vector<32x128xf32>
    %259 = arith.mulf %257, %258 : vector<32x128xf32>
    %260 = vector.broadcast %237 : vector<1x128xf32> to vector<32x128xf32>
    %261 = arith.addf %259, %260 : vector<32x128xf32>
    %262 = arith.truncf %261 : vector<32x128xf32> to vector<32x128xbf16>
    %c1 = arith.constant 1 : index
    %c0_80 = arith.constant 0 : index
    %c0_81 = arith.constant 0 : index
    %263 = vector.load %arg5[%c1, %c0_80, %c0_81] : memref<2x128x384xbf16, #tpu.memory_space<vmem>>, vector<1x128x384xbf16>
    %264 = vector.shape_cast %263 : vector<1x128x384xbf16> to vector<128x384xbf16>
    %cst_82 = arith.constant dense<0.000000e+00> : vector<32x384xf32>
    %265 = tpu.matmul %262, %264, %cst_82 {dimension_numbers = #tpu.dot_dimension_numbers<[1], [0], [0], [1], [0, 0, 1, 1], [], []>} : vector<32x128xbf16>, vector<128x384xbf16>, vector<32x384xf32> -> vector<32x384xf32>
    %c1_83 = arith.constant 1 : index
    %c0_84 = arith.constant 0 : index
    %c0_85 = arith.constant 0 : index
    %266 = vector.load %arg6[%c1_83, %c0_84, %c0_85] : memref<2x1x384xf32, #tpu.memory_space<vmem>>, vector<1x1x384xf32>
    %267 = vector.shape_cast %266 : vector<1x1x384xf32> to vector<1x384xf32>
    %268 = vector.broadcast %267 : vector<1x384xf32> to vector<32x384xf32>
    %269 = arith.addf %265, %268 : vector<32x384xf32>
    %270 = vector.extract_strided_slice %269 {offsets = [0, 0], sizes = [32, 128], strides = [1, 1]} : vector<32x384xf32> to vector<32x128xf32>
    %271 = vector.extract_strided_slice %269 {offsets = [0, 128], sizes = [32, 128], strides = [1, 1]} : vector<32x384xf32> to vector<32x128xf32>
    %272 = vector.extract_strided_slice %269 {offsets = [0, 256], sizes = [32, 128], strides = [1, 1]} : vector<32x384xf32> to vector<32x128xf32>
    %273 = vector.extract_strided_slice %270 {offsets = [0, 0], sizes = [16, 128], strides = [1, 1]} : vector<32x128xf32> to vector<16x128xf32>
    %274 = vector.extract_strided_slice %271 {offsets = [0, 0], sizes = [16, 128], strides = [1, 1]} : vector<32x128xf32> to vector<16x128xf32>
    %275 = vector.extract_strided_slice %272 {offsets = [0, 0], sizes = [16, 128], strides = [1, 1]} : vector<32x128xf32> to vector<16x128xf32>
    %276 = vector.broadcast %35 : vector<1x128xf32> to vector<16x128xf32>
    %277 = arith.mulf %273, %276 : vector<16x128xf32>
    %278 = vector.broadcast %42 : vector<1x128xf32> to vector<16x128xf32>
    %279 = arith.mulf %273, %278 : vector<16x128xf32>
    %280 = vector.broadcast %49 : vector<1x128xf32> to vector<16x128xf32>
    %281 = arith.mulf %273, %280 : vector<16x128xf32>
    %282 = vector.broadcast %56 : vector<1x128xf32> to vector<16x128xf32>
    %283 = arith.mulf %273, %282 : vector<16x128xf32>
    %284 = tpu.concatenate %277, %279, %281, %283 in 0 : vector<16x128xf32>, vector<16x128xf32>, vector<16x128xf32>, vector<16x128xf32> -> vector<64x128xf32>
    %285 = arith.truncf %284 : vector<64x128xf32> to vector<64x128xbf16>
    %286 = arith.truncf %274 : vector<16x128xf32> to vector<16x128xbf16>
    %cst_86 = arith.constant dense<0.000000e+00> : vector<64x16xf32>
    %287 = tpu.matmul %285, %286, %cst_86 {dimension_numbers = #tpu.dot_dimension_numbers<[1], [1], [0], [0], [0, 0, 1, 0], [], []>} : vector<64x128xbf16>, vector<16x128xbf16>, vector<64x16xf32> -> vector<64x16xf32>
    %cst_87 = arith.constant 0.176776692 : f32
    %288 = vector.broadcast %cst_87 : f32 to vector<64x16xf32>
    %289 = arith.mulf %287, %288 : vector<64x16xf32>
    %290 = arith.addf %289, %61 : vector<64x16xf32>
    %cst_88 = arith.constant dense<0xFF800000> : vector<64xf32>
    %291 = vector.multi_reduction <maximumf>, %290, %cst_88 [1] : vector<64x16xf32> to vector<64xf32>
    %292 = vector.shape_cast %291 : vector<64xf32> to vector<64x1xf32>
    %293 = vector.broadcast %292 : vector<64x1xf32> to vector<64x16xf32>
    %294 = arith.subf %290, %293 : vector<64x16xf32>
    %295 = math.exp %294 : vector<64x16xf32>
    %cst_89 = arith.constant dense<0.000000e+00> : vector<64xf32>
    %296 = vector.multi_reduction <add>, %295, %cst_89 [1] : vector<64x16xf32> to vector<64xf32>
    %297 = vector.shape_cast %296 : vector<64xf32> to vector<64x1xf32>
    %298 = vector.broadcast %297 : vector<64x1xf32> to vector<64x16xf32>
    %299 = arith.divf %295, %298 : vector<64x16xf32>
    %300 = arith.truncf %299 : vector<64x16xf32> to vector<64x16xbf16>
    %301 = arith.truncf %275 : vector<16x128xf32> to vector<16x128xbf16>
    %cst_90 = arith.constant dense<0.000000e+00> : vector<64x128xf32>
    %302 = tpu.matmul %300, %301, %cst_90 {dimension_numbers = #tpu.dot_dimension_numbers<[1], [0], [0], [1], [0, 0, 1, 1], [], []>} : vector<64x16xbf16>, vector<16x128xbf16>, vector<64x128xf32> -> vector<64x128xf32>
    %303 = vector.extract_strided_slice %302 {offsets = [0, 0], sizes = [16, 128], strides = [1, 1]} : vector<64x128xf32> to vector<16x128xf32>
    %304 = vector.broadcast %35 : vector<1x128xf32> to vector<16x128xf32>
    %305 = arith.mulf %303, %304 : vector<16x128xf32>
    %306 = vector.extract_strided_slice %302 {offsets = [16, 0], sizes = [16, 128], strides = [1, 1]} : vector<64x128xf32> to vector<16x128xf32>
    %307 = vector.broadcast %42 : vector<1x128xf32> to vector<16x128xf32>
    %308 = arith.mulf %306, %307 : vector<16x128xf32>
    %309 = arith.addf %305, %308 : vector<16x128xf32>
    %310 = vector.extract_strided_slice %302 {offsets = [32, 0], sizes = [16, 128], strides = [1, 1]} : vector<64x128xf32> to vector<16x128xf32>
    %311 = vector.broadcast %49 : vector<1x128xf32> to vector<16x128xf32>
    %312 = arith.mulf %310, %311 : vector<16x128xf32>
    %313 = arith.addf %309, %312 : vector<16x128xf32>
    %314 = vector.extract_strided_slice %302 {offsets = [48, 0], sizes = [16, 128], strides = [1, 1]} : vector<64x128xf32> to vector<16x128xf32>
    %315 = vector.broadcast %56 : vector<1x128xf32> to vector<16x128xf32>
    %316 = arith.mulf %314, %315 : vector<16x128xf32>
    %317 = arith.addf %313, %316 : vector<16x128xf32>
    %318 = vector.extract_strided_slice %270 {offsets = [16, 0], sizes = [16, 128], strides = [1, 1]} : vector<32x128xf32> to vector<16x128xf32>
    %319 = vector.extract_strided_slice %271 {offsets = [16, 0], sizes = [16, 128], strides = [1, 1]} : vector<32x128xf32> to vector<16x128xf32>
    %320 = vector.extract_strided_slice %272 {offsets = [16, 0], sizes = [16, 128], strides = [1, 1]} : vector<32x128xf32> to vector<16x128xf32>
    %321 = vector.broadcast %35 : vector<1x128xf32> to vector<16x128xf32>
    %322 = arith.mulf %318, %321 : vector<16x128xf32>
    %323 = vector.broadcast %42 : vector<1x128xf32> to vector<16x128xf32>
    %324 = arith.mulf %318, %323 : vector<16x128xf32>
    %325 = vector.broadcast %49 : vector<1x128xf32> to vector<16x128xf32>
    %326 = arith.mulf %318, %325 : vector<16x128xf32>
    %327 = vector.broadcast %56 : vector<1x128xf32> to vector<16x128xf32>
    %328 = arith.mulf %318, %327 : vector<16x128xf32>
    %329 = tpu.concatenate %322, %324, %326, %328 in 0 : vector<16x128xf32>, vector<16x128xf32>, vector<16x128xf32>, vector<16x128xf32> -> vector<64x128xf32>
    %330 = arith.truncf %329 : vector<64x128xf32> to vector<64x128xbf16>
    %331 = arith.truncf %319 : vector<16x128xf32> to vector<16x128xbf16>
    %cst_91 = arith.constant dense<0.000000e+00> : vector<64x16xf32>
    %332 = tpu.matmul %330, %331, %cst_91 {dimension_numbers = #tpu.dot_dimension_numbers<[1], [1], [0], [0], [0, 0, 1, 0], [], []>} : vector<64x128xbf16>, vector<16x128xbf16>, vector<64x16xf32> -> vector<64x16xf32>
    %cst_92 = arith.constant 0.176776692 : f32
    %333 = vector.broadcast %cst_92 : f32 to vector<64x16xf32>
    %334 = arith.mulf %332, %333 : vector<64x16xf32>
    %335 = arith.addf %334, %64 : vector<64x16xf32>
    %cst_93 = arith.constant dense<0xFF800000> : vector<64xf32>
    %336 = vector.multi_reduction <maximumf>, %335, %cst_93 [1] : vector<64x16xf32> to vector<64xf32>
    %337 = vector.shape_cast %336 : vector<64xf32> to vector<64x1xf32>
    %338 = vector.broadcast %337 : vector<64x1xf32> to vector<64x16xf32>
    %339 = arith.subf %335, %338 : vector<64x16xf32>
    %340 = math.exp %339 : vector<64x16xf32>
    %cst_94 = arith.constant dense<0.000000e+00> : vector<64xf32>
    %341 = vector.multi_reduction <add>, %340, %cst_94 [1] : vector<64x16xf32> to vector<64xf32>
    %342 = vector.shape_cast %341 : vector<64xf32> to vector<64x1xf32>
    %343 = vector.broadcast %342 : vector<64x1xf32> to vector<64x16xf32>
    %344 = arith.divf %340, %343 : vector<64x16xf32>
    %345 = arith.truncf %344 : vector<64x16xf32> to vector<64x16xbf16>
    %346 = arith.truncf %320 : vector<16x128xf32> to vector<16x128xbf16>
    %cst_95 = arith.constant dense<0.000000e+00> : vector<64x128xf32>
    %347 = tpu.matmul %345, %346, %cst_95 {dimension_numbers = #tpu.dot_dimension_numbers<[1], [0], [0], [1], [0, 0, 1, 1], [], []>} : vector<64x16xbf16>, vector<16x128xbf16>, vector<64x128xf32> -> vector<64x128xf32>
    %348 = vector.extract_strided_slice %347 {offsets = [0, 0], sizes = [16, 128], strides = [1, 1]} : vector<64x128xf32> to vector<16x128xf32>
    %349 = vector.broadcast %35 : vector<1x128xf32> to vector<16x128xf32>
    %350 = arith.mulf %348, %349 : vector<16x128xf32>
    %351 = vector.extract_strided_slice %347 {offsets = [16, 0], sizes = [16, 128], strides = [1, 1]} : vector<64x128xf32> to vector<16x128xf32>
    %352 = vector.broadcast %42 : vector<1x128xf32> to vector<16x128xf32>
    %353 = arith.mulf %351, %352 : vector<16x128xf32>
    %354 = arith.addf %350, %353 : vector<16x128xf32>
    %355 = vector.extract_strided_slice %347 {offsets = [32, 0], sizes = [16, 128], strides = [1, 1]} : vector<64x128xf32> to vector<16x128xf32>
    %356 = vector.broadcast %49 : vector<1x128xf32> to vector<16x128xf32>
    %357 = arith.mulf %355, %356 : vector<16x128xf32>
    %358 = arith.addf %354, %357 : vector<16x128xf32>
    %359 = vector.extract_strided_slice %347 {offsets = [48, 0], sizes = [16, 128], strides = [1, 1]} : vector<64x128xf32> to vector<16x128xf32>
    %360 = vector.broadcast %56 : vector<1x128xf32> to vector<16x128xf32>
    %361 = arith.mulf %359, %360 : vector<16x128xf32>
    %362 = arith.addf %358, %361 : vector<16x128xf32>
    %363 = tpu.concatenate %317, %362 in 0 : vector<16x128xf32>, vector<16x128xf32> -> vector<32x128xf32>
    %364 = arith.truncf %363 : vector<32x128xf32> to vector<32x128xbf16>
    %c1_96 = arith.constant 1 : index
    %c0_97 = arith.constant 0 : index
    %c0_98 = arith.constant 0 : index
    %365 = vector.load %arg7[%c1_96, %c0_97, %c0_98] : memref<2x128x128xbf16, #tpu.memory_space<vmem>>, vector<1x128x128xbf16>
    %366 = vector.shape_cast %365 : vector<1x128x128xbf16> to vector<128x128xbf16>
    %cst_99 = arith.constant dense<0.000000e+00> : vector<32x128xf32>
    %367 = tpu.matmul %364, %366, %cst_99 {dimension_numbers = #tpu.dot_dimension_numbers<[1], [0], [0], [1], [0, 0, 1, 1], [], []>} : vector<32x128xbf16>, vector<128x128xbf16>, vector<32x128xf32> -> vector<32x128xf32>
    %c1_100 = arith.constant 1 : index
    %c0_101 = arith.constant 0 : index
    %c0_102 = arith.constant 0 : index
    %368 = vector.load %arg8[%c1_100, %c0_101, %c0_102] : memref<2x1x128xf32, #tpu.memory_space<vmem>>, vector<1x1x128xf32>
    %369 = vector.shape_cast %368 : vector<1x1x128xf32> to vector<1x128xf32>
    %370 = vector.broadcast %369 : vector<1x128xf32> to vector<32x128xf32>
    %371 = arith.addf %367, %370 : vector<32x128xf32>
    %372 = arith.addf %371, %261 : vector<32x128xf32>
    %c1_103 = arith.constant 1 : index
    %c0_104 = arith.constant 0 : index
    %c0_105 = arith.constant 0 : index
    %373 = vector.load %arg9[%c1_103, %c0_104, %c0_105] : memref<2x1x128xf32, #tpu.memory_space<vmem>>, vector<1x1x128xf32>
    %374 = vector.shape_cast %373 : vector<1x1x128xf32> to vector<1x128xf32>
    %c1_106 = arith.constant 1 : index
    %c0_107 = arith.constant 0 : index
    %c0_108 = arith.constant 0 : index
    %375 = vector.load %arg10[%c1_106, %c0_107, %c0_108] : memref<2x1x128xf32, #tpu.memory_space<vmem>>, vector<1x1x128xf32>
    %376 = vector.shape_cast %375 : vector<1x1x128xf32> to vector<1x128xf32>
    %cst_109 = arith.constant dense<0.000000e+00> : vector<32xf32>
    %377 = vector.multi_reduction <add>, %372, %cst_109 [1] : vector<32x128xf32> to vector<32xf32>
    %378 = vector.shape_cast %377 : vector<32xf32> to vector<32x1xf32>
    %cst_110 = arith.constant 1.280000e+02 : f32
    %379 = vector.broadcast %cst_110 : f32 to vector<32x1xf32>
    %380 = arith.divf %378, %379 : vector<32x1xf32>
    %381 = vector.broadcast %380 : vector<32x1xf32> to vector<32x128xf32>
    %382 = arith.subf %372, %381 : vector<32x128xf32>
    %383 = vector.broadcast %380 : vector<32x1xf32> to vector<32x128xf32>
    %384 = arith.subf %372, %383 : vector<32x128xf32>
    %385 = arith.mulf %382, %384 : vector<32x128xf32>
    %cst_111 = arith.constant dense<0.000000e+00> : vector<32xf32>
    %386 = vector.multi_reduction <add>, %385, %cst_111 [1] : vector<32x128xf32> to vector<32xf32>
    %387 = vector.shape_cast %386 : vector<32xf32> to vector<32x1xf32>
    %cst_112 = arith.constant 1.280000e+02 : f32
    %388 = vector.broadcast %cst_112 : f32 to vector<32x1xf32>
    %389 = arith.divf %387, %388 : vector<32x1xf32>
    %390 = vector.broadcast %380 : vector<32x1xf32> to vector<32x128xf32>
    %391 = arith.subf %372, %390 : vector<32x128xf32>
    %cst_113 = arith.constant 9.99999974E-6 : f32
    %392 = vector.broadcast %cst_113 : f32 to vector<32x1xf32>
    %393 = arith.addf %389, %392 : vector<32x1xf32>
    %394 = math.rsqrt %393 : vector<32x1xf32>
    %395 = vector.broadcast %394 : vector<32x1xf32> to vector<32x128xf32>
    %396 = arith.mulf %391, %395 : vector<32x128xf32>
    %397 = vector.broadcast %374 : vector<1x128xf32> to vector<32x128xf32>
    %398 = arith.mulf %396, %397 : vector<32x128xf32>
    %399 = vector.broadcast %376 : vector<1x128xf32> to vector<32x128xf32>
    %400 = arith.addf %398, %399 : vector<32x128xf32>
    %401 = arith.truncf %400 : vector<32x128xf32> to vector<32x128xbf16>
    %c1_114 = arith.constant 1 : index
    %c0_115 = arith.constant 0 : index
    %c0_116 = arith.constant 0 : index
    %402 = vector.load %arg11[%c1_114, %c0_115, %c0_116] : memref<2x128x256xbf16, #tpu.memory_space<vmem>>, vector<1x128x256xbf16>
    %403 = vector.shape_cast %402 : vector<1x128x256xbf16> to vector<128x256xbf16>
    %cst_117 = arith.constant dense<0.000000e+00> : vector<32x256xf32>
    %404 = tpu.matmul %401, %403, %cst_117 {dimension_numbers = #tpu.dot_dimension_numbers<[1], [0], [0], [1], [0, 0, 1, 1], [], []>} : vector<32x128xbf16>, vector<128x256xbf16>, vector<32x256xf32> -> vector<32x256xf32>
    %c1_118 = arith.constant 1 : index
    %c0_119 = arith.constant 0 : index
    %c0_120 = arith.constant 0 : index
    %405 = vector.load %arg12[%c1_118, %c0_119, %c0_120] : memref<2x1x256xf32, #tpu.memory_space<vmem>>, vector<1x1x256xf32>
    %406 = vector.shape_cast %405 : vector<1x1x256xf32> to vector<1x256xf32>
    %407 = vector.broadcast %406 : vector<1x256xf32> to vector<32x256xf32>
    %408 = arith.addf %404, %407 : vector<32x256xf32>
    %cst_121 = arith.constant 5.000000e-01 : f32
    %409 = vector.broadcast %cst_121 : f32 to vector<32x256xf32>
    %410 = arith.mulf %409, %408 : vector<32x256xf32>
    %cst_122 = arith.constant 4.471500e-02 : f32
    %411 = vector.broadcast %cst_122 : f32 to vector<32x256xf32>
    %412 = arith.mulf %411, %408 : vector<32x256xf32>
    %413 = arith.mulf %412, %408 : vector<32x256xf32>
    %414 = arith.mulf %413, %408 : vector<32x256xf32>
    %415 = arith.addf %408, %414 : vector<32x256xf32>
    %cst_123 = arith.constant 0.797884583 : f32
    %416 = vector.broadcast %cst_123 : f32 to vector<32x256xf32>
    %417 = arith.mulf %416, %415 : vector<32x256xf32>
    %418 = math.tanh %417 : vector<32x256xf32>
    %cst_124 = arith.constant 1.000000e+00 : f32
    %419 = vector.broadcast %cst_124 : f32 to vector<32x256xf32>
    %420 = arith.addf %419, %418 : vector<32x256xf32>
    %421 = arith.mulf %410, %420 : vector<32x256xf32>
    %422 = arith.truncf %421 : vector<32x256xf32> to vector<32x256xbf16>
    %c1_125 = arith.constant 1 : index
    %c0_126 = arith.constant 0 : index
    %c0_127 = arith.constant 0 : index
    %423 = vector.load %arg13[%c1_125, %c0_126, %c0_127] : memref<2x256x128xbf16, #tpu.memory_space<vmem>>, vector<1x256x128xbf16>
    %424 = vector.shape_cast %423 : vector<1x256x128xbf16> to vector<256x128xbf16>
    %cst_128 = arith.constant dense<0.000000e+00> : vector<32x128xf32>
    %425 = tpu.matmul %422, %424, %cst_128 {dimension_numbers = #tpu.dot_dimension_numbers<[1], [0], [0], [1], [0, 0, 1, 1], [], []>} : vector<32x256xbf16>, vector<256x128xbf16>, vector<32x128xf32> -> vector<32x128xf32>
    %c1_129 = arith.constant 1 : index
    %c0_130 = arith.constant 0 : index
    %c0_131 = arith.constant 0 : index
    %426 = vector.load %arg14[%c1_129, %c0_130, %c0_131] : memref<2x1x128xf32, #tpu.memory_space<vmem>>, vector<1x1x128xf32>
    %427 = vector.shape_cast %426 : vector<1x1x128xf32> to vector<1x128xf32>
    %428 = vector.broadcast %427 : vector<1x128xf32> to vector<32x128xf32>
    %429 = arith.addf %425, %428 : vector<32x128xf32>
    %430 = arith.addf %429, %400 : vector<32x128xf32>
    %c1_132 = arith.constant 1 : index
    %c0_133 = arith.constant 0 : index
    %c0_134 = arith.constant 0 : index
    %431 = vector.load %arg15[%c1_132, %c0_133, %c0_134] : memref<2x1x128xf32, #tpu.memory_space<vmem>>, vector<1x1x128xf32>
    %432 = vector.shape_cast %431 : vector<1x1x128xf32> to vector<1x128xf32>
    %c1_135 = arith.constant 1 : index
    %c0_136 = arith.constant 0 : index
    %c0_137 = arith.constant 0 : index
    %433 = vector.load %arg16[%c1_135, %c0_136, %c0_137] : memref<2x1x128xf32, #tpu.memory_space<vmem>>, vector<1x1x128xf32>
    %434 = vector.shape_cast %433 : vector<1x1x128xf32> to vector<1x128xf32>
    %cst_138 = arith.constant dense<0.000000e+00> : vector<32xf32>
    %435 = vector.multi_reduction <add>, %430, %cst_138 [1] : vector<32x128xf32> to vector<32xf32>
    %436 = vector.shape_cast %435 : vector<32xf32> to vector<32x1xf32>
    %cst_139 = arith.constant 1.280000e+02 : f32
    %437 = vector.broadcast %cst_139 : f32 to vector<32x1xf32>
    %438 = arith.divf %436, %437 : vector<32x1xf32>
    %439 = vector.broadcast %438 : vector<32x1xf32> to vector<32x128xf32>
    %440 = arith.subf %430, %439 : vector<32x128xf32>
    %441 = vector.broadcast %438 : vector<32x1xf32> to vector<32x128xf32>
    %442 = arith.subf %430, %441 : vector<32x128xf32>
    %443 = arith.mulf %440, %442 : vector<32x128xf32>
    %cst_140 = arith.constant dense<0.000000e+00> : vector<32xf32>
    %444 = vector.multi_reduction <add>, %443, %cst_140 [1] : vector<32x128xf32> to vector<32xf32>
    %445 = vector.shape_cast %444 : vector<32xf32> to vector<32x1xf32>
    %cst_141 = arith.constant 1.280000e+02 : f32
    %446 = vector.broadcast %cst_141 : f32 to vector<32x1xf32>
    %447 = arith.divf %445, %446 : vector<32x1xf32>
    %448 = vector.broadcast %438 : vector<32x1xf32> to vector<32x128xf32>
    %449 = arith.subf %430, %448 : vector<32x128xf32>
    %cst_142 = arith.constant 9.99999974E-6 : f32
    %450 = vector.broadcast %cst_142 : f32 to vector<32x1xf32>
    %451 = arith.addf %447, %450 : vector<32x1xf32>
    %452 = math.rsqrt %451 : vector<32x1xf32>
    %453 = vector.broadcast %452 : vector<32x1xf32> to vector<32x128xf32>
    %454 = arith.mulf %449, %453 : vector<32x128xf32>
    %455 = vector.broadcast %432 : vector<1x128xf32> to vector<32x128xf32>
    %456 = arith.mulf %454, %455 : vector<32x128xf32>
    %457 = vector.broadcast %434 : vector<1x128xf32> to vector<32x128xf32>
    %458 = arith.addf %456, %457 : vector<32x128xf32>
    %459 = tpu.iota {dimensions = array<i32: 0>} : vector<2x32xi32>
    %460 = tpu.iota {dimensions = array<i32: 1>} : vector<2x32xi32>
    %c16_i32 = arith.constant 16 : i32
    %461 = vector.broadcast %c16_i32 : i32 to vector<2x32xi32>
    %462 = arith.muli %459, %461 : vector<2x32xi32>
    %463 = arith.cmpi eq, %460, %462 : vector<2x32xi32>
    %464 = arith.extui %463 : vector<2x32xi1> to vector<2x32xi32>
    %465 = arith.sitofp %464 : vector<2x32xi32> to vector<2x32xf32>
    %cst_143 = arith.constant dense<0.000000e+00> : vector<2x128xf32>
    %466 = tpu.matmul %465, %458, %cst_143 {dimension_numbers = #tpu.dot_dimension_numbers<[1], [0], [0], [1], [0, 0, 1, 1], [], []>} : vector<2x32xf32>, vector<32x128xf32>, vector<2x128xf32> -> vector<2x128xf32>
    %467 = arith.truncf %466 : vector<2x128xf32> to vector<2x128xbf16>
    %c0_144 = arith.constant 0 : index
    %c0_145 = arith.constant 0 : index
    %468 = vector.load %arg17[%c0_144, %c0_145] : memref<128x128xbf16, #tpu.memory_space<vmem>>, vector<128x128xbf16>
    %cst_146 = arith.constant dense<0.000000e+00> : vector<2x128xf32>
    %469 = tpu.matmul %467, %468, %cst_146 {dimension_numbers = #tpu.dot_dimension_numbers<[1], [0], [0], [1], [0, 0, 1, 1], [], []>} : vector<2x128xbf16>, vector<128x128xbf16>, vector<2x128xf32> -> vector<2x128xf32>
    %c0_147 = arith.constant 0 : index
    %c0_148 = arith.constant 0 : index
    %470 = vector.load %arg18[%c0_147, %c0_148] : memref<1x128xf32, #tpu.memory_space<vmem>>, vector<1x128xf32>
    %471 = vector.broadcast %470 : vector<1x128xf32> to vector<2x128xf32>
    %472 = arith.addf %469, %471 : vector<2x128xf32>
    %473 = math.tanh %472 : vector<2x128xf32>
    %474 = arith.truncf %473 : vector<2x128xf32> to vector<2x128xbf16>
    %c0_149 = arith.constant 0 : index
    %c0_150 = arith.constant 0 : index
    %475 = vector.load %arg19[%c0_149, %c0_150] : memref<128x128xbf16, #tpu.memory_space<vmem>>, vector<128x128xbf16>
    %cst_151 = arith.constant dense<0.000000e+00> : vector<2x128xf32>
    %476 = tpu.matmul %474, %475, %cst_151 {dimension_numbers = #tpu.dot_dimension_numbers<[1], [0], [0], [1], [0, 0, 1, 1], [], []>} : vector<2x128xbf16>, vector<128x128xbf16>, vector<2x128xf32> -> vector<2x128xf32>
    %c0_152 = arith.constant 0 : index
    %c0_153 = arith.constant 0 : index
    %477 = vector.load %arg20[%c0_152, %c0_153] : memref<1x128xf32, #tpu.memory_space<vmem>>, vector<1x128xf32>
    %478 = vector.broadcast %477 : vector<1x128xf32> to vector<2x128xf32>
    %479 = arith.addf %476, %478 : vector<2x128xf32>
    %480 = tpu.iota {dimensions = array<i32: 1>} : vector<2x128xi32>
    %c2_i32 = arith.constant 2 : i32
    %481 = vector.broadcast %c2_i32 : i32 to vector<2x128xi32>
    %482 = arith.cmpi slt, %480, %481 : vector<2x128xi32>
    %cst_154 = arith.constant -1.000000e+30 : f32
    %483 = vector.broadcast %cst_154 : f32 to vector<2x128xf32>
    %484 = arith.select %482, %479, %483 : vector<2x128xi1>, vector<2x128xf32>
    %cst_155 = arith.constant dense<0xFF800000> : vector<2xf32>
    %485 = vector.multi_reduction <maximumf>, %484, %cst_155 [1] : vector<2x128xf32> to vector<2xf32>
    %486 = vector.shape_cast %485 : vector<2xf32> to vector<2x1xf32>
    %487 = vector.broadcast %486 : vector<2x1xf32> to vector<2x128xf32>
    %488 = arith.subf %484, %487 : vector<2x128xf32>
    %489 = math.exp %488 : vector<2x128xf32>
    %cst_156 = arith.constant 0.000000e+00 : f32
    %490 = vector.broadcast %cst_156 : f32 to vector<2x128xf32>
    %491 = arith.select %482, %489, %490 : vector<2x128xi1>, vector<2x128xf32>
    %cst_157 = arith.constant dense<0.000000e+00> : vector<2xf32>
    %492 = vector.multi_reduction <add>, %491, %cst_157 [1] : vector<2x128xf32> to vector<2xf32>
    %493 = vector.shape_cast %492 : vector<2xf32> to vector<2x1xf32>
    %494 = math.log %493 : vector<2x1xf32>
    %495 = arith.addf %494, %486 : vector<2x1xf32>
    %496 = vector.broadcast %495 : vector<2x1xf32> to vector<2x128xf32>
    %497 = arith.subf %479, %496 : vector<2x128xf32>
    %cst_158 = arith.constant 0.000000e+00 : f32
    %498 = vector.broadcast %cst_158 : f32 to vector<2x128xf32>
    %499 = arith.select %482, %497, %498 : vector<2x128xi1>, vector<2x128xf32>
    %cst_159 = arith.constant dense<0.000000e+00> : vector<2xf32>
    %500 = vector.multi_reduction <add>, %499, %cst_159 [1] : vector<2x128xf32> to vector<2xf32>
    %501 = vector.shape_cast %500 : vector<2xf32> to vector<2x1xf32>
    %cst_160 = arith.constant 5.000000e-01 : f32
    %502 = vector.broadcast %cst_160 : f32 to vector<2x1xf32>
    %503 = arith.mulf %501, %502 : vector<2x1xf32>
    %504 = vector.shape_cast %503 : vector<2x1xf32> to vector<1x2x1xf32>
    %505 = vector.shape_cast %504 : vector<1x2x1xf32> to vector<1x2x1xf32>
    %506 = vector.broadcast %505 : vector<1x2x1xf32> to vector<1x2x128xf32>
    %c0_161 = arith.constant 0 : index
    %c0_162 = arith.constant 0 : index
    %c0_163 = arith.constant 0 : index
    %507 = vector.load %arg21[%c0_161, %c0_162, %c0_163] : memref<1x2x128xf32, #tpu.memory_space<vmem>>, vector<1x2x128xf32>
    tpu.vector_store %arg21[%c0_161, %c0_162, %c0_163], %506 {strides = array<i32>} : memref<1x2x128xf32, #tpu.memory_space<vmem>>, vector<1x2x128xf32>,
    return
  }
  func.func @transform_0(%arg0: i32) -> (i32, i32, i32) {
    %c0_i32 = arith.constant 0 : i32
    %c0_i32_0 = arith.constant 0 : i32
    %c0_i32_1 = arith.constant 0 : i32
    return %arg0, %c0_i32, %c0_i32_0 : i32, i32, i32
  }
  func.func @transform_1(%arg0: i32) -> (i32, i32, i32) {
    %c0_i32 = arith.constant 0 : i32
    %c0_i32_0 = arith.constant 0 : i32
    %c0_i32_1 = arith.constant 0 : i32
    return %arg0, %c0_i32, %c0_i32_0 : i32, i32, i32
  }
  func.func @transform_2(%arg0: i32) -> (i32, i32) {
    %c0_i32 = arith.constant 0 : i32
    %c0_i32_0 = arith.constant 0 : i32
    %c0_i32_1 = arith.constant 0 : i32
    return %c0_i32, %c0_i32_0 : i32, i32
  }
  func.func @transform_3(%arg0: i32) -> (i32, i32) {
    %c0_i32 = arith.constant 0 : i32
    %c0_i32_0 = arith.constant 0 : i32
    %c0_i32_1 = arith.constant 0 : i32
    return %c0_i32, %c0_i32_0 : i32, i32
  }
  func.func @transform_4(%arg0: i32) -> (i32, i32, i32) {
    %c0_i32 = arith.constant 0 : i32
    %c0_i32_0 = arith.constant 0 : i32
    %c0_i32_1 = arith.constant 0 : i32
    %c0_i32_2 = arith.constant 0 : i32
    return %c0_i32, %c0_i32_0, %c0_i32_1 : i32, i32, i32
  }
  func.func @transform_5(%arg0: i32) -> (i32, i32, i32) {
    %c0_i32 = arith.constant 0 : i32
    %c0_i32_0 = arith.constant 0 : i32
    %c0_i32_1 = arith.constant 0 : i32
    %c0_i32_2 = arith.constant 0 : i32
    return %c0_i32, %c0_i32_0, %c0_i32_1 : i32, i32, i32
  }
  func.func @transform_6(%arg0: i32) -> (i32, i32, i32) {
    %c0_i32 = arith.constant 0 : i32
    %c0_i32_0 = arith.constant 0 : i32
    %c0_i32_1 = arith.constant 0 : i32
    %c0_i32_2 = arith.constant 0 : i32
    return %c0_i32, %c0_i32_0, %c0_i32_1 : i32, i32, i32
  }
  func.func @transform_7(%arg0: i32) -> (i32, i32, i32) {
    %c0_i32 = arith.constant 0 : i32
    %c0_i32_0 = arith.constant 0 : i32
    %c0_i32_1 = arith.constant 0 : i32
    %c0_i32_2 = arith.constant 0 : i32
    return %c0_i32, %c0_i32_0, %c0_i32_1 : i32, i32, i32
  }
  func.func @transform_8(%arg0: i32) -> (i32, i32, i32) {
    %c0_i32 = arith.constant 0 : i32
    %c0_i32_0 = arith.constant 0 : i32
    %c0_i32_1 = arith.constant 0 : i32
    %c0_i32_2 = arith.constant 0 : i32
    return %c0_i32, %c0_i32_0, %c0_i32_1 : i32, i32, i32
  }
  func.func @transform_9(%arg0: i32) -> (i32, i32, i32) {
    %c0_i32 = arith.constant 0 : i32
    %c0_i32_0 = arith.constant 0 : i32
    %c0_i32_1 = arith.constant 0 : i32
    %c0_i32_2 = arith.constant 0 : i32
    return %c0_i32, %c0_i32_0, %c0_i32_1 : i32, i32, i32
  }
  func.func @transform_10(%arg0: i32) -> (i32, i32, i32) {
    %c0_i32 = arith.constant 0 : i32
    %c0_i32_0 = arith.constant 0 : i32
    %c0_i32_1 = arith.constant 0 : i32
    %c0_i32_2 = arith.constant 0 : i32
    return %c0_i32, %c0_i32_0, %c0_i32_1 : i32, i32, i32
  }
  func.func @transform_11(%arg0: i32) -> (i32, i32, i32) {
    %c0_i32 = arith.constant 0 : i32
    %c0_i32_0 = arith.constant 0 : i32
    %c0_i32_1 = arith.constant 0 : i32
    %c0_i32_2 = arith.constant 0 : i32
    return %c0_i32, %c0_i32_0, %c0_i32_1 : i32, i32, i32
  }
  func.func @transform_12(%arg0: i32) -> (i32, i32, i32) {
    %c0_i32 = arith.constant 0 : i32
    %c0_i32_0 = arith.constant 0 : i32
    %c0_i32_1 = arith.constant 0 : i32
    %c0_i32_2 = arith.constant 0 : i32
    return %c0_i32, %c0_i32_0, %c0_i32_1 : i32, i32, i32
  }
  func.func @transform_13(%arg0: i32) -> (i32, i32, i32) {
    %c0_i32 = arith.constant 0 : i32
    %c0_i32_0 = arith.constant 0 : i32
    %c0_i32_1 = arith.constant 0 : i32
    %c0_i32_2 = arith.constant 0 : i32
    return %c0_i32, %c0_i32_0, %c0_i32_1 : i32, i32, i32
  }
  func.func @transform_14(%arg0: i32) -> (i32, i32, i32) {
    %c0_i32 = arith.constant 0 : i32
    %c0_i32_0 = arith.constant 0 : i32
    %c0_i32_1 = arith.constant 0 : i32
    %c0_i32_2 = arith.constant 0 : i32
    return %c0_i32, %c0_i32_0, %c0_i32_1 : i32, i32, i32
  }
  func.func @transform_15(%arg0: i32) -> (i32, i32, i32) {
    %c0_i32 = arith.constant 0 : i32
    %c0_i32_0 = arith.constant 0 : i32
    %c0_i32_1 = arith.constant 0 : i32
    %c0_i32_2 = arith.constant 0 : i32
    return %c0_i32, %c0_i32_0, %c0_i32_1 : i32, i32, i32
  }
  func.func @transform_16(%arg0: i32) -> (i32, i32) {
    %c0_i32 = arith.constant 0 : i32
    %c0_i32_0 = arith.constant 0 : i32
    %c0_i32_1 = arith.constant 0 : i32
    return %c0_i32, %c0_i32_0 : i32, i32
  }
  func.func @transform_17(%arg0: i32) -> (i32, i32) {
    %c0_i32 = arith.constant 0 : i32
    %c0_i32_0 = arith.constant 0 : i32
    %c0_i32_1 = arith.constant 0 : i32
    return %c0_i32, %c0_i32_0 : i32, i32
  }
  func.func @transform_18(%arg0: i32) -> (i32, i32) {
    %c0_i32 = arith.constant 0 : i32
    %c0_i32_0 = arith.constant 0 : i32
    %c0_i32_1 = arith.constant 0 : i32
    return %c0_i32, %c0_i32_0 : i32, i32
  }
  func.func @transform_19(%arg0: i32) -> (i32, i32) {
    %c0_i32 = arith.constant 0 : i32
    %c0_i32_0 = arith.constant 0 : i32
    %c0_i32_1 = arith.constant 0 : i32
    return %c0_i32, %c0_i32_0 : i32, i32
  }
  func.func @transform_20(%arg0: i32) -> (i32, i32, i32) {
    %c0_i32 = arith.constant 0 : i32
    %c0_i32_0 = arith.constant 0 : i32
    %c0_i32_1 = arith.constant 0 : i32
    return %arg0, %c0_i32, %c0_i32_0 : i32, i32, i32
  }
}

</mosaic_0001>

<bundles_post_ra>
// kernel: bertweet_classifier_forward.1
= control target key start
LH: loop header
LB: loop body
LE: loop exit
PB: predicated region body
PF: predicated region fallthrough
CT: control target
= control target key end

     0   :  { %s5845_s0 = inlined_call_operand.vmem [shape: f32[1,32,128], index: 0, kind: input, shape index: {}]   ;;  %s5846_s1 = inlined_call_operand.vmem [shape: f32[1,2,16], index: 1, kind: input, shape index: {}]   ;;  %s5847_s2 = inlined_call_operand.vmem [shape: f32[1,128], index: 2, kind: input, shape index: {}]   ;;  %s5848_s3 = inlined_call_operand.vmem [shape: f32[1,128], index: 3, kind: input, shape index: {}, may-alias: {3,17,19}]   ;;  %s5849_s4 = inlined_call_operand.vmem [shape: bf16[2,128,384], index: 4, kind: input, shape index: {}]   ;;  %s5850_s5 = inlined_call_operand.vmem [shape: f32[2,1,384], index: 5, kind: input, shape index: {}]   ;;  %s5851_s6 = inlined_call_operand.hbm [shape: bf16[2,128,128], index: 6, kind: input, shape index: {}]   ;;  %s5852_s7 = inlined_call_operand.vmem [shape: f32[2,1,128], index: 7, kind: input, shape index: {}, may-alias: {7,9,13,15}]   ;;  %s5853_s8 = inlined_call_operand.vmem [shape: f32[2,1,128], index: 8, kind: input, shape index: {}, may-alias: {8,14}]   ;;  %s5854_s9 = inlined_call_operand.vmem [shape: f32[2,1,128], index: 9, kind: input, shape index: {}, may-alias: {7,9,13,15}]   ;;  %s5855_s10 = inlined_call_operand.vmem [shape: bf16[2,128,256], index: 10, kind: input, shape index: {}]   ;;  %s5856_s11 = inlined_call_operand.vmem [shape: f32[2,1,256], index: 11, kind: input, shape index: {}]   ;;  %s5857_s12 = inlined_call_operand.hbm [shape: bf16[2,256,128], index: 12, kind: input, shape index: {}]   ;;  %s5858_s13 = inlined_call_operand.vmem [shape: f32[2,1,128], index: 13, kind: input, shape index: {}, may-alias: {7,9,13,15}]   ;;  %s5859_s14 = inlined_call_operand.vmem [shape: f32[2,1,128], index: 14, kind: input, shape index: {}, may-alias: {8,14}]   ;;  %s5860_s15 = inlined_call_operand.vmem [shape: f32[2,1,128], index: 15, kind: input, shape index: {}, may-alias: {7,9,13,15}]   ;;  %s5861_s16 = inlined_call_operand.vmem [shape: bf16[128,128], index: 16, kind: input, shape index: {}]   ;;  %s5862_s17 = inlined_call_operand.vmem [shape: f32[1,128], index: 17, kind: input, shape index: {}, may-alias: {3,17,19}]   ;;  %s5863_s18 = inlined_call_operand.hbm [shape: bf16[128,128], index: 18, kind: input, shape index: {}]   ;;  %s5864_s19 = inlined_call_operand.vmem [shape: f32[1,128], index: 19, kind: input, shape index: {}, may-alias: {3,17,19}]   ;;  %s5865_s20 = inlined_call_operand.vmem [shape: f32[1,2,128], index: 20, kind: output, shape index: {}]  }
   0x1   :  { %5868 = sst [smem:[#allocation9_spill]] %s5845_s0 }
   0x2   :  { %5869 = sst [smem:[#allocation10_spill]] %s5846_s1 }
   0x3   :  { %5870 = sst [smem:[#allocation11_spill]] %s5847_s2 }
   0x4   :  { %5871 = sst [smem:[#allocation12_spill]] %s5848_s3 }
   0x5   :  { %5872 = sst [smem:[#allocation13_spill]] %s5849_s4 }
   0x6   :  { %25 = vsyncpa [#allocation3], 0 }
   0x7   :  { %26 = vsyncpa [#allocation5], 0  ;;  %s4662_s1 = smov [#allocation4]   ;;  %s4663_s23 = smov [#allocation2]  }
   0x8   :  { %s66_s22 = sshll.u32 %s4662_s1, 4  ;;  %s44_s24 = sshll.u32 %s4663_s23, 4  ;;  %s67_s22 = int_to_ptr.vmem [resolvable:$true] %s66_s22  ;;  %s45_s24 = int_to_ptr.vmem [resolvable:$true] %s44_s24 }
   0x9   :  { %s4606_s2 = scalar_lea.vmem %s67_s22, 4096  ;;  %p4611_p1 = scmp.lt.s32.totalorder %s67_s22, %s67_s22 }
   0xa   :  { %p4607_p0 = scmp.ne.s32.totalorder %s67_s22, %s4606_s2  ;;  %p4612_p2 = scmp.lt.s32.totalorder %s4606_s2, %s4606_s2 }
   0xc   :  { %p4613_p3 = por %p4612_p2, %p4611_p1 }
   0xe   :  { %p4614_p4 = pnand %p4613_p3, %p4607_p0 }
  0x10   :  { %4617 = shalt.err (!%p4614_p4)
}
  0x11   :  { %s4664_s25 = smov 64   ;;  %s4665_s3 = smov 4  }
  0x12   :  { %72 = dma.hbm_to_vmem [thread:$0]  %s5857_s12, 4096, %s67_s22, [#allocation5], %s4664_s25, %s4664_s25, %s4665_s3  }
  0x13   :  { %s4626_s28 = scalar_lea.vmem %s45_s24, 2048  ;;  %p4631_p6 = scmp.lt.s32.totalorder %s45_s24, %s45_s24 }
  0x14   :  { %p4627_p5 = scmp.ne.s32.totalorder %s45_s24, %s4626_s28  ;;  %p4632_p7 = scmp.lt.s32.totalorder %s4626_s28, %s4626_s28 }
  0x16   :  { %p4633_p8 = por %p4632_p7, %p4631_p6 }
  0x18   :  { %p4634_p9 = pnand %p4633_p8, %p4627_p5 }
  0x1a   :  { %4637 = shalt.err (!%p4634_p9)
}
  0x1b   :  { %50 = dma.hbm_to_vmem [thread:$0]  %s5851_s6, 2048, %s45_s24, [#allocation3], %s4664_s25, %s4664_s25, %s4665_s3  }
  0x1c   :  { %s4666_s30 = smov [#allocation6]  }
  0x1d   :  { %s88_s0 = sshll.u32 %s4666_s30, 4  ;;  %s89_s0 = int_to_ptr.vmem [resolvable:$true] %s88_s0 }
  0x1e   :  { %s4646_s21 = scalar_lea.vmem %s89_s0, 1024  ;;  %p4651_p11 = scmp.lt.s32.totalorder %s89_s0, %s89_s0 }
  0x1f   :  { %p4647_p10 = scmp.ne.s32.totalorder %s89_s0, %s4646_s21  ;;  %p4652_p12 = scmp.lt.s32.totalorder %s4646_s21, %s4646_s21 }
  0x21   :  { %p4653_p13 = por %p4652_p12, %p4651_p11 }
  0x23   :  { %p4654_p0 = pnand %p4653_p13, %p4647_p10 }
  0x25   :  { %4657 = shalt.err (!%p4654_p0)
}
  0x26   :  { %94 = dma.hbm_to_vmem [thread:$0]  %s5863_s18, 1024, %s89_s0, [#allocation5], %s4664_s25, %s4664_s25, %s4665_s3  }
  0x27   :  { %4658 = dma.done.wait [#allocation3], 2048  }
  0x28   :  { %4659 = vsyncadd [#allocation3], 4294965248 }
  0x29   :  { %4660 = dma.done.wait [#allocation5], 5120  }
  0x2a   :  { %4661 = vsyncadd [#allocation5], 4294962176  ;;  %s5873_s23 = sld [smem:[#allocation9_spill]]  ;;  %v4667_v39 = vmov 0   ;;  %vm584_vm8 = vcmask 130048   ;;  %vm4669_vm9 = vmmov 0  }
  0x2b   :  { %s5874_s4 = sld [smem:[#allocation13_spill]]  ;;  %420 = vmatprep.mubr.bf16.mxu0 %v4667_v39  ;;  %vm3272_vm11 = vcmask 261120   ;;  %vm3573_vm13 = vcmask 1041408  }
  0x2c   :  { %s5875_s18 = sld [smem:[#allocation11_spill]] }
  0x2d   :  { %s5876_s29 = sld [smem:[#allocation12_spill]] }
  0x2e   :  { %s5877_s1 = sld [smem:[#allocation10_spill]] }
  0x30   :  { %v107_v0 = vld [vmem:[%s5873_s23] sm:$0xff]  ;;  %v109_v1 = vld [vmem:[%s5873_s23 + $0x10] sm:$0xff]  ;;  %v108_v2 = vld [vmem:[%s5873_s23 + $0x8] sm:$0xff] }
  0x31   :  { %113 = vadd.xlane.f32.xlu0 %v107_v0  ;;  %117 = vadd.xlane.f32.xlu1 %v109_v1  ;;  %v110_v3 = vld [vmem:[%s5873_s23 + $0x18] sm:$0xff]  ;;  %v4218_v5 = vld [vmem:[%s5874_s4 + $0xa8] ss:$12 sps:$4 sm:$0xff]   ;;  %v4227_v28 = vld [vmem:[%s5874_s4 + $0x64] ss:$12 sps:$4 sm:$0xff]  }
  0x32   :  { %v4216_v4 = vld [vmem:[%s5874_s4 + $0xac] ss:$12 sps:$4 sm:$0xff]   ;;  %v4219_v22 = vld [vmem:[%s5874_s4 + $0x94] ss:$12 sps:$4 sm:$0xff]   ;;  %v4221_v23 = vld [vmem:[%s5874_s4 + $0xb0] ss:$12 sps:$4 sm:$0xff]  }
  0x33   :  { %388 = vmatprep.subr.bf16.mxu0 %v4216_v4  ;;  %v4222_v24 = vld [vmem:[%s5874_s4 + $0x90] ss:$12 sps:$4 sm:$0xff]   ;;  %3997 = vmatprep.subr.bf16.mxu1 %v4221_v23  ;;  %v4225_v26 = vld [vmem:[%s5874_s4 + $0x98] ss:$12 sps:$4 sm:$0xff]   ;;  %v4229_v29 = vld [vmem:[%s5874_s4 + $0x80] ss:$12 sps:$4 sm:$0xff]  }
  0x34   :  { %389 = vmatpush1.bf16.msra.mxu0 %v4218_v5  ;;  %3998 = vmatpush3.bf16.msra.mxu1 %v4221_v23  ;;  %v4223_v25 = vld [vmem:[%s5874_s4 + $0x7c] ss:$12 sps:$4 sm:$0xff]   ;;  %v4226_v27 = vld [vmem:[%s5874_s4 + $0x78] ss:$12 sps:$4 sm:$0xff]   ;;  %v4230_v30 = vld [vmem:[%s5874_s4 + $0x60] ss:$12 sps:$4 sm:$0xff]  }
  0x35   :  { %115 = vadd.xlane.f32.xlu0 %v108_v2  ;;  %119 = vadd.xlane.f32.xlu1 %v110_v3  ;;  %v4231_v31 = vld [vmem:[%s5874_s4 + $0x4c] ss:$12 sps:$4 sm:$0xff]   ;;  %v4233_v32 = vld [vmem:[%s5874_s4 + $0x68] ss:$12 sps:$4 sm:$0xff]   ;;  %v4237_v35 = vld [vmem:[%s5874_s4 + $0x50] ss:$12 sps:$4 sm:$0xff]  }
  0x36   :  { %390 = vmatprep.subr.bf16.mxu0 %v4219_v22  ;;  %3999 = vmatprep.subr.bf16.mxu1 %v4225_v26  ;;  %v4234_v33 = vld [vmem:[%s5874_s4 + $0x48] ss:$12 sps:$4 sm:$0xff]   ;;  %v4238_v36 = vld [vmem:[%s5874_s4 + $0x30] ss:$12 sps:$4 sm:$0xff]   ;;  %v4241_v38 = vld [vmem:[%s5874_s4 + $0x38] ss:$12 sps:$4 sm:$0xff]  }
  0x37   :  { %v4235_v34 = vld [vmem:[%s5874_s4 + $0x34] ss:$12 sps:$4 sm:$0xff]   ;;  %v4239_v37 = vld [vmem:[%s5874_s4 + $0x1c] ss:$12 sps:$4 sm:$0xff]   ;;  %v4242_v40 = vld [vmem:[%s5874_s4 + $0x18] ss:$12 sps:$4 sm:$0xff]  }
  0x38   :  { %391 = vmatpush1.bf16.msra.mxu0 %v4222_v24  ;;  %4000 = vmatpush3.bf16.msra.mxu1 %v4225_v26  ;;  %v4243_v41 = vld [vmem:[%s5874_s4 + $0x4] ss:$12 sps:$4 sm:$0xff]   ;;  %v4245_v42 = vld [vmem:[%s5874_s4 + $0x20] ss:$12 sps:$4 sm:$0xff]   ;;  %v4247_v44 = vld [vmem:[%s5874_s4 + $0x8] ss:$12 sps:$4 sm:$0xff]  }
  0x39   :  { %392 = vmatprep.subr.bf16.mxu0 %v4223_v25  ;;  %4001 = vmatprep.subr.bf16.mxu1 %v4229_v29  ;;  %v4246_v43 = vld [vmem:[%s5874_s4] ss:$12 sps:$4 sm:$0xff]   ;;  %v4668_v24 = vmov 0.0  }
  0x3a   :  { %v3600_v59 = vld [vmem:[%s5875_s18] ss:$0 sm:$0xff] }
  0x3c   :  { %393 = vmatpush1.bf16.msra.mxu0 %v4226_v27  ;;  %4002 = vmatpush3.bf16.msra.mxu1 %v4229_v29 }
  0x3d   :  { %394 = vmatprep.subr.bf16.mxu0 %v4227_v28  ;;  %4003 = vmatprep.subr.bf16.mxu1 %v4233_v32 }
  0x40   :  { %395 = vmatpush1.bf16.msra.mxu0 %v4230_v30  ;;  %4004 = vmatpush3.bf16.msra.mxu1 %v4233_v32 }
  0x41   :  { %396 = vmatprep.subr.bf16.mxu0 %v4231_v31  ;;  %4005 = vmatprep.subr.bf16.mxu1 %v4237_v35 }
  0x44   :  { %397 = vmatpush1.bf16.msra.mxu0 %v4234_v33  ;;  %4006 = vmatpush3.bf16.msra.mxu1 %v4237_v35 }
  0x45   :  { %398 = vmatprep.subr.bf16.mxu0 %v4235_v34  ;;  %4007 = vmatprep.subr.bf16.mxu1 %v4241_v38 }
  0x48   :  { %399 = vmatpush1.bf16.msra.mxu0 %v4238_v36  ;;  %4008 = vmatpush3.bf16.msra.mxu1 %v4241_v38 }
  0x49   :  { %400 = vmatprep.subr.bf16.mxu0 %v4239_v37  ;;  %4009 = vmatprep.subr.bf16.mxu1 %v4245_v42 }
  0x4c   :  { %401 = vmatpush1.bf16.msra.mxu0 %v4242_v40  ;;  %4010 = vmatpush3.bf16.msra.mxu1 %v4245_v42 }
  0x4d   :  { %402 = vmatprep.subr.bf16.mxu0 %v4243_v41  ;;  %4011 = vmatprep.subr.bf16.mxu1 %v4247_v44 }
  0x50   :  { %403 = vmatpush1.bf16.msra.mxu0 %v4246_v43  ;;  %4012 = vmatpush3.bf16.msra.mxu1 %v4247_v44 }
  0xba   :  { %v114_v6 = vpop.xlane.xlu0 %113  ;;  %v118_v7 = vpop.xlane.xlu1 %117 }
  0xbb   :  { %v122_v8 = vmul.f32 0.0078125, %v114_v6  ;;  %v124_v9 = vmul.f32 0.0078125, %v118_v7 }
  0xbd   :  { %v4802_v10 = vsub.f32 %v107_v0, %v122_v8  ;;  %v4804_v11 = vsub.f32 %v109_v1, %v124_v9  ;;  %v3601_v0 = vld [vmem:[%s5876_s29] ss:$0 sm:$0xff] }
  0xbe   :  { %v116_v12 = vpop.xlane.xlu0 %115  ;;  %v120_v13 = vpop.xlane.xlu1 %119 }
  0xbf   :  { %v123_v14 = vmul.f32 0.0078125, %v116_v12  ;;  %v130_v15 = vmul.f32 %v4802_v10, %v4802_v10  ;;  %v125_v16 = vmul.f32 0.0078125, %v120_v13  ;;  %v132_v17 = vmul.f32 %v4804_v11, %v4804_v11 }
  0xc0   :  { %v178_v13 = vlaneseq }
  0xc1   :  { %134 = vadd.xlane.f32.xlu0 %v130_v15  ;;  %v4810_v18 = vsub.f32 %v108_v2, %v123_v14  ;;  %v4812_v19 = vsub.f32 %v110_v3, %v125_v16  ;;  %v243_v16 = vld [vmem:[%s5850_s5] sm:$0x7] }
  0xc2   :  { %v4908_v14 = vshrl.u32 %v178_v13, 7 }
  0xc3   :  { %v131_v20 = vmul.f32 %v4810_v18, %v4810_v18  ;;  %v133_v21 = vmul.f32 %v4812_v19, %v4812_v19 }
  0xc4   :  { %v4911_v15 = vsub.s32 0, %v4908_v14  ;;  %v255_v29 = vsub.s32 2, %v4908_v14 }
  0xc5   :  { %138 = vadd.xlane.f32.xlu0 %v132_v17  ;;  %136 = vadd.xlane.f32.xlu1 %v131_v20  ;;  %v4916_v17 = vand.u32 127, %v178_v13 }
  0xc6   :  { %v256_v38 = vrot.slane %v243_v16, %v255_v29 }
  0xc7   :  { %vm181_vm0 = vcmp.lt.s32.totalorder %v4916_v17, 32  ;;  %vm185_vm1 = vcmp.ge.s32.totalorder %v4916_v17, 32  ;;  %vm186_vm2 = vcmp.lt.s32.totalorder %v4916_v17, 64  ;;  %vm190_vm3 = vcmp.ge.s32.totalorder %v4916_v17, 64 }
  0xc8   :  { %v4925_v25 = vsel %vm181_vm0, 1.0, %v4668_v24  ;;  %vm191_vm4 = vcmp.lt.s32.totalorder %v4916_v17, 96  ;;  %vm187_vm5 = vmand %vm185_vm1, %vm186_vm2  ;;  %vm195_vm7 = vcmp.ge.s32.totalorder %v4916_v17, 96  ;;  %vm3571_vm12 = vcmp.lt.s32.totalorder %v4916_v17, 2 }
  0xc9   :  { %140 = vadd.xlane.f32.xlu1 %v133_v21  ;;  %vm192_vm6 = vmand %vm190_vm3, %vm191_vm4 }
 0x14a   :  { %v135_v45 = vpop.xlane.xlu0 %134 }
 0x14b   :  { %v142_v46 = vmul.f32 0.0078125, %v135_v45 }
 0x14d   :  { %v146_v47 = vadd.f32 1e-05, %v142_v46 }
 0x14e   :  { %v137_v48 = vpop.xlane.xlu1 %136  ;;  %v139_v49 = vpop.xlane.xlu0 %138 }
 0x14f   :  { %4392 = vrsqrt.f32 %v146_v47  ;;  %v143_v50 = vmul.f32 0.0078125, %v137_v48  ;;  %v144_v51 = vmul.f32 0.0078125, %v139_v49  ;;  %v4937_v47 = vsel %vm187_vm5, 1.0, %v4668_v24 }
 0x150   :  { %v4940_v49 = vsel %vm192_vm6, 1.0, %v4668_v24 }
 0x151   :  { %v147_v52 = vadd.f32 1e-05, %v143_v50  ;;  %v148_v53 = vadd.f32 1e-05, %v144_v51 }
 0x152   :  { %v141_v54 = vpop.xlane.xlu1 %140 }
 0x153   :  { %4394 = vrsqrt.f32 %v147_v52  ;;  %v145_v55 = vmul.f32 0.0078125, %v141_v54 }
 0x154   :  { %4396 = vrsqrt.f32 %v148_v53 }
 0x155   :  { %v149_v56 = vadd.f32 1e-05, %v145_v55 }
 0x157   :  { %4398 = vrsqrt.f32 %v149_v56 }
 0x15c   :  { %v4393_v57 = vpop.eup %4392 }
 0x15d   :  { %v154_v58 = vmul.f32 %v4393_v57, %v4802_v10 }
 0x15f   :  { %v164_v63 = vmul.f32 %v3600_v59, %v154_v58 }
 0x160   :  { %v4395_v60 = vpop.eup %4394 }
 0x161   :  { %v4397_v61 = vpop.eup %4396  ;;  %v155_v62 = vmul.f32 %v4395_v60, %v4810_v18  ;;  %v4894_v4 = vadd.f32 %v3601_v0, %v164_v63  ;;  %v248_v18 = vrot.slane %v243_v16, %v4911_v15 }
 0x162   :  { %v156_v1 = vmul.f32 %v4397_v61, %v4804_v11 }
 0x163   :  { %v165_v2 = vmul.f32 %v3600_v59, %v155_v62 }
 0x164   :  { %v4399_v3 = vpop.eup %4398  ;;  %v166_v7 = vmul.f32 %v3600_v59, %v156_v1 }
 0x165   :  { %v4896_v5 = vadd.f32 %v3601_v0, %v165_v2  ;;  %v157_v6 = vmul.f32 %v4399_v3, %v4812_v19  ;;  %v4920_v19 = vsub.s32 1, %v4908_v14 }
 0x166   :  { %v4901_v10 = vadd.f32 %v3601_v0, %v166_v7 }
 0x167   :  { %v209_v8 = vpack.c.bf16 %v4896_v5, %v4894_v4  ;;  %v167_v9 = vmul.f32 %v3600_v59, %v157_v6  ;;  %v252_v23 = vrot.slane %v243_v16, %v4920_v19 }
 0x169   :  { %421 = vmatmul.mubr.bf16.vlgmr.msra.gmra.mxu0 %v209_v8  ;;  %4013 = vmatprep.mubr.bf16.mxu1 %v209_v8  ;;  %v4903_v12 = vadd.f32 %v3601_v0, %v167_v9  ;;  %v4951_v0 = vsel %vm195_vm7, 1.0, %v4668_v24 }
 0x16a   :  { %430 = vmatprep.mubr.bf16.mxu0 %v4667_v39 }
 0x16b   :  { %v210_v11 = vpack.c.bf16 %v4903_v12, %v4901_v10 }
 0x16d   :  { %4014 = vmatmul.mubr.bf16.vlgmr.msra.gmra.mxu1 %v210_v11 }
 0x171   :  { %431 = vmatmul.mubr.bf16.gmra.mxu0 %v210_v11 }
 0x229   :  { %v422_v20 = vpop.f32.mrf.mxu0 }
 0x22a   :  { %v423_v22 = vadd.f32 %v422_v20, %v248_v18 }
 0x22b   :  { %v424_v21 = vpop.f32.mrf.mxu0 }
 0x22c   :  { %v425_v32 = vadd.f32 %v424_v21, %v252_v23  ;;  %v490_v34 = vmul.f32 %v4925_v25, %v423_v22  ;;  %v492_v55 = vmul.f32 %v4937_v47, %v423_v22  ;;  %v494_v59 = vmul.f32 %v4940_v49, %v423_v22 }
 0x22d   :  { %v426_v26 = vpop.f32.mrf.mxu0  ;;  %v4015_v27 = vpop.f32.mrf.mxu1  ;;  %v496_v6 = vmul.f32 %v4951_v0, %v423_v22 }
 0x22e   :  { %v427_v28 = vadd.f32 %v426_v26, %v248_v18  ;;  %v484_v51 = vadd.f32 %v4015_v27, %v256_v38  ;;  %v200_v27 = vld [vmem:[%s5877_s1] sm:$0x3] }
 0x22f   :  { %v428_v30 = vpop.f32.mrf.mxu0  ;;  %v475_v31 = vpop.f32.mrf.mxu1 }
 0x230   :  { %v429_v33 = vadd.f32 %v428_v30, %v252_v23  ;;  %v491_v35 = vmul.f32 %v4925_v25, %v427_v28  ;;  %v476_v44 = vadd.f32 %v475_v31, %v256_v38  ;;  %v493_v50 = vmul.f32 %v4937_v47, %v427_v28 }
 0x231   :  { %v432_v36 = vpop.f32.mrf.mxu0  ;;  %v4016_v37 = vpop.f32.mrf.mxu1  ;;  %v495_v54 = vmul.f32 %v4940_v49, %v427_v28  ;;  %v497_v2 = vmul.f32 %v4951_v0, %v427_v28  ;;  %v4967_v31 = vrot.slane %v200_v27, %v4911_v15 }
 0x232   :  { %v502_v40 = vpack.c.bf16 %v429_v33, %v425_v32  ;;  %v498_v41 = vpack.c.bf16 %v491_v35, %v490_v34  ;;  %v487_v45 = vadd.f32 %v4016_v37, %v256_v38  ;;  %v499_v61 = vpack.c.bf16 %v493_v50, %v492_v55 }
 0x233   :  { %v434_v42 = vpop.f32.mrf.mxu0  ;;  %v478_v43 = vpop.f32.mrf.mxu1  ;;  %v500_v63 = vpack.c.bf16 %v495_v54, %v494_v59  ;;  %v433_v1 = vadd.f32 %v432_v36, %v248_v18  ;;  %v501_v8 = vpack.c.bf16 %v497_v2, %v496_v6 }
 0x234   :  { %v479_v46 = vadd.f32 %v478_v43, %v256_v38  ;;  %4017 = vmatprep.subr.bf16.mxu1 %v502_v40  ;;  %4019 = vmatprep.mubr.bf16.mxu1 %v498_v41  ;;  %v4945_v56 = vpack.c.bf16 %v487_v45, %v484_v51  ;;  %v435_v57 = vadd.f32 %v434_v42, %v252_v23 }
 0x235   :  { %v436_v48 = vpop.f32.mrf.mxu0  ;;  %4018 = vmatpush3.bf16.xpose.msra.mxu1 %v502_v40  ;;  %v769_v7 = vmul.f32 %v4925_v25, %v433_v1  ;;  %v771_v16 = vmul.f32 %v4937_v47, %v433_v1 }
 0x236   :  { %v677_v52 = vpack.c.bf16 %v479_v46, %v476_v44  ;;  %v437_v62 = vadd.f32 %v436_v48, %v248_v18  ;;  %v773_v18 = vmul.f32 %v4940_v49, %v433_v1 }
 0x237   :  { %v438_v53 = vpop.f32.mrf.mxu0 }
 0x238   :  { %v439_v58 = vadd.f32 %v438_v53, %v252_v23  ;;  %4027 = vmatprep.subr.bf16.mxu0 %v677_v52  ;;  %v770_v3 = vmul.f32 %v4925_v25, %v437_v62  ;;  %v772_v11 = vmul.f32 %v4937_v47, %v437_v62  ;;  %v774_v13 = vmul.f32 %v4940_v49, %v437_v62 }
 0x239   :  { %4028 = vmatpush3.bf16.msra.mxu0 %v677_v52  ;;  %v776_v22 = vmul.f32 %v4951_v0, %v437_v62  ;;  %v775_v23 = vmul.f32 %v4951_v0, %v433_v1 }
 0x23a   :  { %v781_v60 = vpack.c.bf16 %v439_v58, %v435_v57  ;;  %4047 = vmatprep.subr.bf16.mxu0 %v4945_v56  ;;  %v777_v9 = vpack.c.bf16 %v770_v3, %v769_v7  ;;  %v778_v20 = vpack.c.bf16 %v772_v11, %v771_v16  ;;  %v779_v21 = vpack.c.bf16 %v774_v13, %v773_v18 }
 0x23b   :  { %v780_v26 = vpack.c.bf16 %v776_v22, %v775_v23 }
 0x23c   :  { %4020 = vmatmul.mubr.bf16.vlgmr.msra.gmra.mxu1 %v499_v61  ;;  %4037 = vmatprep.subr.bf16.mxu1 %v781_v60 }
 0x23d   :  { %4023 = vmatprep.mubr.bf16.mxu1 %v500_v63  ;;  %4038 = vmatpush3.bf16.xpose.msra.mxu1 %v781_v60  ;;  %v5001_v63 = vrot.slane %v200_v27, %v4920_v19 }
 0x244   :  { %4024 = vmatmul.mubr.bf16.gmra.mxu1 %v501_v8 }
 0x245   :  { %4039 = vmatprep.mubr.bf16.mxu1 %v777_v9 }
 0x24c   :  { %4040 = vmatmul.mubr.bf16.vlgmr.msra.gmra.mxu1 %v778_v20 }
 0x24d   :  { %4043 = vmatprep.mubr.bf16.mxu1 %v779_v21 }
 0x254   :  { %4044 = vmatmul.mubr.bf16.gmra.mxu1 %v780_v26 }
 0x2fc   :  { %v4021_v28 = vpop.f32.mrf.mxu1 }
 0x2fd   :  { %v570_v32 = vmul.f32 0.17677669, %v4021_v28 }
 0x2fe   :  { %v537_v30 = vpop.f32.mrf.mxu1 }
 0x2ff   :  { %v568_v33 = vmul.f32 0.17677669, %v537_v30  ;;  %v4975_v41 = vadd.f32 %v570_v32, %v4967_v31 }
 0x300   :  { %v4022_v34 = vpop.f32.mrf.mxu1 }
 0x301   :  { %v4970_v35 = vadd.f32 %v568_v33, %v4967_v31  ;;  %v571_v37 = vmul.f32 0.17677669, %v4022_v34  ;;  %v591_v48 = vsel %vm584_vm8, %v4975_v41, -inf }
 0x302   :  { %v540_v36 = vpop.f32.mrf.mxu1 }
 0x303   :  { %v569_v38 = vmul.f32 0.17677669, %v540_v36  ;;  %v585_v40 = vsel %vm584_vm8, %v4970_v35, -inf  ;;  %v4985_v51 = vadd.f32 %v571_v37, %v4967_v31 }
 0x304   :  { %586 = vmax.xlane.f32.xlu0 %v585_v40  ;;  %v4025_v42 = vpop.f32.mrf.mxu1 }
 0x305   :  { %v4978_v43 = vadd.f32 %v569_v38, %v4967_v31  ;;  %v574_v44 = vmul.f32 0.17677669, %v4025_v42  ;;  %v594_v59 = vsel %vm584_vm8, %v4985_v51, -inf }
 0x306   :  { %v553_v45 = vpop.f32.mrf.mxu1 }
 0x307   :  { %v572_v46 = vmul.f32 0.17677669, %v553_v45  ;;  %v588_v50 = vsel %vm584_vm8, %v4978_v43, -inf  ;;  %v4991_v55 = vadd.f32 %v574_v44, %v4967_v31 }
 0x308   :  { %592 = vmax.xlane.f32.xlu0 %v591_v48  ;;  %589 = vmax.xlane.f32.xlu1 %v588_v50  ;;  %v4026_v52 = vpop.f32.mrf.mxu1 }
 0x309   :  { %v4988_v53 = vadd.f32 %v572_v46, %v4967_v31  ;;  %v575_v57 = vmul.f32 0.17677669, %v4026_v52  ;;  %v603_v2 = vsel %vm584_vm8, %v4991_v55, -inf }
 0x30a   :  { %v556_v54 = vpop.f32.mrf.mxu1 }
 0x30b   :  { %v573_v58 = vmul.f32 0.17677669, %v556_v54  ;;  %v597_v60 = vsel %vm584_vm8, %v4988_v53, -inf  ;;  %v5008_v8 = vadd.f32 %v575_v57, %v4967_v31 }
 0x30c   :  { %595 = vmax.xlane.f32.xlu1 %v594_v59  ;;  %598 = vmax.xlane.f32.xlu0 %v597_v60  ;;  %v4041_v61 = vpop.f32.mrf.mxu1 }
 0x30d   :  { %v4998_v62 = vadd.f32 %v573_v58, %v4967_v31  ;;  %v849_v3 = vmul.f32 0.17677669, %v4041_v61  ;;  %v606_v20 = vsel %vm584_vm8, %v5008_v8, -inf }
 0x30e   :  { %v816_v1 = vpop.f32.mrf.mxu1 }
 0x30f   :  { %v847_v6 = vmul.f32 0.17677669, %v816_v1  ;;  %v600_v7 = vsel %vm584_vm8, %v4998_v62, -inf  ;;  %v5018_v22 = vadd.f32 %v849_v3, %v5001_v63 }
 0x310   :  { %604 = vmax.xlane.f32.xlu0 %v603_v2  ;;  %601 = vmax.xlane.f32.xlu1 %v600_v7  ;;  %v4042_v9 = vpop.f32.mrf.mxu1 }
 0x311   :  { %v5011_v11 = vadd.f32 %v847_v6, %v5001_v63  ;;  %v850_v13 = vmul.f32 0.17677669, %v4042_v9  ;;  %v869_v33 = vsel %vm584_vm8, %v5018_v22, -inf }
 0x312   :  { %v819_v16 = vpop.f32.mrf.mxu1 }
 0x313   :  { %v848_v18 = vmul.f32 0.17677669, %v819_v16  ;;  %v863_v21 = vsel %vm584_vm8, %v5011_v11, -inf  ;;  %v5024_v28 = vadd.f32 %v850_v13, %v5001_v63 }
 0x314   :  { %607 = vmax.xlane.f32.xlu1 %v606_v20  ;;  %864 = vmax.xlane.f32.xlu0 %v863_v21  ;;  %v4045_v23 = vpop.f32.mrf.mxu1 }
 0x315   :  { %v5021_v26 = vadd.f32 %v848_v18, %v5001_v63  ;;  %v853_v30 = vmul.f32 0.17677669, %v4045_v23  ;;  %v872_v40 = vsel %vm584_vm8, %v5024_v28, -inf }
 0x316   :  { %v832_v27 = vpop.f32.mrf.mxu1 }
 0x317   :  { %v851_v32 = vmul.f32 0.17677669, %v832_v27  ;;  %v866_v34 = vsel %vm584_vm8, %v5021_v26, -inf  ;;  %v5038_v46 = vadd.f32 %v853_v30, %v5001_v63 }
 0x318   :  { %870 = vmax.xlane.f32.xlu0 %v869_v33  ;;  %867 = vmax.xlane.f32.xlu1 %v866_v34  ;;  %v4046_v36 = vpop.f32.mrf.mxu1 }
 0x319   :  { %v5031_v37 = vadd.f32 %v851_v32, %v5001_v63  ;;  %v854_v42 = vmul.f32 0.17677669, %v4046_v36  ;;  %v881_v50 = vsel %vm584_vm8, %v5038_v46, -inf }
 0x31a   :  { %v835_v38 = vpop.f32.mrf.mxu1 }
 0x31b   :  { %v852_v44 = vmul.f32 0.17677669, %v835_v38  ;;  %v875_v45 = vsel %vm584_vm8, %v5031_v37, -inf  ;;  %v5048_v54 = vadd.f32 %v854_v42, %v5001_v63 }
 0x31c   :  { %873 = vmax.xlane.f32.xlu1 %v872_v40  ;;  %876 = vmax.xlane.f32.xlu0 %v875_v45 }
 0x31d   :  { %v5041_v48 = vadd.f32 %v852_v44, %v5001_v63  ;;  %v884_v57 = vsel %vm584_vm8, %v5048_v54, -inf }
 0x31f   :  { %v878_v52 = vsel %vm584_vm8, %v5041_v48, -inf }
 0x320   :  { %882 = vmax.xlane.f32.xlu0 %v881_v50  ;;  %879 = vmax.xlane.f32.xlu1 %v878_v52 }
 0x324   :  { %885 = vmax.xlane.f32.xlu1 %v884_v57 }
 0x38d   :  { %v587_v58 = vpop.xlane.xlu0 %586 }
 0x38e   :  { %v609_v59 = vsub.f32 %v4970_v35, %v587_v58 }
 0x390   :  { %v617_v60 = vmul.f32 1.442695, %v609_v59 }
 0x391   :  { %v593_v61 = vpop.xlane.xlu0 %592  ;;  %v590_v1 = vpop.xlane.xlu1 %589 }
 0x392   :  { %4400 = vpow2.f32 %v617_v60  ;;  %v611_v2 = vsub.f32 %v4975_v41, %v593_v61  ;;  %v610_v3 = vsub.f32 %v4978_v43, %v590_v1 }
 0x394   :  { %v621_v6 = vmul.f32 1.442695, %v611_v2  ;;  %v619_v7 = vmul.f32 1.442695, %v610_v3 }
 0x395   :  { %v596_v9 = vpop.xlane.xlu1 %595  ;;  %v599_v13 = vpop.xlane.xlu0 %598 }
 0x396   :  { %4402 = vpow2.f32 %v621_v6  ;;  %v612_v16 = vsub.f32 %v4985_v51, %v596_v9  ;;  %v613_v18 = vsub.f32 %v4988_v53, %v599_v13 }
 0x397   :  { %4404 = vpow2.f32 %v619_v7 }
 0x398   :  { %v623_v20 = vmul.f32 1.442695, %v612_v16  ;;  %v625_v35 = vmul.f32 1.442695, %v613_v18 }
 0x399   :  { %v605_v21 = vpop.xlane.xlu0 %604  ;;  %v602_v23 = vpop.xlane.xlu1 %601 }
 0x39a   :  { %4406 = vpow2.f32 %v623_v20  ;;  %v615_v27 = vsub.f32 %v4991_v55, %v605_v21  ;;  %v614_v41 = vsub.f32 %v4998_v62, %v602_v23 }
 0x39b   :  { %4408 = vpow2.f32 %v625_v35 }
 0x39c   :  { %v629_v43 = vmul.f32 1.442695, %v615_v27  ;;  %v627_v30 = vmul.f32 1.442695, %v614_v41 }
 0x39d   :  { %v608_v32 = vpop.xlane.xlu1 %607  ;;  %v865_v33 = vpop.xlane.xlu0 %864 }
 0x39e   :  { %4410 = vpow2.f32 %v629_v43  ;;  %v616_v51 = vsub.f32 %v5008_v8, %v608_v32  ;;  %v887_v53 = vsub.f32 %v5011_v11, %v865_v33 }
 0x39f   :  { %v5061_v34 = vpop.eup %4400  ;;  %4412 = vpow2.f32 %v627_v30 }
 0x3a0   :  { %v631_v36 = vmul.f32 1.442695, %v616_v51  ;;  %v895_v38 = vmul.f32 1.442695, %v887_v53  ;;  %v633_v55 = vsel %vm584_vm8, %v5061_v34, 0.0 }
 0x3a1   :  { %v871_v40 = vpop.xlane.xlu0 %870  ;;  %v868_v62 = vpop.xlane.xlu1 %867  ;;  %634 = vadd.xlane.f32.xlu0 %v633_v55 }
 0x3a2   :  { %4414 = vpow2.f32 %v631_v36  ;;  %v889_v42 = vsub.f32 %v5018_v22, %v871_v40  ;;  %v888_v44 = vsub.f32 %v5021_v26, %v868_v62 }
 0x3a3   :  { %v5067_v45 = vpop.eup %4402  ;;  %4416 = vpow2.f32 %v895_v38 }
 0x3a4   :  { %v5069_v8 = vpop.eup %4404  ;;  %v899_v11 = vmul.f32 1.442695, %v889_v42  ;;  %v897_v50 = vmul.f32 1.442695, %v888_v44  ;;  %v639_v52 = vsel %vm584_vm8, %v5067_v45, 0.0 }
 0x3a5   :  { %v874_v57 = vpop.xlane.xlu1 %873  ;;  %640 = vadd.xlane.f32.xlu0 %v639_v52  ;;  %v877_v58 = vpop.xlane.xlu0 %876  ;;  %v636_v59 = vsel %vm584_vm8, %v5069_v8, 0.0 }
 0x3a6   :  { %4418 = vpow2.f32 %v899_v11  ;;  %v890_v22 = vsub.f32 %v5024_v28, %v874_v57  ;;  %v891_v26 = vsub.f32 %v5031_v37, %v877_v58  ;;  %637 = vadd.xlane.f32.xlu1 %v636_v59 }
 0x3a7   :  { %v5077_v60 = vpop.eup %4406  ;;  %4420 = vpow2.f32 %v897_v50 }
 0x3a8   :  { %v5079_v61 = vpop.eup %4408  ;;  %v901_v1 = vmul.f32 1.442695, %v890_v22  ;;  %v903_v2 = vmul.f32 1.442695, %v891_v26  ;;  %v642_v3 = vsel %vm584_vm8, %v5077_v60, 0.0 }
 0x3a9   :  { %v645_v6 = vsel %vm584_vm8, %v5079_v61, 0.0  ;;  %v883_v7 = vpop.xlane.xlu0 %882  ;;  %v880_v9 = vpop.xlane.xlu1 %879 }
 0x3aa   :  { %4422 = vpow2.f32 %v901_v1  ;;  %646 = vadd.xlane.f32.xlu0 %v645_v6  ;;  %v893_v28 = vsub.f32 %v5038_v46, %v883_v7  ;;  %643 = vadd.xlane.f32.xlu1 %v642_v3  ;;  %v892_v37 = vsub.f32 %v5041_v48, %v880_v9 }
 0x3ab   :  { %v5087_v13 = vpop.eup %4410  ;;  %4424 = vpow2.f32 %v903_v2 }
 0x3ac   :  { %v5089_v16 = vpop.eup %4412  ;;  %v907_v18 = vmul.f32 1.442695, %v893_v28  ;;  %v905_v20 = vmul.f32 1.442695, %v892_v37  ;;  %v651_v35 = vsel %vm584_vm8, %v5087_v13, 0.0 }
 0x3ad   :  { %v648_v21 = vsel %vm584_vm8, %v5089_v16, 0.0  ;;  %v886_v23 = vpop.xlane.xlu1 %885 }
 0x3ae   :  { %4426 = vpow2.f32 %v907_v18  ;;  %652 = vadd.xlane.f32.xlu0 %v651_v35  ;;  %649 = vadd.xlane.f32.xlu1 %v648_v21  ;;  %v894_v46 = vsub.f32 %v5048_v54, %v886_v23 }
 0x3af   :  { %v5096_v48 = vpop.eup %4414  ;;  %4428 = vpow2.f32 %v905_v20 }
 0x3b0   :  { %v5098_v27 = vpop.eup %4416  ;;  %v909_v41 = vmul.f32 1.442695, %v894_v46  ;;  %v654_v43 = vsel %vm584_vm8, %v5096_v48, 0.0 }
 0x3b1   :  { %v911_v30 = vsel %vm584_vm8, %v5098_v27, 0.0 }
 0x3b2   :  { %4430 = vpow2.f32 %v909_v41  ;;  %912 = vadd.xlane.f32.xlu0 %v911_v30  ;;  %655 = vadd.xlane.f32.xlu1 %v654_v43 }
 0x3b3   :  { %v5104_v32 = vpop.eup %4418 }
 0x3b4   :  { %v5106_v33 = vpop.eup %4420  ;;  %v917_v54 = vsel %vm584_vm8, %v5104_v32, 0.0 }
 0x3b5   :  { %v914_v51 = vsel %vm584_vm8, %v5106_v33, 0.0 }
 0x3b6   :  { %918 = vadd.xlane.f32.xlu0 %v917_v54  ;;  %915 = vadd.xlane.f32.xlu1 %v914_v51 }
 0x3b7   :  { %v5112_v53 = vpop.eup %4422 }
 0x3b8   :  { %v5114_v36 = vpop.eup %4424  ;;  %v920_v38 = vsel %vm584_vm8, %v5112_v53, 0.0 }
 0x3b9   :  { %v923_v55 = vsel %vm584_vm8, %v5114_v36, 0.0 }
 0x3ba   :  { %924 = vadd.xlane.f32.xlu0 %v923_v55  ;;  %921 = vadd.xlane.f32.xlu1 %v920_v38 }
 0x3bb   :  { %v5120_v40 = vpop.eup %4426 }
 0x3bc   :  { %v5122_v62 = vpop.eup %4428  ;;  %v929_v42 = vsel %vm584_vm8, %v5120_v40, 0.0 }
 0x3bd   :  { %v926_v44 = vsel %vm584_vm8, %v5122_v62, 0.0 }
 0x3be   :  { %930 = vadd.xlane.f32.xlu0 %v929_v42  ;;  %927 = vadd.xlane.f32.xlu1 %v926_v44 }
 0x3bf   :  { %v5128_v11 = vpop.eup %4430 }
 0x3c0   :  { %v932_v50 = vsel %vm584_vm8, %v5128_v11, 0.0 }
 0x3c2   :  { %933 = vadd.xlane.f32.xlu1 %v932_v50 }
 0x42a   :  { %v635_v52 = vpop.xlane.xlu0 %634 }
 0x42b   :  { %4432 = vrcp.f32 %v635_v52 }
 0x42e   :  { %v641_v57 = vpop.xlane.xlu0 %640 }
 0x42f   :  { %v638_v58 = vpop.xlane.xlu1 %637 }
 0x430   :  { %4434 = vrcp.f32 %v638_v58 }
 0x431   :  { %4436 = vrcp.f32 %v641_v57 }
 0x433   :  { %v647_v59 = vpop.xlane.xlu0 %646  ;;  %v644_v22 = vpop.xlane.xlu1 %643 }
 0x434   :  { %4438 = vrcp.f32 %v644_v22 }
 0x435   :  { %4440 = vrcp.f32 %v647_v59 }
 0x437   :  { %v653_v26 = vpop.xlane.xlu0 %652  ;;  %v650_v1 = vpop.xlane.xlu1 %649 }
 0x438   :  { %4442 = vrcp.f32 %v650_v1  ;;  %v4433_v2 = vpop.eup %4432 }
 0x439   :  { %4444 = vrcp.f32 %v653_v26  ;;  %v658_v9 = vmul.f32 %v4433_v2, %v5061_v34 }
 0x43b   :  { %v913_v3 = vpop.xlane.xlu0 %912  ;;  %v656_v6 = vpop.xlane.xlu1 %655 }
 0x43c   :  { %4446 = vrcp.f32 %v656_v6 }
 0x43d   :  { %v4435_v7 = vpop.eup %4434  ;;  %4448 = vrcp.f32 %v913_v3 }
 0x43e   :  { %v660_v28 = vmul.f32 %v4435_v7, %v5069_v8  ;;  %v4437_v20 = vpop.eup %4436 }
 0x43f   :  { %v919_v37 = vpop.xlane.xlu0 %918  ;;  %v916_v18 = vpop.xlane.xlu1 %915  ;;  %v662_v23 = vmul.f32 %v4437_v20, %v5067_v45  ;;  %v4254_v20 = vld [vmem:[#allocation2 + $0x8] sm:$0xff]  }
 0x440   :  { %v673_v35 = vpack.c.bf16 %v660_v28, %v658_v9  ;;  %4450 = vrcp.f32 %v916_v18  ;;  %v4249_v18 = vld [vmem:[#allocation2 + $0x30] sm:$0xff]  }
 0x441   :  { %v4439_v21 = vpop.eup %4438  ;;  %4452 = vrcp.f32 %v919_v37  ;;  %v4248_v37 = vld [vmem:[#allocation2 + $0x38] sm:$0xff]  }
 0x442   :  { %4029 = vmatprep.mubr.msk.bf16.mxu0 %vm584_vm8, %v673_v35  ;;  %v664_v46 = vmul.f32 %v4439_v21, %v5077_v60  ;;  %v4441_v30 = vpop.eup %4440  ;;  %4057 = vmatprep.subr.bf16.mxu1 %v4248_v37  ;;  %v4255_v35 = vld [vmem:[#allocation2] sm:$0xff]  }
 0x443   :  { %v925_v41 = vpop.xlane.xlu0 %924  ;;  %v922_v43 = vpop.xlane.xlu1 %921  ;;  %v666_v38 = vmul.f32 %v4441_v30, %v5079_v61  ;;  %4058 = vmatpush3.bf16.msra.mxu1 %v4248_v37 }
 0x444   :  { %v674_v34 = vpack.c.bf16 %v664_v46, %v662_v23  ;;  %4454 = vrcp.f32 %v922_v43  ;;  %4059 = vmatprep.subr.bf16.mxu1 %v4249_v18 }
 0x445   :  { %v4443_v8 = vpop.eup %4442  ;;  %4456 = vrcp.f32 %v925_v41 }
 0x446   :  { %4030 = vmatmul.mubr.msk.bf16.vlgmr.msra.gmra.mxu0 %vm584_vm8, %v674_v34  ;;  %v668_v55 = vmul.f32 %v4443_v8, %v5089_v16  ;;  %v4445_v42 = vpop.eup %4444 }
 0x447   :  { %v931_v54 = vpop.xlane.xlu0 %930  ;;  %v928_v51 = vpop.xlane.xlu1 %927  ;;  %4048 = vmatpush3.bf16.msra.mxu0 %v4945_v56  ;;  %v670_v50 = vmul.f32 %v4445_v42, %v5087_v13  ;;  %4060 = vmatpush3.bf16.msra.mxu1 %v4249_v18 }
 0x448   :  { %4458 = vrcp.f32 %v928_v51  ;;  %v675_v45 = vpack.c.bf16 %v668_v55, %v666_v38 }
 0x449   :  { %v4447_v60 = vpop.eup %4446  ;;  %4460 = vrcp.f32 %v931_v54 }
 0x44a   :  { %4033 = vmatprep.mubr.msk.bf16.mxu0 %vm584_vm8, %v675_v45  ;;  %v672_v52 = vmul.f32 %v4447_v60, %v5096_v48  ;;  %v4449_v57 = vpop.eup %4448 }
 0x44b   :  { %v934_v44 = vpop.xlane.xlu1 %933  ;;  %v936_v16 = vmul.f32 %v4449_v57, %v5098_v27 }
 0x44c   :  { %4462 = vrcp.f32 %v934_v44  ;;  %v676_v58 = vpack.c.bf16 %v672_v52, %v670_v50 }
 0x44d   :  { %v4451_v61 = vpop.eup %4450 }
 0x44e   :  { %4034 = vmatmul.mubr.msk.bf16.gmra.mxu0 %vm584_vm8, %v676_v58  ;;  %v938_v56 = vmul.f32 %v4451_v61, %v5106_v33  ;;  %v4453_v59 = vpop.eup %4452 }
 0x44f   :  { %v940_v1 = vmul.f32 %v4453_v59, %v5104_v32 }
 0x450   :  { %v951_v22 = vpack.c.bf16 %v938_v56, %v936_v16 }
 0x451   :  { %v4455_v26 = vpop.eup %4454 }
 0x452   :  { %v942_v2 = vmul.f32 %v4455_v26, %v5112_v53  ;;  %4049 = vmatprep.mubr.msk.bf16.mxu0 %vm584_vm8, %v951_v22  ;;  %v4457_v13 = vpop.eup %4456 }
 0x453   :  { %v944_v7 = vmul.f32 %v4457_v13, %v5114_v36  ;;  %v4250_v36 = vld [vmem:[#allocation2 + $0x28] sm:$0xff]  }
 0x454   :  { %v952_v48 = vpack.c.bf16 %v942_v2, %v940_v1  ;;  %4061 = vmatprep.subr.bf16.mxu1 %v4250_v36 }
 0x455   :  { %v4459_v3 = vpop.eup %4458  ;;  %4062 = vmatpush3.bf16.msra.mxu1 %v4250_v36 }
 0x456   :  { %v4461_v6 = vpop.eup %4460  ;;  %4050 = vmatmul.mubr.msk.bf16.vlgmr.msra.gmra.mxu0 %vm584_vm8, %v952_v48  ;;  %v946_v27 = vmul.f32 %v4459_v3, %v5122_v62  ;;  %v4251_v62 = vld [vmem:[#allocation2 + $0x20] sm:$0xff]  }
 0x457   :  { %v948_v28 = vmul.f32 %v4461_v6, %v5120_v40  ;;  %4063 = vmatprep.subr.bf16.mxu1 %v4251_v62  ;;  %v4252_v40 = vld [vmem:[#allocation2 + $0x18] sm:$0xff]  }
 0x458   :  { %v953_v9 = vpack.c.bf16 %v946_v27, %v944_v7 }
 0x459   :  { %v4463_v33 = vpop.eup %4462  ;;  %4064 = vmatpush3.bf16.msra.mxu1 %v4251_v62 }
 0x45a   :  { %v950_v32 = vmul.f32 %v4463_v33, %v5128_v11  ;;  %4053 = vmatprep.mubr.msk.bf16.mxu0 %vm584_vm8, %v953_v9  ;;  %4065 = vmatprep.subr.bf16.mxu1 %v4252_v40  ;;  %v4253_v11 = vld [vmem:[#allocation2 + $0x10] sm:$0xff]  }
 0x45c   :  { %v954_v53 = vpack.c.bf16 %v950_v32, %v948_v28 }
 0x45d   :  { %4066 = vmatpush3.bf16.msra.mxu1 %v4252_v40 }
 0x45e   :  { %4054 = vmatmul.mubr.msk.bf16.gmra.mxu0 %vm584_vm8, %v954_v53  ;;  %4067 = vmatprep.subr.bf16.mxu1 %v4253_v11 }
 0x45f   :  { %1381 = vmatprep.mubr.bf16.mxu0 %v4667_v39 }
 0x461   :  { %4068 = vmatpush3.bf16.msra.mxu1 %v4253_v11 }
 0x462   :  { %4069 = vmatprep.subr.bf16.mxu1 %v4254_v20 }
 0x465   :  { %4070 = vmatpush3.bf16.msra.mxu1 %v4254_v20 }
 0x466   :  { %4071 = vmatprep.subr.bf16.mxu1 %v4255_v35 }
 0x469   :  { %4072 = vmatpush3.bf16.msra.mxu1 %v4255_v35 }
 0x506   :  { %v4031_v21 = vpop.f32.mrf.mxu0 }
 0x507   :  { %v757_v8 = vmul.f32 %v4031_v21, %v4937_v47  ;;  %v3638_v21 = vld [vmem:[%s5852_s7] ss:$0 sm:$0xff] }
 0x508   :  { %v724_v23 = vpop.f32.mrf.mxu0 }
 0x509   :  { %v755_v30 = vmul.f32 %v4925_v25, %v724_v23 }
 0x50a   :  { %v4032_v46 = vpop.f32.mrf.mxu0 }
 0x50b   :  { %v759_v55 = vadd.f32 %v757_v8, %v755_v30  ;;  %v758_v42 = vmul.f32 %v4032_v46, %v4937_v47 }
 0x50c   :  { %v727_v41 = vpop.f32.mrf.mxu0 }
 0x50d   :  { %v756_v54 = vmul.f32 %v4925_v25, %v727_v41 }
 0x50e   :  { %v4035_v43 = vpop.f32.mrf.mxu0 }
 0x50f   :  { %v760_v60 = vadd.f32 %v758_v42, %v756_v54  ;;  %v765_v57 = vmul.f32 %v4035_v43, %v4951_v0  ;;  %v4256_v42 = vld [vmem:[%s5855_s10 + $0x70] ss:$8 sps:$4 sm:$0xff]  }
 0x510   :  { %v740_v34 = vpop.f32.mrf.mxu0 }
 0x511   :  { %v761_v51 = vmul.f32 %v4940_v49, %v740_v34 }
 0x512   :  { %v4036_v38 = vpop.f32.mrf.mxu0 }
 0x513   :  { %v763_v44 = vadd.f32 %v761_v51, %v759_v55  ;;  %v766_v58 = vmul.f32 %v4036_v38, %v4951_v0 }
 0x514   :  { %v743_v45 = vpop.f32.mrf.mxu0 }
 0x515   :  { %v762_v50 = vmul.f32 %v4940_v49, %v743_v45  ;;  %v767_v56 = vadd.f32 %v765_v57, %v763_v44 }
 0x516   :  { %v4051_v52 = vpop.f32.mrf.mxu0 }
 0x517   :  { %v764_v61 = vadd.f32 %v762_v50, %v760_v60  ;;  %v1035_v3 = vmul.f32 %v4051_v52, %v4937_v47 }
 0x518   :  { %v1002_v16 = vpop.f32.mrf.mxu0 }
 0x519   :  { %v768_v59 = vadd.f32 %v766_v58, %v764_v61  ;;  %v1033_v13 = vmul.f32 %v4925_v25, %v1002_v16 }
 0x51a   :  { %v4052_v22 = vpop.f32.mrf.mxu0 }
 0x51b   :  { %v1047_v26 = vpack.c.bf16 %v768_v59, %v767_v56  ;;  %v1037_v33 = vadd.f32 %v1035_v3, %v1033_v13  ;;  %v1036_v9 = vmul.f32 %v4052_v22, %v4937_v47  ;;  %v4264_v13 = vld [vmem:[%s5855_s10 + $0x54] ss:$8 sps:$4 sm:$0xff]   ;;  %v4267_v3 = vld [vmem:[%s5855_s10 + $0x44] ss:$8 sps:$4 sm:$0xff]  }
 0x51c   :  { %v1005_v1 = vpop.f32.mrf.mxu0 }
 0x51d   :  { %4073 = vmatprep.mubr.bf16.mxu1 %v1047_v26  ;;  %v1034_v6 = vmul.f32 %v4925_v25, %v1005_v1  ;;  %v4261_v1 = vld [vmem:[%s5855_s10 + $0x64] ss:$8 sps:$4 sm:$0xff]  }
 0x51e   :  { %v4055_v2 = vpop.f32.mrf.mxu0 }
 0x51f   :  { %v1038_v32 = vadd.f32 %v1036_v9, %v1034_v6  ;;  %v1043_v18 = vmul.f32 %v4055_v2, %v4951_v0  ;;  %v4259_v2 = vld [vmem:[%s5855_s10 + $0x60] ss:$8 sps:$4 sm:$0xff]  }
 0x520   :  { %v1018_v48 = vpop.f32.mrf.mxu0  ;;  %v4265_v6 = vld [vmem:[%s5855_s10 + $0x40] ss:$8 sps:$4 sm:$0xff]  }
 0x521   :  { %v1039_v7 = vmul.f32 %v4940_v49, %v1018_v48  ;;  %v4262_v48 = vld [vmem:[%s5855_s10 + $0x50] ss:$8 sps:$4 sm:$0xff]   ;;  %v4271_v9 = vld [vmem:[%s5855_s10 + $0x20] ss:$8 sps:$4 sm:$0xff]  }
 0x522   :  { %v4056_v27 = vpop.f32.mrf.mxu0 }
 0x523   :  { %v1041_v53 = vadd.f32 %v1039_v7, %v1037_v33  ;;  %v1044_v36 = vmul.f32 %v4056_v27, %v4951_v0  ;;  %v4270_v7 = vld [vmem:[%s5855_s10 + $0x34] ss:$8 sps:$4 sm:$0xff]   ;;  %v4268_v27 = vld [vmem:[%s5855_s10 + $0x30] ss:$8 sps:$4 sm:$0xff]   ;;  %v4273_v33 = vld [vmem:[%s5855_s10 + $0x24] ss:$8 sps:$4 sm:$0xff]  }
 0x524   :  { %v1021_v28 = vpop.f32.mrf.mxu0 }
 0x525   :  { %v1040_v37 = vmul.f32 %v4940_v49, %v1021_v28  ;;  %v1045_v40 = vadd.f32 %v1043_v18, %v1041_v53  ;;  %v4276_v28 = vld [vmem:[%s5855_s10 + $0x14] ss:$8 sps:$4 sm:$0xff]   ;;  %v4279_v53 = vld [vmem:[%s5855_s10 + $0x4] ss:$8 sps:$4 sm:$0xff]  }
 0x527   :  { %v1042_v62 = vadd.f32 %v1040_v37, %v1038_v32  ;;  %v4274_v32 = vld [vmem:[%s5855_s10 + $0x10] ss:$8 sps:$4 sm:$0xff]   ;;  %v4277_v37 = vld [vmem:[%s5855_s10] ss:$8 sps:$4 sm:$0xff]  }
 0x529   :  { %v1046_v11 = vadd.f32 %v1044_v36, %v1042_v62 }
 0x52b   :  { %v1048_v20 = vpack.c.bf16 %v1046_v11, %v1045_v40 }
 0x52d   :  { %4074 = vmatmul.mubr.bf16.vlgmr.msra.gmra.mxu1 %v1048_v20 }
 0x5ed   :  { %v4075_v35 = vpop.f32.mrf.mxu1 }
 0x5ee   :  { %v1163_v43 = vadd.f32 %v4075_v35, %v3638_v21 }
 0x5ef   :  { %v1154_v23 = vpop.f32.mrf.mxu1 }
 0x5f0   :  { %v1155_v46 = vadd.f32 %v3638_v21, %v1154_v23  ;;  %v1171_v38 = vadd.f32 %v1163_v43, %v4901_v10 }
 0x5f1   :  { %v4076_v41 = vpop.f32.mrf.mxu1 }
 0x5f2   :  { %v1169_v30 = vadd.f32 %v1155_v46, %v4894_v4  ;;  %v1166_v54 = vadd.f32 %v4076_v41, %v3638_v21  ;;  %v4258_v4 = vld [vmem:[%s5855_s10 + $0x74] ss:$8 sps:$4 sm:$0xff]  }
 0x5f3   :  { %v1157_v34 = vpop.f32.mrf.mxu1  ;;  %1349 = vmatprep.subr.bf16.mxu0 %v4258_v4 }
 0x5f4   :  { %v1158_v8 = vadd.f32 %v3638_v21, %v1157_v34  ;;  %1175 = vadd.xlane.f32.xlu0 %v1169_v30  ;;  %v1172_v55 = vadd.f32 %v1166_v54, %v4903_v12  ;;  %1350 = vmatpush1.bf16.msra.mxu0 %v4256_v42  ;;  %v3648_v42 = vld [vmem:[%s5854_s9] ss:$0 sm:$0xff] }
 0x5f5   :  { %1351 = vmatprep.subr.bf16.mxu0 %v4261_v1  ;;  %v4285_v1 = vld [vmem:[#allocation4 + $0x28] sm:$0xff]  }
 0x5f6   :  { %v1170_v51 = vadd.f32 %v1158_v8, %v4896_v5  ;;  %v3647_v8 = vld [vmem:[%s5853_s8] ss:$0 sm:$0xff] }
 0x5f8   :  { %1177 = vadd.xlane.f32.xlu1 %v1170_v51  ;;  %1179 = vadd.xlane.f32.xlu0 %v1171_v38 }
 0x5f9   :  { %1352 = vmatpush1.bf16.msra.mxu0 %v4259_v2  ;;  %v4286_v2 = vld [vmem:[#allocation4 + $0x60] sm:$0xff]  }
 0x5fa   :  { %1353 = vmatprep.subr.bf16.mxu0 %v4264_v13  ;;  %v4287_v13 = vld [vmem:[#allocation4 + $0x20] sm:$0xff]  }
 0x5fc   :  { %1181 = vadd.xlane.f32.xlu1 %v1172_v55 }
 0x5fd   :  { %1354 = vmatpush1.bf16.msra.mxu0 %v4262_v48  ;;  %v4288_v48 = vld [vmem:[#allocation4 + $0x58] sm:$0xff]  }
 0x5fe   :  { %1355 = vmatprep.subr.bf16.mxu0 %v4267_v3  ;;  %v4289_v3 = vld [vmem:[#allocation4 + $0x18] sm:$0xff]  }
 0x601   :  { %1356 = vmatpush1.bf16.msra.mxu0 %v4265_v6  ;;  %v4290_v6 = vld [vmem:[#allocation4 + $0x50] sm:$0xff]  }
 0x602   :  { %1357 = vmatprep.subr.bf16.mxu0 %v4270_v7  ;;  %v4291_v7 = vld [vmem:[#allocation4 + $0x10] sm:$0xff]  }
 0x605   :  { %1358 = vmatpush1.bf16.msra.mxu0 %v4268_v27  ;;  %v4292_v27 = vld [vmem:[#allocation4 + $0x48] sm:$0xff]  }
 0x606   :  { %1359 = vmatprep.subr.bf16.mxu0 %v4273_v33  ;;  %v4293_v33 = vld [vmem:[#allocation4 + $0x8] sm:$0xff]  }
 0x609   :  { %1360 = vmatpush1.bf16.msra.mxu0 %v4271_v9  ;;  %v4294_v9 = vld [vmem:[#allocation4 + $0x40] sm:$0xff]  }
 0x60a   :  { %1361 = vmatprep.subr.bf16.mxu0 %v4276_v28  ;;  %v4295_v28 = vld [vmem:[#allocation4] sm:$0xff]  }
 0x60d   :  { %1362 = vmatpush1.bf16.msra.mxu0 %v4274_v32  ;;  %v1257_v32 = vld [vmem:[%s5856_s11] sm:$0x3] }
 0x60e   :  { %1363 = vmatprep.subr.bf16.mxu0 %v4279_v53  ;;  %v1262_v53 = vrot.slane %v1257_v32, %v4911_v15 }
 0x611   :  { %1364 = vmatpush1.bf16.msra.mxu0 %v4277_v37  ;;  %v1266_v37 = vrot.slane %v1257_v32, %v4920_v19 }
 0x67d   :  { %v1176_v45 = vpop.xlane.xlu0 %1175 }
 0x67e   :  { %v1183_v60 = vmul.f32 0.0078125, %v1176_v45 }
 0x680   :  { %v5187_v5 = vsub.f32 %v1169_v30, %v1183_v60 }
 0x681   :  { %v1178_v10 = vpop.xlane.xlu1 %1177  ;;  %v1180_v44 = vpop.xlane.xlu0 %1179 }
 0x682   :  { %v1184_v50 = vmul.f32 0.0078125, %v1178_v10  ;;  %v1185_v52 = vmul.f32 0.0078125, %v1180_v44  ;;  %v1191_v12 = vmul.f32 %v5187_v5, %v5187_v5 }
 0x684   :  { %v1188_v57 = vsub.f32 %v1170_v51, %v1184_v50  ;;  %v5191_v58 = vsub.f32 %v1171_v38, %v1185_v52  ;;  %1195 = vadd.xlane.f32.xlu0 %v1191_v12 }
 0x685   :  { %v1182_v61 = vpop.xlane.xlu1 %1181 }
 0x686   :  { %v1186_v16 = vmul.f32 0.0078125, %v1182_v61  ;;  %v1192_v56 = vmul.f32 %v1188_v57, %v1188_v57  ;;  %v1193_v59 = vmul.f32 %v5191_v58, %v5191_v58 }
 0x688   :  { %v1190_v22 = vsub.f32 %v1172_v55, %v1186_v16  ;;  %1197 = vadd.xlane.f32.xlu1 %v1192_v56  ;;  %1199 = vadd.xlane.f32.xlu0 %v1193_v59  ;;  %v4281_v56 = vld [vmem:[#allocation4 + $0x38] sm:$0xff]   ;;  %v4282_v59 = vld [vmem:[#allocation4 + $0x70] sm:$0xff]  }
 0x68a   :  { %v1194_v26 = vmul.f32 %v1190_v22, %v1190_v22 }
 0x68c   :  { %1201 = vadd.xlane.f32.xlu1 %v1194_v26  ;;  %v4284_v26 = vld [vmem:[#allocation4 + $0x68] sm:$0xff]  }
 0x70d   :  { %v1196_v18 = vpop.xlane.xlu0 %1195 }
 0x70e   :  { %v1203_v36 = vmul.f32 0.0078125, %v1196_v18 }
 0x710   :  { %v1207_v62 = vadd.f32 1e-05, %v1203_v36 }
 0x711   :  { %v1198_v40 = vpop.xlane.xlu1 %1197  ;;  %v1200_v11 = vpop.xlane.xlu0 %1199 }
 0x712   :  { %4464 = vrsqrt.f32 %v1207_v62  ;;  %v1204_v20 = vmul.f32 0.0078125, %v1198_v40  ;;  %v1205_v35 = vmul.f32 0.0078125, %v1200_v11 }
 0x714   :  { %v1208_v21 = vadd.f32 1e-05, %v1204_v20  ;;  %v1209_v23 = vadd.f32 1e-05, %v1205_v35 }
 0x715   :  { %v1202_v46 = vpop.xlane.xlu1 %1201 }
 0x716   :  { %4466 = vrsqrt.f32 %v1208_v21  ;;  %v1206_v41 = vmul.f32 0.0078125, %v1202_v46 }
 0x717   :  { %4468 = vrsqrt.f32 %v1209_v23 }
 0x718   :  { %v1210_v43 = vadd.f32 1e-05, %v1206_v41 }
 0x71a   :  { %4470 = vrsqrt.f32 %v1210_v43 }
 0x71f   :  { %v4465_v30 = vpop.eup %4464 }
 0x720   :  { %v1215_v34 = vmul.f32 %v4465_v30, %v5187_v5 }
 0x722   :  { %v1225_v38 = vmul.f32 %v3647_v8, %v1215_v34 }
 0x723   :  { %v4467_v54 = vpop.eup %4466 }
 0x724   :  { %v1216_v51 = vmul.f32 %v4467_v54, %v1188_v57  ;;  %v4469_v55 = vpop.eup %4468  ;;  %v5244_v60 = vadd.f32 %v3648_v42, %v1225_v38 }
 0x725   :  { %v1217_v5 = vmul.f32 %v4469_v55, %v5191_v58  ;;  %v4280_v58 = vld [vmem:[#allocation4 + $0x78] sm:$0xff]  }
 0x726   :  { %v1226_v4 = vmul.f32 %v3647_v8, %v1216_v51  ;;  %3878 = vmatprep.subr.bf16.mxu1 %v4280_v58 }
 0x727   :  { %v4471_v45 = vpop.eup %4470  ;;  %v1227_v12 = vmul.f32 %v3647_v8, %v1217_v5  ;;  %3879 = vmatpush3.bf16.msra.mxu1 %v4281_v56 }
 0x728   :  { %v5246_v10 = vadd.f32 %v3648_v42, %v1226_v4  ;;  %v1218_v44 = vmul.f32 %v4471_v45, %v1190_v22  ;;  %v4283_v22 = vld [vmem:[#allocation4 + $0x30] sm:$0xff]   ;;  %3880 = vmatprep.subr.bf16.mxu1 %v4282_v59 }
 0x729   :  { %v5254_v61 = vadd.f32 %v3648_v42, %v1227_v12 }
 0x72a   :  { %v1239_v50 = vpack.c.bf16 %v5246_v10, %v5244_v60  ;;  %v1228_v52 = vmul.f32 %v3647_v8, %v1218_v44 }
 0x72b   :  { %3881 = vmatpush3.bf16.msra.mxu1 %v4283_v22 }
 0x72c   :  { %1382 = vmatmul.mubr.bf16.vlgmr.msra.gmra.mxu0 %v1239_v50  ;;  %v5252_v57 = vadd.f32 %v3648_v42, %v1228_v52  ;;  %3882 = vmatprep.subr.bf16.mxu1 %v4284_v26 }
 0x72d   :  { %1391 = vmatprep.mubr.bf16.mxu0 %v4667_v39 }
 0x72e   :  { %v1240_v16 = vpack.c.bf16 %v5252_v57, %v5254_v61 }
 0x72f   :  { %3883 = vmatpush3.bf16.msra.mxu1 %v4285_v1 }
 0x730   :  { %3884 = vmatprep.subr.bf16.mxu1 %v4286_v2 }
 0x733   :  { %3885 = vmatpush3.bf16.msra.mxu1 %v4287_v13 }
 0x734   :  { %1392 = vmatmul.mubr.bf16.gmra.mxu0 %v1240_v16  ;;  %3886 = vmatprep.subr.bf16.mxu1 %v4288_v48 }
 0x735   :  { %1945 = vmatprep.mubr.bf16.mxu0 %v4667_v39 }
 0x737   :  { %3887 = vmatpush3.bf16.msra.mxu1 %v4289_v3 }
 0x738   :  { %3888 = vmatprep.subr.bf16.mxu1 %v4290_v6 }
 0x73b   :  { %3889 = vmatpush3.bf16.msra.mxu1 %v4291_v7 }
 0x73c   :  { %3890 = vmatprep.subr.bf16.mxu1 %v4292_v27 }
 0x73f   :  { %3891 = vmatpush3.bf16.msra.mxu1 %v4293_v33 }
 0x740   :  { %3892 = vmatprep.subr.bf16.mxu1 %v4294_v9 }
 0x743   :  { %3893 = vmatpush3.bf16.msra.mxu1 %v4295_v28 }
 0x7ec   :  { %v1383_v18 = vpop.f32.mrf.mxu0 }
 0x7ed   :  { %v5264_v36 = vadd.f32 %v1383_v18, %v1262_v53 }
 0x7ee   :  { %v1385_v62 = vpop.f32.mrf.mxu0 }
 0x7ef   :  { %v1410_v40 = vmul.f32 0.044715, %v5264_v36  ;;  %v5267_v11 = vadd.f32 %v1385_v62, %v1266_v37 }
 0x7f0   :  { %v1387_v20 = vpop.f32.mrf.mxu0 }
 0x7f1   :  { %v1418_v35 = vmul.f32 %v1410_v40, %v5264_v36  ;;  %v1411_v21 = vmul.f32 0.044715, %v5267_v11  ;;  %v1388_v23 = vadd.f32 %v1387_v20, %v1262_v53 }
 0x7f2   :  { %v1389_v46 = vpop.f32.mrf.mxu0 }
 0x7f3   :  { %v1426_v41 = vmul.f32 %v1418_v35, %v5264_v36  ;;  %v1419_v43 = vmul.f32 %v1411_v21, %v5267_v11  ;;  %v1412_v30 = vmul.f32 0.044715, %v1388_v23  ;;  %v1390_v34 = vadd.f32 %v1389_v46, %v1266_v37 }
 0x7f4   :  { %v1393_v8 = vpop.f32.mrf.mxu0 }
 0x7f5   :  { %v1434_v54 = vadd.f32 %v1426_v41, %v5264_v36  ;;  %v1427_v51 = vmul.f32 %v1419_v43, %v5267_v11  ;;  %v1420_v38 = vmul.f32 %v1412_v30, %v1388_v23  ;;  %v1413_v55 = vmul.f32 0.044715, %v1390_v34 }
 0x7f6   :  { %v5275_v42 = vadd.f32 %v1393_v8, %v1262_v53  ;;  %v1395_v4 = vpop.f32.mrf.mxu0 }
 0x7f7   :  { %v1442_v45 = vmul.f32 0.7978846, %v1434_v54  ;;  %v1428_v5 = vmul.f32 %v1420_v38, %v1388_v23  ;;  %v1421_v44 = vmul.f32 %v1413_v55, %v1390_v34  ;;  %v5277_v50 = vadd.f32 %v1395_v4, %v1266_v37 }
 0x7f8   :  { %v1414_v52 = vmul.f32 0.044715, %v5275_v42  ;;  %v1397_v12 = vpop.f32.mrf.mxu0  ;;  %v1435_v16 = vadd.f32 %v1427_v51, %v5267_v11  ;;  %v1404_v4 = vmul.f32 0.5, %v1388_v23 }
 0x7f9   :  { %v1436_v58 = vadd.f32 %v1428_v5, %v1388_v23  ;;  %v1429_v56 = vmul.f32 %v1421_v44, %v1390_v34  ;;  %v1415_v59 = vmul.f32 0.044715, %v5277_v50  ;;  %4472 = vtanh.f32 %v1442_v45 }
 0x7fa   :  { %v1422_v22 = vmul.f32 %v1414_v52, %v5275_v42  ;;  %v1398_v26 = vadd.f32 %v1397_v12, %v1262_v53  ;;  %v1399_v1 = vpop.f32.mrf.mxu0  ;;  %v1443_v2 = vmul.f32 0.7978846, %v1435_v16  ;;  %v1403_v5 = vmul.f32 0.5, %v5267_v11 }
 0x7fb   :  { %v1444_v13 = vmul.f32 0.7978846, %v1436_v58  ;;  %v1423_v48 = vmul.f32 %v1415_v59, %v5277_v50  ;;  %v1400_v3 = vadd.f32 %v1399_v1, %v1266_v37  ;;  %v1437_v6 = vadd.f32 %v1429_v56, %v1390_v34 }
 0x7fc   :  { %v1430_v7 = vmul.f32 %v1422_v22, %v5275_v42  ;;  %v1416_v27 = vmul.f32 0.044715, %v1398_v26  ;;  %4474 = vtanh.f32 %v1443_v2  ;;  %v1405_v44 = vmul.f32 0.5, %v1390_v34 }
 0x7fd   :  { %4476 = vtanh.f32 %v1444_v13  ;;  %v1431_v33 = vmul.f32 %v1423_v48, %v5277_v50  ;;  %v1417_v9 = vmul.f32 0.044715, %v1400_v3  ;;  %v1445_v28 = vmul.f32 0.7978846, %v1437_v6 }
 0x7fe   :  { %v1424_v32 = vmul.f32 %v1416_v27, %v1398_v26  ;;  %v1438_v18 = vadd.f32 %v1430_v7, %v5275_v42  ;;  %v1402_v12 = vmul.f32 0.5, %v5264_v36  ;;  %v1408_v23 = vmul.f32 0.5, %v1398_v26 }
 0x7ff   :  { %v1425_v53 = vmul.f32 %v1417_v9, %v1400_v3  ;;  %4478 = vtanh.f32 %v1445_v28  ;;  %v1439_v62 = vadd.f32 %v1431_v33, %v5277_v50  ;;  %v1407_v34 = vmul.f32 0.5, %v5277_v50 }
 0x800   :  { %v1432_v40 = vmul.f32 %v1424_v32, %v1398_v26  ;;  %v1446_v20 = vmul.f32 0.7978846, %v1438_v18  ;;  %v1409_v33 = vmul.f32 0.5, %v1400_v3  ;;  %v1406_v9 = vmul.f32 0.5, %v5275_v42 }
 0x801   :  { %v1433_v37 = vmul.f32 %v1425_v53, %v1400_v3  ;;  %v1447_v35 = vmul.f32 0.7978846, %v1439_v62 }
 0x802   :  { %v1440_v21 = vadd.f32 %v1432_v40, %v1398_v26  ;;  %v3665_v26 = vld [vmem:[%s5858_s13] ss:$0 sm:$0xff] }
 0x803   :  { %v1441_v46 = vadd.f32 %v1433_v37, %v1400_v3  ;;  %4480 = vtanh.f32 %v1447_v35 }
 0x804   :  { %v1448_v41 = vmul.f32 0.7978846, %v1440_v21  ;;  %4482 = vtanh.f32 %v1446_v20 }
 0x805   :  { %v1449_v43 = vmul.f32 0.7978846, %v1441_v46 }
 0x806   :  { %4484 = vtanh.f32 %v1448_v41  ;;  %v4473_v30 = vpop.eup %4472 }
 0x807   :  { %4486 = vtanh.f32 %v1449_v43  ;;  %v1458_v45 = vadd.f32 1.0, %v4473_v30 }
 0x809   :  { %v4475_v8 = vpop.eup %4474  ;;  %v1466_v22 = vmul.f32 %v1458_v45, %v1402_v12 }
 0x80a   :  { %v4477_v54 = vpop.eup %4476  ;;  %v1459_v51 = vadd.f32 1.0, %v4475_v8 }
 0x80b   :  { %v1460_v38 = vadd.f32 1.0, %v4477_v54 }
 0x80c   :  { %v4479_v55 = vpop.eup %4478  ;;  %v1467_v58 = vmul.f32 %v1459_v51, %v1403_v5 }
 0x80d   :  { %v1461_v52 = vadd.f32 1.0, %v4479_v55  ;;  %v1468_v16 = vmul.f32 %v1460_v38, %v1404_v4 }
 0x80f   :  { %v1469_v56 = vmul.f32 %v1461_v52, %v1405_v44  ;;  %v1474_v13 = vpack.c.bf16 %v1468_v16, %v1466_v22 }
 0x810   :  { %v4481_v59 = vpop.eup %4480 }
 0x811   :  { %v4483_v1 = vpop.eup %4482  ;;  %v1475_v2 = vpack.c.bf16 %v1469_v56, %v1467_v58  ;;  %v1463_v6 = vadd.f32 1.0, %v4481_v59 }
 0x812   :  { %v1462_v27 = vadd.f32 1.0, %v4483_v1 }
 0x813   :  { %v4485_v48 = vpop.eup %4484  ;;  %1645 = vmatprep.mubr.bf16.mxu1 %v1475_v2  ;;  %v1471_v32 = vmul.f32 %v1463_v6, %v1407_v34  ;;  %v4304_v34 = vld [vmem:[%s5874_s4 + $0x13c] ss:$12 sps:$4 sm:$0xff]  }
 0x814   :  { %v4487_v7 = vpop.eup %4486  ;;  %1646 = vmatmul.mubr.bf16.vlgmr.msra.gmra.mxu1 %v1474_v13  ;;  %v1464_v11 = vadd.f32 1.0, %v4485_v48  ;;  %v1470_v53 = vmul.f32 %v1462_v27, %v1406_v9  ;;  %v4301_v27 = vld [vmem:[%s5874_s4 + $0x154] ss:$12 sps:$4 sm:$0xff]   ;;  %v4308_v9 = vld [vmem:[%s5874_s4 + $0x124] ss:$12 sps:$4 sm:$0xff]  }
 0x815   :  { %v1465_v36 = vadd.f32 1.0, %v4487_v7 }
 0x816   :  { %v1472_v28 = vmul.f32 %v1464_v11, %v1408_v23  ;;  %v4299_v11 = vld [vmem:[%s5874_s4 + $0x150] ss:$12 sps:$4 sm:$0xff]  }
 0x817   :  { %v1473_v18 = vmul.f32 %v1465_v36, %v1409_v33  ;;  %v4305_v33 = vld [vmem:[%s5874_s4 + $0x170] ss:$12 sps:$4 sm:$0xff]   ;;  %v4302_v36 = vld [vmem:[%s5874_s4 + $0x138] ss:$12 sps:$4 sm:$0xff]  }
 0x818   :  { %v1476_v40 = vpack.c.bf16 %v1472_v28, %v1470_v53  ;;  %4077 = vmatprep.subr.bf16.mxu1 %v4305_v33  ;;  %v4309_v28 = vld [vmem:[%s5874_s4 + $0x158] ss:$12 sps:$4 sm:$0xff]   ;;  %v4313_v53 = vld [vmem:[%s5874_s4 + $0x140] ss:$12 sps:$4 sm:$0xff]  }
 0x819   :  { %v1477_v62 = vpack.c.bf16 %v1473_v18, %v1471_v32  ;;  %4078 = vmatpush3.bf16.msra.mxu1 %v4305_v33  ;;  %v4306_v32 = vld [vmem:[%s5874_s4 + $0x120] ss:$12 sps:$4 sm:$0xff]  }
 0x81a   :  { %4079 = vmatprep.subr.bf16.mxu1 %v4309_v28  ;;  %v4312_v18 = vld [vmem:[%s5874_s4 + $0x10c] ss:$12 sps:$4 sm:$0xff]  }
 0x81b   :  { %1653 = vmatprep.mubr.bf16.mxu1 %v1477_v62  ;;  %v4310_v62 = vld [vmem:[%s5874_s4 + $0x108] ss:$12 sps:$4 sm:$0xff]  }
 0x81c   :  { %1654 = vmatmul.mubr.bf16.gmra.mxu1 %v1476_v40  ;;  %v4316_v40 = vld [vmem:[%s5874_s4 + $0xf4] ss:$12 sps:$4 sm:$0xff]  }
 0x81d   :  { %4080 = vmatpush3.bf16.msra.mxu1 %v4309_v28 }
 0x81e   :  { %4081 = vmatprep.subr.bf16.mxu1 %v4313_v53 }
 0x821   :  { %4082 = vmatpush3.bf16.msra.mxu1 %v4313_v53 }
 0x8d4   :  { %v3894_v20 = vpop.f32.mrf.mxu1 }
 0x8d6   :  { %v3895_v37 = vpop.f32.mrf.mxu1 }
 0x8d7   :  { %v3896_v35 = vadd.f32 %v3895_v37, %v3894_v20  ;;  %v4317_v20 = vld [vmem:[%s5874_s4 + $0x128] ss:$12 sps:$4 sm:$0xff]  }
 0x8d8   :  { %v3897_v50 = vpop.f32.mrf.mxu1  ;;  %4083 = vmatprep.subr.bf16.mxu1 %v4317_v20  ;;  %v4320_v37 = vld [vmem:[%s5874_s4 + $0xdc] ss:$12 sps:$4 sm:$0xff]  }
 0x8d9   :  { %v1648_v3 = vadd.f32 %v3896_v35, %v3665_v26  ;;  %4084 = vmatpush3.bf16.msra.mxu1 %v4317_v20  ;;  %v4321_v35 = vld [vmem:[%s5874_s4 + $0x110] ss:$12 sps:$4 sm:$0xff]  }
 0x8da   :  { %v3898_v21 = vpop.f32.mrf.mxu1  ;;  %4085 = vmatprep.subr.bf16.mxu1 %v4321_v35 }
 0x8db   :  { %v3899_v46 = vadd.f32 %v3898_v21, %v3897_v50  ;;  %v1662_v42 = vadd.f32 %v1648_v3, %v5244_v60  ;;  %v4296_v60 = vld [vmem:[%s5874_s4 + $0x168] ss:$12 sps:$4 sm:$0xff]   ;;  %v4318_v50 = vld [vmem:[%s5874_s4 + $0xd8] ss:$12 sps:$4 sm:$0xff]  }
 0x8dc   :  { %v3900_v41 = vpop.f32.mrf.mxu1  ;;  %v4324_v3 = vld [vmem:[%s5874_s4 + $0xc4] ss:$12 sps:$4 sm:$0xff]  }
 0x8dd   :  { %v1651_v43 = vadd.f32 %v3899_v46, %v3665_v26  ;;  %1668 = vadd.xlane.f32.xlu0 %v1662_v42  ;;  %v4325_v21 = vld [vmem:[%s5874_s4 + $0xf8] ss:$12 sps:$4 sm:$0xff]   ;;  %4086 = vmatpush3.bf16.msra.mxu1 %v4321_v35  ;;  %v4322_v46 = vld [vmem:[%s5874_s4 + $0xc0] ss:$12 sps:$4 sm:$0xff]  }
 0x8de   :  { %v3901_v30 = vpop.f32.mrf.mxu1  ;;  %4087 = vmatprep.subr.bf16.mxu1 %v4325_v21 }
 0x8df   :  { %v3902_v8 = vadd.f32 %v3901_v30, %v3900_v41  ;;  %v1663_v54 = vadd.f32 %v1651_v43, %v5246_v10  ;;  %v4298_v10 = vld [vmem:[%s5874_s4 + $0x16c] ss:$12 sps:$4 sm:$0xff]   ;;  %v4327_v41 = vld [vmem:[%s5874_s4 + $0xc8] ss:$12 sps:$4 sm:$0xff]  }
 0x8e0   :  { %v3903_v51 = vpop.f32.mrf.mxu1  ;;  %1913 = vmatprep.subr.bf16.mxu0 %v4298_v10 }
 0x8e1   :  { %v1656_v38 = vadd.f32 %v3902_v8, %v3665_v26  ;;  %1670 = vadd.xlane.f32.xlu1 %v1663_v54  ;;  %1914 = vmatpush1.bf16.msra.mxu0 %v4296_v60 }
 0x8e2   :  { %v3904_v55 = vpop.f32.mrf.mxu1  ;;  %1915 = vmatprep.subr.bf16.mxu0 %v4301_v27  ;;  %4088 = vmatpush3.bf16.msra.mxu1 %v4325_v21 }
 0x8e3   :  { %v3905_v4 = vadd.f32 %v3904_v55, %v3903_v51  ;;  %v1664_v45 = vadd.f32 %v1656_v38, %v5254_v61 }
 0x8e5   :  { %v1659_v5 = vadd.f32 %v3905_v4, %v3665_v26  ;;  %1672 = vadd.xlane.f32.xlu0 %v1664_v45  ;;  %1916 = vmatpush1.bf16.msra.mxu0 %v4299_v11  ;;  %v4314_v26 = vld [vmem:[%s5874_s4 + $0xf0] ss:$12 sps:$4 sm:$0xff]  }
 0x8e6   :  { %1917 = vmatprep.subr.bf16.mxu0 %v4304_v34 }
 0x8e7   :  { %v1665_v44 = vadd.f32 %v1659_v5, %v5252_v57 }
 0x8e9   :  { %1674 = vadd.xlane.f32.xlu1 %v1665_v44  ;;  %1918 = vmatpush1.bf16.msra.mxu0 %v4302_v36 }
 0x8ea   :  { %1919 = vmatprep.subr.bf16.mxu0 %v4308_v9 }
 0x8ed   :  { %1920 = vmatpush1.bf16.msra.mxu0 %v4306_v32 }
 0x8ee   :  { %1921 = vmatprep.subr.bf16.mxu0 %v4312_v18 }
 0x8f1   :  { %1922 = vmatpush1.bf16.msra.mxu0 %v4310_v62 }
 0x8f2   :  { %1923 = vmatprep.subr.bf16.mxu0 %v4316_v40 }
 0x8f5   :  { %1924 = vmatpush1.bf16.msra.mxu0 %v4314_v26 }
 0x8f6   :  { %1925 = vmatprep.subr.bf16.mxu0 %v4320_v37 }
 0x8f9   :  { %1926 = vmatpush1.bf16.msra.mxu0 %v4318_v50 }
 0x8fa   :  { %1927 = vmatprep.subr.bf16.mxu0 %v4324_v3 }
 0x8fd   :  { %1928 = vmatpush1.bf16.msra.mxu0 %v4322_v46 }
 0x966   :  { %v1669_v52 = vpop.xlane.xlu0 %1668 }
 0x967   :  { %v1676_v12 = vmul.f32 0.0078125, %v1669_v52 }
 0x969   :  { %v5305_v16 = vsub.f32 %v1662_v42, %v1676_v12  ;;  %v4326_v42 = vld [vmem:[%s5874_s4 + $0xe0] ss:$12 sps:$4 sm:$0xff]  }
 0x96a   :  { %v1671_v61 = vpop.xlane.xlu1 %1670  ;;  %4089 = vmatprep.subr.bf16.mxu1 %v4326_v42  ;;  %v3682_v12 = vld [vmem:[%s5859_s14] ss:$0 sm:$0xff] }
 0x96b   :  { %v1677_v58 = vmul.f32 0.0078125, %v1671_v61  ;;  %v1684_v57 = vmul.f32 %v5305_v16, %v5305_v16  ;;  %4090 = vmatpush3.bf16.msra.mxu1 %v4326_v42 }
 0x96c   :  { %4091 = vmatprep.subr.bf16.mxu1 %v4327_v41 }
 0x96d   :  { %v5309_v56 = vsub.f32 %v1663_v54, %v1677_v58  ;;  %1688 = vadd.xlane.f32.xlu0 %v1684_v57 }
 0x96e   :  { %v1673_v59 = vpop.xlane.xlu0 %1672 }
 0x96f   :  { %v1678_v22 = vmul.f32 0.0078125, %v1673_v59  ;;  %v1685_v1 = vmul.f32 %v5309_v56, %v5309_v56  ;;  %4092 = vmatpush3.bf16.msra.mxu1 %v4327_v41  ;;  %v3683_v59 = vld [vmem:[%s5860_s15] ss:$0 sm:$0xff] }
 0x971   :  { %v5313_v2 = vsub.f32 %v1664_v45, %v1678_v22  ;;  %1690 = vadd.xlane.f32.xlu1 %v1685_v1 }
 0x972   :  { %v1675_v13 = vpop.xlane.xlu1 %1674 }
 0x973   :  { %v1679_v48 = vmul.f32 0.0078125, %v1675_v13  ;;  %v1686_v6 = vmul.f32 %v5313_v2, %v5313_v2 }
 0x975   :  { %v5317_v7 = vsub.f32 %v1665_v44, %v1679_v48  ;;  %1692 = vadd.xlane.f32.xlu0 %v1686_v6 }
 0x977   :  { %v1687_v23 = vmul.f32 %v5317_v7, %v5317_v7 }
 0x979   :  { %1694 = vadd.xlane.f32.xlu1 %v1687_v23 }
 0x9f6   :  { %v1689_v43 = vpop.xlane.xlu0 %1688 }
 0x9f7   :  { %v1696_v30 = vmul.f32 0.0078125, %v1689_v43 }
 0x9f9   :  { %v1700_v8 = vadd.f32 1e-05, %v1696_v30 }
 0x9fa   :  { %v1691_v54 = vpop.xlane.xlu1 %1690 }
 0x9fb   :  { %4488 = vrsqrt.f32 %v1700_v8  ;;  %v1697_v51 = vmul.f32 0.0078125, %v1691_v54 }
 0x9fd   :  { %v1701_v38 = vadd.f32 1e-05, %v1697_v51 }
 0x9fe   :  { %v1693_v55 = vpop.xlane.xlu0 %1692 }
 0x9ff   :  { %4490 = vrsqrt.f32 %v1701_v38  ;;  %v1698_v4 = vmul.f32 0.0078125, %v1693_v55 }
 0xa01   :  { %v1702_v45 = vadd.f32 1e-05, %v1698_v4 }
 0xa02   :  { %v1695_v5 = vpop.xlane.xlu1 %1694 }
 0xa03   :  { %4492 = vrsqrt.f32 %v1702_v45  ;;  %v1699_v44 = vmul.f32 0.0078125, %v1695_v5 }
 0xa05   :  { %v1703_v60 = vadd.f32 1e-05, %v1699_v44 }
 0xa07   :  { %4494 = vrsqrt.f32 %v1703_v60 }
 0xa08   :  { %v4489_v10 = vpop.eup %4488 }
 0xa09   :  { %v1708_v52 = vmul.f32 %v4489_v10, %v5305_v16 }
 0xa0b   :  { %v1718_v57 = vmul.f32 %v3682_v12, %v1708_v52 }
 0xa0c   :  { %v4491_v61 = vpop.eup %4490 }
 0xa0d   :  { %v1709_v58 = vmul.f32 %v4491_v61, %v5309_v56  ;;  %v5395_v13 = vadd.f32 %v3683_v59, %v1718_v57 }
 0xa0f   :  { %v1719_v22 = vmul.f32 %v3682_v12, %v1709_v58 }
 0xa10   :  { %v4493_v1 = vpop.eup %4492 }
 0xa11   :  { %v5397_v48 = vadd.f32 %v3683_v59, %v1719_v22  ;;  %v1710_v16 = vmul.f32 %v4493_v1, %v5313_v2  ;;  %v3716_v2 = vld [vmem:[%s5850_s5 + $0x3] sm:$0x7] }
 0xa12   :  { %v1773_v9 = vrot.slane %v3716_v2, %v4911_v15  ;;  %v1777_v32 = vrot.slane %v3716_v2, %v4920_v19  ;;  %v1781_v51 = vrot.slane %v3716_v2, %v255_v29 }
 0xa13   :  { %v1732_v6 = vpack.c.bf16 %v5397_v48, %v5395_v13  ;;  %v1720_v27 = vmul.f32 %v3682_v12, %v1710_v16 }
 0xa14   :  { %v4495_v23 = vpop.eup %4494 }
 0xa15   :  { %1946 = vmatmul.mubr.bf16.vlgmr.msra.gmra.mxu0 %v1732_v6  ;;  %4093 = vmatprep.mubr.bf16.mxu1 %v1732_v6  ;;  %v1711_v56 = vmul.f32 %v4495_v23, %v5317_v7  ;;  %v5404_v34 = vadd.f32 %v3683_v59, %v1720_v27 }
 0xa16   :  { %1955 = vmatprep.mubr.bf16.mxu0 %v4667_v39 }
 0xa17   :  { %v1721_v11 = vmul.f32 %v3682_v12, %v1711_v56 }
 0xa19   :  { %v5406_v33 = vadd.f32 %v3683_v59, %v1721_v11 }
 0xa1b   :  { %v1733_v36 = vpack.c.bf16 %v5406_v33, %v5404_v34 }
 0xa1d   :  { %1956 = vmatmul.mubr.bf16.gmra.mxu0 %v1733_v36  ;;  %4094 = vmatmul.mubr.bf16.vlgmr.msra.gmra.mxu1 %v1733_v36 }
 0xad5   :  { %v1947_v7 = vpop.f32.mrf.mxu0 }
 0xad6   :  { %v1948_v18 = vadd.f32 %v1947_v7, %v1773_v9 }
 0xad7   :  { %v1949_v28 = vpop.f32.mrf.mxu0 }
 0xad8   :  { %v1950_v20 = vadd.f32 %v1949_v28, %v1777_v32  ;;  %v2015_v3 = vmul.f32 %v4925_v25, %v1948_v18  ;;  %v2017_v55 = vmul.f32 %v4937_v47, %v1948_v18  ;;  %v2019_v29 = vmul.f32 %v4940_v49, %v1948_v18 }
 0xad9   :  { %v1951_v53 = vpop.f32.mrf.mxu0  ;;  %v2021_v11 = vmul.f32 %v4951_v0, %v1948_v18 }
 0xada   :  { %v1952_v62 = vadd.f32 %v1951_v53, %v1773_v9 }
 0xadb   :  { %v1953_v40 = vpop.f32.mrf.mxu0 }
 0xadc   :  { %v1954_v26 = vadd.f32 %v1953_v40, %v1777_v32  ;;  %v2016_v37 = vmul.f32 %v4925_v25, %v1952_v62  ;;  %v2018_v54 = vmul.f32 %v4937_v47, %v1952_v62  ;;  %v2020_v5 = vmul.f32 %v4940_v49, %v1952_v62 }
 0xadd   :  { %v1957_v35 = vpop.f32.mrf.mxu0  ;;  %v4095_v50 = vpop.f32.mrf.mxu1  ;;  %v2022_v56 = vmul.f32 %v4951_v0, %v1952_v62 }
 0xade   :  { %v2027_v21 = vpack.c.bf16 %v1954_v26, %v1950_v20  ;;  %v2023_v41 = vpack.c.bf16 %v2016_v37, %v2015_v3  ;;  %v1958_v43 = vadd.f32 %v1957_v35, %v1773_v9  ;;  %v2024_v57 = vpack.c.bf16 %v2018_v54, %v2017_v55 }
 0xadf   :  { %v1959_v46 = vpop.f32.mrf.mxu0  ;;  %v2000_v42 = vpop.f32.mrf.mxu1  ;;  %v2009_v1 = vadd.f32 %v4095_v50, %v1781_v51  ;;  %v2025_v6 = vpack.c.bf16 %v2020_v5, %v2019_v29 }
 0xae0   :  { %4097 = vmatprep.subr.bf16.mxu0 %v2027_v21  ;;  %4099 = vmatprep.mubr.bf16.mxu0 %v2023_v41  ;;  %v1960_v44 = vadd.f32 %v1959_v46, %v1777_v32  ;;  %v2001_v60 = vadd.f32 %v2000_v42, %v1781_v51  ;;  %v2293_v61 = vmul.f32 %v4925_v25, %v1958_v43 }
 0xae1   :  { %v1961_v30 = vpop.f32.mrf.mxu0  ;;  %v4096_v8 = vpop.f32.mrf.mxu1  ;;  %4098 = vmatpush3.bf16.xpose.msra.mxu0 %v2027_v21  ;;  %v2295_v2 = vmul.f32 %v4937_v47, %v1958_v43  ;;  %v2297_v7 = vmul.f32 %v4940_v49, %v1958_v43  ;;  %v2299_v62 = vmul.f32 %v4951_v0, %v1958_v43 }
 0xae2   :  { %v1962_v38 = vadd.f32 %v1961_v30, %v1773_v9  ;;  %v2012_v12 = vadd.f32 %v4096_v8, %v1781_v51  ;;  %v2026_v9 = vpack.c.bf16 %v2022_v56, %v2021_v11 }
 0xae3   :  { %v1963_v4 = vpop.f32.mrf.mxu0  ;;  %v2003_v45 = vpop.f32.mrf.mxu1 }
 0xae4   :  { %v1964_v10 = vadd.f32 %v1963_v4, %v1777_v32  ;;  %v2004_v52 = vadd.f32 %v2003_v45, %v1781_v51  ;;  %v2294_v58 = vmul.f32 %v4925_v25, %v1962_v38  ;;  %v5425_v23 = vpack.c.bf16 %v2012_v12, %v2009_v1 }
 0xae5   :  { %v2296_v27 = vmul.f32 %v4937_v47, %v1962_v38  ;;  %v2298_v36 = vmul.f32 %v4940_v49, %v1962_v38  ;;  %v2300_v53 = vmul.f32 %v4951_v0, %v1962_v38 }
 0xae6   :  { %v2305_v59 = vpack.c.bf16 %v1964_v10, %v1960_v44  ;;  %v2201_v22 = vpack.c.bf16 %v2004_v52, %v2001_v60  ;;  %v2301_v16 = vpack.c.bf16 %v2294_v58, %v2293_v61 }
 0xae7   :  { %v2302_v28 = vpack.c.bf16 %v2296_v27, %v2295_v2  ;;  %v2303_v32 = vpack.c.bf16 %v2298_v36, %v2297_v7  ;;  %v2304_v40 = vpack.c.bf16 %v2300_v53, %v2299_v62 }
 0xae8   :  { %4100 = vmatmul.mubr.bf16.vlgmr.msra.gmra.mxu0 %v2024_v57  ;;  %4107 = vmatprep.subr.bf16.mxu0 %v2201_v22 }
 0xae9   :  { %4117 = vmatprep.subr.bf16.mxu1 %v2305_v59  ;;  %4119 = vmatprep.mubr.bf16.mxu1 %v2301_v16 }
 0xaea   :  { %4103 = vmatprep.mubr.bf16.mxu0 %v2025_v6  ;;  %4108 = vmatpush3.bf16.msra.mxu0 %v2201_v22 }
 0xaeb   :  { %4118 = vmatpush3.bf16.xpose.msra.mxu1 %v2305_v59  ;;  %4127 = vmatprep.subr.bf16.mxu0 %v5425_v23 }
 0xaf0   :  { %4104 = vmatmul.mubr.bf16.gmra.mxu0 %v2026_v9 }
 0xaf2   :  { %4120 = vmatmul.mubr.bf16.vlgmr.msra.gmra.mxu1 %v2302_v28 }
 0xaf3   :  { %4123 = vmatprep.mubr.bf16.mxu1 %v2303_v32 }
 0xafa   :  { %4124 = vmatmul.mubr.bf16.gmra.mxu1 %v2304_v40 }
 0xba8   :  { %v4101_v20 = vpop.f32.mrf.mxu0 }
 0xba9   :  { %v2095_v26 = vmul.f32 0.17677669, %v4101_v20 }
 0xbaa   :  { %v2062_v18 = vpop.f32.mrf.mxu0 }
 0xbab   :  { %v2093_v37 = vmul.f32 0.17677669, %v2062_v18  ;;  %v5442_v41 = vadd.f32 %v2095_v26, %v4967_v31 }
 0xbac   :  { %v4102_v35 = vpop.f32.mrf.mxu0 }
 0xbad   :  { %v5437_v50 = vadd.f32 %v2093_v37, %v4967_v31  ;;  %v2096_v21 = vmul.f32 0.17677669, %v4102_v35  ;;  %v2115_v55 = vsel %vm584_vm8, %v5442_v41, -inf }
 0xbae   :  { %v2065_v3 = vpop.f32.mrf.mxu0 }
 0xbaf   :  { %v2094_v46 = vmul.f32 0.17677669, %v2065_v3  ;;  %v2109_v42 = vsel %vm584_vm8, %v5437_v50, -inf  ;;  %v5452_v45 = vadd.f32 %v2096_v21, %v4967_v31 }
 0xbb0   :  { %2110 = vmax.xlane.f32.xlu0 %v2109_v42  ;;  %v4105_v43 = vpop.f32.mrf.mxu0 }
 0xbb1   :  { %v5445_v30 = vadd.f32 %v2094_v46, %v4967_v31  ;;  %v2099_v8 = vmul.f32 0.17677669, %v4105_v43  ;;  %v2118_v59 = vsel %vm584_vm8, %v5452_v45, -inf }
 0xbb2   :  { %v4121_v54 = vpop.f32.mrf.mxu1  ;;  %v2078_v51 = vpop.f32.mrf.mxu0 }
 0xbb3   :  { %v2097_v38 = vmul.f32 0.17677669, %v2078_v51  ;;  %v2112_v4 = vsel %vm584_vm8, %v5445_v30, -inf  ;;  %v5458_v61 = vadd.f32 %v2099_v8, %v4967_v31  ;;  %v2373_v16 = vmul.f32 0.17677669, %v4121_v54 }
 0xbb4   :  { %v2340_v5 = vpop.f32.mrf.mxu1  ;;  %2116 = vmax.xlane.f32.xlu0 %v2115_v55  ;;  %2113 = vmax.xlane.f32.xlu1 %v2112_v4  ;;  %v4106_v44 = vpop.f32.mrf.mxu0 }
 0xbb5   :  { %v5455_v60 = vadd.f32 %v2097_v38, %v4967_v31  ;;  %v2371_v10 = vmul.f32 0.17677669, %v2340_v5  ;;  %v2100_v58 = vmul.f32 0.17677669, %v4106_v44  ;;  %v2127_v56 = vsel %vm584_vm8, %v5458_v61, -inf }
 0xbb6   :  { %v4122_v52 = vpop.f32.mrf.mxu1  ;;  %v2081_v12 = vpop.f32.mrf.mxu0  ;;  %v5478_v32 = vadd.f32 %v2373_v16, %v5001_v63 }
 0xbb7   :  { %v2098_v57 = vmul.f32 0.17677669, %v2081_v12  ;;  %v2121_v22 = vsel %vm584_vm8, %v5455_v60, -inf  ;;  %v5472_v36 = vadd.f32 %v2100_v58, %v4967_v31  ;;  %v5475_v2 = vadd.f32 %v2371_v10, %v5001_v63 }
 0xbb8   :  { %v2343_v29 = vpop.f32.mrf.mxu1  ;;  %2119 = vmax.xlane.f32.xlu1 %v2118_v59  ;;  %2122 = vmax.xlane.f32.xlu0 %v2121_v22  ;;  %v2374_v7 = vmul.f32 0.17677669, %v4122_v52  ;;  %v2393_v18 = vsel %vm584_vm8, %v5478_v32, -inf }
 0xbb9   :  { %v5465_v1 = vadd.f32 %v2098_v57, %v4967_v31  ;;  %v2372_v27 = vmul.f32 0.17677669, %v2343_v29  ;;  %v2130_v62 = vsel %vm584_vm8, %v5472_v36, -inf  ;;  %v2387_v40 = vsel %vm584_vm8, %v5475_v2, -inf }
 0xbba   :  { %v4125_v6 = vpop.f32.mrf.mxu1  ;;  %v5490_v26 = vadd.f32 %v2374_v7, %v5001_v63 }
 0xbbb   :  { %v2124_v11 = vsel %vm584_vm8, %v5465_v1, -inf  ;;  %v5485_v31 = vadd.f32 %v2372_v27, %v5001_v63  ;;  %v2377_v37 = vmul.f32 0.17677669, %v4125_v6 }
 0xbbc   :  { %v2356_v9 = vpop.f32.mrf.mxu1  ;;  %2128 = vmax.xlane.f32.xlu0 %v2127_v56  ;;  %2125 = vmax.xlane.f32.xlu1 %v2124_v11  ;;  %v2396_v46 = vsel %vm584_vm8, %v5490_v26, -inf }
 0xbbd   :  { %v2375_v53 = vmul.f32 0.17677669, %v2356_v9  ;;  %v2390_v3 = vsel %vm584_vm8, %v5485_v31, -inf  ;;  %v5502_v8 = vadd.f32 %v2377_v37, %v5001_v63 }
 0xbbe   :  { %v4126_v28 = vpop.f32.mrf.mxu1 }
 0xbbf   :  { %v5495_v21 = vadd.f32 %v2375_v53, %v5001_v63  ;;  %v2378_v42 = vmul.f32 0.17677669, %v4126_v28  ;;  %v2405_v51 = vsel %vm584_vm8, %v5502_v8, -inf }
 0xbc0   :  { %v2359_v20 = vpop.f32.mrf.mxu1  ;;  %2131 = vmax.xlane.f32.xlu1 %v2130_v62  ;;  %2388 = vmax.xlane.f32.xlu0 %v2387_v40 }
 0xbc1   :  { %v2376_v35 = vmul.f32 0.17677669, %v2359_v20  ;;  %v2399_v43 = vsel %vm584_vm8, %v5495_v21, -inf  ;;  %v5512_v55 = vadd.f32 %v2378_v42, %v5001_v63 }
 0xbc3   :  { %v5505_v54 = vadd.f32 %v2376_v35, %v5001_v63  ;;  %v2408_v4 = vsel %vm584_vm8, %v5512_v55, -inf }
 0xbc4   :  { %2394 = vmax.xlane.f32.xlu0 %v2393_v18  ;;  %2391 = vmax.xlane.f32.xlu1 %v2390_v3 }
 0xbc5   :  { %v2402_v38 = vsel %vm584_vm8, %v5505_v54, -inf }
 0xbc8   :  { %2397 = vmax.xlane.f32.xlu1 %v2396_v46  ;;  %2400 = vmax.xlane.f32.xlu0 %v2399_v43 }
 0xbcc   :  { %2406 = vmax.xlane.f32.xlu0 %v2405_v51  ;;  %2403 = vmax.xlane.f32.xlu1 %v2402_v38 }
 0xbd0   :  { %2409 = vmax.xlane.f32.xlu1 %v2408_v4 }
 0xc39   :  { %v2111_v5 = vpop.xlane.xlu0 %2110 }
 0xc3a   :  { %v2133_v44 = vsub.f32 %v5437_v50, %v2111_v5 }
 0xc3c   :  { %v2141_v10 = vmul.f32 1.442695, %v2133_v44 }
 0xc3d   :  { %v2117_v52 = vpop.xlane.xlu0 %2116  ;;  %v2114_v12 = vpop.xlane.xlu1 %2113 }
 0xc3e   :  { %4496 = vpow2.f32 %v2141_v10  ;;  %v2135_v58 = vsub.f32 %v5442_v41, %v2117_v52  ;;  %v2134_v57 = vsub.f32 %v5445_v30, %v2114_v12 }
 0xc40   :  { %v2145_v59 = vmul.f32 1.442695, %v2135_v58  ;;  %v2143_v63 = vmul.f32 1.442695, %v2134_v57 }
 0xc41   :  { %v2120_v22 = vpop.xlane.xlu1 %2119  ;;  %v2123_v29 = vpop.xlane.xlu0 %2122 }
 0xc42   :  { %4498 = vpow2.f32 %v2145_v59  ;;  %v2136_v16 = vsub.f32 %v5452_v45, %v2120_v22  ;;  %v2137_v6 = vsub.f32 %v5455_v60, %v2123_v29 }
 0xc43   :  { %4500 = vpow2.f32 %v2143_v63 }
 0xc44   :  { %v2147_v56 = vmul.f32 1.442695, %v2136_v16  ;;  %v2149_v50 = vmul.f32 1.442695, %v2137_v6 }
 0xc45   :  { %v2129_v27 = vpop.xlane.xlu0 %2128  ;;  %v2126_v11 = vpop.xlane.xlu1 %2125 }
 0xc46   :  { %4502 = vpow2.f32 %v2147_v56  ;;  %v2139_v9 = vsub.f32 %v5458_v61, %v2129_v27  ;;  %v2138_v41 = vsub.f32 %v5465_v1, %v2126_v11 }
 0xc47   :  { %4504 = vpow2.f32 %v2149_v50 }
 0xc48   :  { %v2153_v30 = vmul.f32 1.442695, %v2139_v9  ;;  %v2151_v7 = vmul.f32 1.442695, %v2138_v41 }
 0xc49   :  { %v2132_v28 = vpop.xlane.xlu1 %2131  ;;  %v2389_v53 = vpop.xlane.xlu0 %2388 }
 0xc4a   :  { %4506 = vpow2.f32 %v2153_v30  ;;  %v2140_v45 = vsub.f32 %v5472_v36, %v2132_v28  ;;  %v2411_v60 = vsub.f32 %v5475_v2, %v2389_v53 }
 0xc4b   :  { %v5525_v62 = vpop.eup %4496  ;;  %4508 = vpow2.f32 %v2151_v7 }
 0xc4c   :  { %v2155_v40 = vmul.f32 1.442695, %v2140_v45  ;;  %v2419_v20 = vmul.f32 1.442695, %v2411_v60  ;;  %v2157_v61 = vsel %vm584_vm8, %v5525_v62, 0.0 }
 0xc4d   :  { %v2395_v18 = vpop.xlane.xlu0 %2394  ;;  %v2392_v1 = vpop.xlane.xlu1 %2391  ;;  %2158 = vadd.xlane.f32.xlu0 %v2157_v61 }
 0xc4e   :  { %4510 = vpow2.f32 %v2155_v40  ;;  %v2413_v37 = vsub.f32 %v5478_v32, %v2395_v18  ;;  %v2412_v35 = vsub.f32 %v5485_v31, %v2392_v1 }
 0xc4f   :  { %v5531_v3 = vpop.eup %4498  ;;  %4512 = vpow2.f32 %v2419_v20 }
 0xc50   :  { %v5533_v36 = vpop.eup %4500  ;;  %v2423_v2 = vmul.f32 1.442695, %v2413_v37  ;;  %v2421_v46 = vmul.f32 1.442695, %v2412_v35  ;;  %v2163_v42 = vsel %vm584_vm8, %v5531_v3, 0.0 }
 0xc51   :  { %v2398_v43 = vpop.xlane.xlu1 %2397  ;;  %2164 = vadd.xlane.f32.xlu0 %v2163_v42  ;;  %v2401_v51 = vpop.xlane.xlu0 %2400  ;;  %v2160_v38 = vsel %vm584_vm8, %v5533_v36, 0.0 }
 0xc52   :  { %4514 = vpow2.f32 %v2423_v2  ;;  %v2414_v32 = vsub.f32 %v5490_v26, %v2398_v43  ;;  %v2415_v31 = vsub.f32 %v5495_v21, %v2401_v51  ;;  %2161 = vadd.xlane.f32.xlu1 %v2160_v38 }
 0xc53   :  { %v5541_v4 = vpop.eup %4502  ;;  %4516 = vpow2.f32 %v2421_v46 }
 0xc54   :  { %v5543_v5 = vpop.eup %4504  ;;  %v2425_v44 = vmul.f32 1.442695, %v2414_v32  ;;  %v2427_v10 = vmul.f32 1.442695, %v2415_v31  ;;  %v2166_v52 = vsel %vm584_vm8, %v5541_v4, 0.0 }
 0xc55   :  { %v2169_v12 = vsel %vm584_vm8, %v5543_v5, 0.0  ;;  %v2407_v58 = vpop.xlane.xlu0 %2406  ;;  %v2404_v57 = vpop.xlane.xlu1 %2403 }
 0xc56   :  { %4518 = vpow2.f32 %v2425_v44  ;;  %2170 = vadd.xlane.f32.xlu0 %v2169_v12  ;;  %v2417_v26 = vsub.f32 %v5502_v8, %v2407_v58  ;;  %2167 = vadd.xlane.f32.xlu1 %v2166_v52  ;;  %v2416_v21 = vsub.f32 %v5505_v54, %v2404_v57 }
 0xc57   :  { %v5551_v59 = vpop.eup %4506  ;;  %4520 = vpow2.f32 %v2427_v10 }
 0xc58   :  { %v5553_v63 = vpop.eup %4508  ;;  %v2431_v22 = vmul.f32 1.442695, %v2417_v26  ;;  %v2429_v29 = vmul.f32 1.442695, %v2416_v21  ;;  %v2175_v16 = vsel %vm584_vm8, %v5551_v59, 0.0 }
 0xc59   :  { %v2172_v6 = vsel %vm584_vm8, %v5553_v63, 0.0  ;;  %v2410_v56 = vpop.xlane.xlu1 %2409 }
 0xc5a   :  { %4522 = vpow2.f32 %v2431_v22  ;;  %2176 = vadd.xlane.f32.xlu0 %v2175_v16  ;;  %2173 = vadd.xlane.f32.xlu1 %v2172_v6  ;;  %v2418_v8 = vsub.f32 %v5512_v55, %v2410_v56 }
 0xc5b   :  { %v5560_v54 = vpop.eup %4510  ;;  %4524 = vpow2.f32 %v2429_v29 }
 0xc5c   :  { %v5562_v50 = vpop.eup %4512  ;;  %v2433_v27 = vmul.f32 1.442695, %v2418_v8  ;;  %v2178_v11 = vsel %vm584_vm8, %v5560_v54, 0.0 }
 0xc5d   :  { %v2435_v9 = vsel %vm584_vm8, %v5562_v50, 0.0 }
 0xc5e   :  { %4526 = vpow2.f32 %v2433_v27  ;;  %2436 = vadd.xlane.f32.xlu0 %v2435_v9  ;;  %2179 = vadd.xlane.f32.xlu1 %v2178_v11 }
 0xc5f   :  { %v5568_v41 = vpop.eup %4514 }
 0xc60   :  { %v5570_v30 = vpop.eup %4516  ;;  %v2441_v55 = vsel %vm584_vm8, %v5568_v41, 0.0 }
 0xc61   :  { %v2438_v7 = vsel %vm584_vm8, %v5570_v30, 0.0 }
 0xc62   :  { %2442 = vadd.xlane.f32.xlu0 %v2441_v55  ;;  %2439 = vadd.xlane.f32.xlu1 %v2438_v7 }
 0xc63   :  { %v5576_v28 = vpop.eup %4518 }
 0xc64   :  { %v5578_v53 = vpop.eup %4520  ;;  %v2444_v45 = vsel %vm584_vm8, %v5576_v28, 0.0 }
 0xc65   :  { %v2447_v60 = vsel %vm584_vm8, %v5578_v53, 0.0 }
 0xc66   :  { %2448 = vadd.xlane.f32.xlu0 %v2447_v60  ;;  %2445 = vadd.xlane.f32.xlu1 %v2444_v45 }
 0xc67   :  { %v5584_v40 = vpop.eup %4522 }
 0xc68   :  { %v5586_v20 = vpop.eup %4524  ;;  %v2453_v61 = vsel %vm584_vm8, %v5584_v40, 0.0 }
 0xc69   :  { %v2450_v18 = vsel %vm584_vm8, %v5586_v20, 0.0 }
 0xc6a   :  { %2454 = vadd.xlane.f32.xlu0 %v2453_v61  ;;  %2451 = vadd.xlane.f32.xlu1 %v2450_v18 }
 0xc6b   :  { %v5592_v1 = vpop.eup %4526 }
 0xc6c   :  { %v2456_v37 = vsel %vm584_vm8, %v5592_v1, 0.0 }
 0xc6e   :  { %2457 = vadd.xlane.f32.xlu1 %v2456_v37 }
 0xcd6   :  { %v2159_v35 = vpop.xlane.xlu0 %2158 }
 0xcd7   :  { %4528 = vrcp.f32 %v2159_v35 }
 0xcda   :  { %v2165_v2 = vpop.xlane.xlu0 %2164 }
 0xcdb   :  { %v2162_v46 = vpop.xlane.xlu1 %2161 }
 0xcdc   :  { %4530 = vrcp.f32 %v2162_v46 }
 0xcdd   :  { %4532 = vrcp.f32 %v2165_v2 }
 0xcdf   :  { %v2171_v42 = vpop.xlane.xlu0 %2170  ;;  %v2168_v43 = vpop.xlane.xlu1 %2167 }
 0xce0   :  { %4534 = vrcp.f32 %v2168_v43 }
 0xce1   :  { %4536 = vrcp.f32 %v2171_v42 }
 0xce3   :  { %v2177_v51 = vpop.xlane.xlu0 %2176  ;;  %v2174_v38 = vpop.xlane.xlu1 %2173 }
 0xce4   :  { %4538 = vrcp.f32 %v2174_v38  ;;  %v4529_v32 = vpop.eup %4528 }
 0xce5   :  { %4540 = vrcp.f32 %v2177_v51  ;;  %v2182_v52 = vmul.f32 %v4529_v32, %v5525_v62 }
 0xce7   :  { %v2437_v31 = vpop.xlane.xlu0 %2436  ;;  %v2180_v44 = vpop.xlane.xlu1 %2179 }
 0xce8   :  { %4542 = vrcp.f32 %v2180_v44 }
 0xce9   :  { %v4531_v10 = vpop.eup %4530  ;;  %4544 = vrcp.f32 %v2437_v31 }
 0xcea   :  { %v2184_v12 = vmul.f32 %v4531_v10, %v5533_v36  ;;  %v4533_v26 = vpop.eup %4532  ;;  %v4328_v10 = vld [vmem:[#allocation2 + $0x78] sm:$0xff]  }
 0xceb   :  { %v2443_v58 = vpop.xlane.xlu0 %2442  ;;  %v2440_v57 = vpop.xlane.xlu1 %2439  ;;  %v2186_v29 = vmul.f32 %v4533_v26, %v5531_v3  ;;  %4137 = vmatprep.subr.bf16.mxu1 %v4328_v10 }
 0xcec   :  { %v2197_v21 = vpack.c.bf16 %v2184_v12, %v2182_v52  ;;  %4546 = vrcp.f32 %v2440_v57  ;;  %4138 = vmatpush3.bf16.msra.mxu1 %v4328_v10  ;;  %v4329_v52 = vld [vmem:[#allocation2 + $0x70] sm:$0xff]   ;;  %v4334_v12 = vld [vmem:[#allocation2 + $0x48] sm:$0xff]  }
 0xced   :  { %v4535_v22 = vpop.eup %4534  ;;  %4548 = vrcp.f32 %v2443_v58  ;;  %4139 = vmatprep.subr.bf16.mxu1 %v4329_v52  ;;  %v4335_v58 = vld [vmem:[#allocation2 + $0x40] sm:$0xff]  }
 0xcee   :  { %4109 = vmatprep.mubr.msk.bf16.mxu0 %vm584_vm8, %v2197_v21  ;;  %v2188_v16 = vmul.f32 %v4535_v22, %v5541_v4  ;;  %v4537_v8 = vpop.eup %4536 }
 0xcef   :  { %v2449_v6 = vpop.xlane.xlu0 %2448  ;;  %v2446_v56 = vpop.xlane.xlu1 %2445  ;;  %v2190_v9 = vmul.f32 %v4537_v8, %v5543_v5 }
 0xcf0   :  { %v2198_v62 = vpack.c.bf16 %v2188_v16, %v2186_v29  ;;  %4550 = vrcp.f32 %v2446_v56  ;;  %4140 = vmatpush3.bf16.msra.mxu1 %v4329_v52 }
 0xcf1   :  { %v4539_v36 = vpop.eup %4538  ;;  %4552 = vrcp.f32 %v2449_v6 }
 0xcf2   :  { %4110 = vmatmul.mubr.msk.bf16.vlgmr.msra.gmra.mxu0 %vm584_vm8, %v2198_v62  ;;  %v2192_v55 = vmul.f32 %v4539_v36, %v5553_v63  ;;  %v4541_v7 = vpop.eup %4540 }
 0xcf3   :  { %v2455_v27 = vpop.xlane.xlu0 %2454  ;;  %v2452_v11 = vpop.xlane.xlu1 %2451  ;;  %4128 = vmatpush3.bf16.msra.mxu0 %v5425_v23  ;;  %v2194_v60 = vmul.f32 %v4541_v7, %v5551_v59 }
 0xcf4   :  { %4554 = vrcp.f32 %v2452_v11  ;;  %v2199_v3 = vpack.c.bf16 %v2192_v55, %v2190_v9 }
 0xcf5   :  { %v4543_v4 = vpop.eup %4542  ;;  %4556 = vrcp.f32 %v2455_v27 }
 0xcf6   :  { %4113 = vmatprep.mubr.msk.bf16.mxu0 %vm584_vm8, %v2199_v3  ;;  %v2196_v61 = vmul.f32 %v4543_v4, %v5560_v54  ;;  %v4545_v18 = vpop.eup %4544 }
 0xcf7   :  { %v2458_v45 = vpop.xlane.xlu1 %2457  ;;  %v2460_v63 = vmul.f32 %v4545_v18, %v5562_v50 }
 0xcf8   :  { %4558 = vrcp.f32 %v2458_v45  ;;  %v2200_v37 = vpack.c.bf16 %v2196_v61, %v2194_v60 }
 0xcf9   :  { %v4547_v5 = vpop.eup %4546 }
 0xcfa   :  { %4114 = vmatmul.mubr.msk.bf16.gmra.mxu0 %vm584_vm8, %v2200_v37  ;;  %v2462_v23 = vmul.f32 %v4547_v5, %v5570_v30  ;;  %v4549_v35 = vpop.eup %4548 }
 0xcfb   :  { %v2464_v42 = vmul.f32 %v4549_v35, %v5568_v41 }
 0xcfc   :  { %v2475_v2 = vpack.c.bf16 %v2462_v23, %v2460_v63 }
 0xcfd   :  { %v4551_v46 = vpop.eup %4550 }
 0xcfe   :  { %v2466_v43 = vmul.f32 %v4551_v46, %v5576_v28  ;;  %4129 = vmatprep.mubr.msk.bf16.mxu0 %vm584_vm8, %v2475_v2  ;;  %v4553_v59 = vpop.eup %4552 }
 0xcff   :  { %v2468_v32 = vmul.f32 %v4553_v59, %v5578_v53  ;;  %v4330_v53 = vld [vmem:[#allocation2 + $0x68] sm:$0xff]  }
 0xd00   :  { %v2476_v54 = vpack.c.bf16 %v2466_v43, %v2464_v42  ;;  %4141 = vmatprep.subr.bf16.mxu1 %v4330_v53 }
 0xd01   :  { %v4555_v51 = vpop.eup %4554  ;;  %4142 = vmatpush3.bf16.msra.mxu1 %v4330_v53 }
 0xd02   :  { %v4557_v38 = vpop.eup %4556  ;;  %4130 = vmatmul.mubr.msk.bf16.vlgmr.msra.gmra.mxu0 %vm584_vm8, %v2476_v54  ;;  %v2470_v50 = vmul.f32 %v4555_v51, %v5586_v20  ;;  %v4331_v20 = vld [vmem:[#allocation2 + $0x60] sm:$0xff]  }
 0xd03   :  { %v2472_v44 = vmul.f32 %v4557_v38, %v5584_v40  ;;  %4143 = vmatprep.subr.bf16.mxu1 %v4331_v20  ;;  %v4332_v40 = vld [vmem:[#allocation2 + $0x58] sm:$0xff]  }
 0xd04   :  { %v2477_v31 = vpack.c.bf16 %v2470_v50, %v2468_v32 }
 0xd05   :  { %v4559_v30 = vpop.eup %4558  ;;  %4144 = vmatpush3.bf16.msra.mxu1 %v4331_v20 }
 0xd06   :  { %v2474_v41 = vmul.f32 %v4559_v30, %v5592_v1  ;;  %4133 = vmatprep.mubr.msk.bf16.mxu0 %vm584_vm8, %v2477_v31  ;;  %4145 = vmatprep.subr.bf16.mxu1 %v4332_v40  ;;  %v4333_v1 = vld [vmem:[#allocation2 + $0x50] sm:$0xff]  }
 0xd08   :  { %v2478_v28 = vpack.c.bf16 %v2474_v41, %v2472_v44 }
 0xd09   :  { %4146 = vmatpush3.bf16.msra.mxu1 %v4332_v40  ;;  %v3750_v40 = vld [vmem:[%s5852_s7 + $0x1] ss:$0 sm:$0xff] }
 0xd0a   :  { %4134 = vmatmul.mubr.msk.bf16.gmra.mxu0 %vm584_vm8, %v2478_v28  ;;  %4147 = vmatprep.subr.bf16.mxu1 %v4333_v1 }
 0xd0b   :  { %2911 = vmatprep.mubr.bf16.mxu0 %v4667_v39 }
 0xd0d   :  { %4148 = vmatpush3.bf16.msra.mxu1 %v4333_v1 }
 0xd0e   :  { %4149 = vmatprep.subr.bf16.mxu1 %v4334_v12 }
 0xd11   :  { %4150 = vmatpush3.bf16.msra.mxu1 %v4334_v12 }
 0xd12   :  { %4151 = vmatprep.subr.bf16.mxu1 %v4335_v58 }
 0xd15   :  { %4152 = vmatpush3.bf16.msra.mxu1 %v4335_v58 }
 0xdb2   :  { %v4111_v57 = vpop.f32.mrf.mxu0 }
 0xdb3   :  { %v2281_v56 = vmul.f32 %v4111_v57, %v4937_v47 }
 0xdb4   :  { %v2248_v26 = vpop.f32.mrf.mxu0 }
 0xdb5   :  { %v2279_v16 = vmul.f32 %v4925_v25, %v2248_v26 }
 0xdb6   :  { %v4112_v21 = vpop.f32.mrf.mxu0 }
 0xdb7   :  { %v2283_v27 = vadd.f32 %v2281_v56, %v2279_v16  ;;  %v2282_v11 = vmul.f32 %v4112_v21, %v4937_v47  ;;  %v4336_v16 = vld [vmem:[%s5855_s10 + $0xf0] ss:$8 sps:$4 sm:$0xff]  }
 0xdb8   :  { %v2251_v22 = vpop.f32.mrf.mxu0 }
 0xdb9   :  { %v2280_v8 = vmul.f32 %v4925_v25, %v2251_v22 }
 0xdba   :  { %v4115_v29 = vpop.f32.mrf.mxu0 }
 0xdbb   :  { %v2284_v55 = vadd.f32 %v2282_v11, %v2280_v8  ;;  %v2289_v45 = vmul.f32 %v4115_v29, %v4951_v0 }
 0xdbc   :  { %v2264_v6 = vpop.f32.mrf.mxu0 }
 0xdbd   :  { %v2285_v62 = vmul.f32 %v4940_v49, %v2264_v6 }
 0xdbe   :  { %v4116_v36 = vpop.f32.mrf.mxu0 }
 0xdbf   :  { %v2287_v7 = vadd.f32 %v2285_v62, %v2283_v27  ;;  %v2290_v60 = vmul.f32 %v4116_v36, %v4951_v0 }
 0xdc0   :  { %v2267_v9 = vpop.f32.mrf.mxu0 }
 0xdc1   :  { %v2286_v3 = vmul.f32 %v4940_v49, %v2267_v9  ;;  %v2291_v37 = vadd.f32 %v2289_v45, %v2287_v7 }
 0xdc2   :  { %v4131_v4 = vpop.f32.mrf.mxu0 }
 0xdc3   :  { %v2288_v61 = vadd.f32 %v2286_v3, %v2284_v55  ;;  %v2559_v43 = vmul.f32 %v4131_v4, %v4937_v47 }
 0xdc4   :  { %v2526_v18 = vpop.f32.mrf.mxu0 }
 0xdc5   :  { %v2292_v5 = vadd.f32 %v2290_v60, %v2288_v61  ;;  %v2557_v46 = vmul.f32 %v4925_v25, %v2526_v18  ;;  %v4341_v60 = vld [vmem:[%s5855_s10 + $0xe4] ss:$8 sps:$4 sm:$0xff]   ;;  %v4339_v61 = vld [vmem:[%s5855_s10 + $0xe0] ss:$8 sps:$4 sm:$0xff]   ;;  %v4344_v18 = vld [vmem:[%s5855_s10 + $0xd4] ss:$8 sps:$4 sm:$0xff]  }
 0xdc6   :  { %v4132_v63 = vpop.f32.mrf.mxu0 }
 0xdc7   :  { %v2571_v23 = vpack.c.bf16 %v2292_v5, %v2291_v37  ;;  %v2561_v38 = vadd.f32 %v2559_v43, %v2557_v46  ;;  %v2560_v32 = vmul.f32 %v4132_v63, %v4937_v47  ;;  %v4342_v37 = vld [vmem:[%s5855_s10 + $0xd0] ss:$8 sps:$4 sm:$0xff]   ;;  %v4347_v5 = vld [vmem:[%s5855_s10 + $0xc4] ss:$8 sps:$4 sm:$0xff]   ;;  %v4345_v63 = vld [vmem:[%s5855_s10 + $0xc0] ss:$8 sps:$4 sm:$0xff]  }
 0xdc8   :  { %v2529_v35 = vpop.f32.mrf.mxu0  ;;  %v4351_v46 = vld [vmem:[%s5855_s10 + $0xa0] ss:$8 sps:$4 sm:$0xff]   ;;  %v4354_v43 = vld [vmem:[%s5855_s10 + $0x90] ss:$8 sps:$4 sm:$0xff]  }
 0xdc9   :  { %4153 = vmatprep.mubr.bf16.mxu1 %v2571_v23  ;;  %v2558_v59 = vmul.f32 %v4925_v25, %v2529_v35  ;;  %v4350_v23 = vld [vmem:[%s5855_s10 + $0xb4] ss:$8 sps:$4 sm:$0xff]   ;;  %v4348_v35 = vld [vmem:[%s5855_s10 + $0xb0] ss:$8 sps:$4 sm:$0xff]  }
 0xdca   :  { %v4135_v2 = vpop.f32.mrf.mxu0 }
 0xdcb   :  { %v2562_v30 = vadd.f32 %v2560_v32, %v2558_v59  ;;  %v2567_v41 = vmul.f32 %v4135_v2, %v4951_v0  ;;  %v4353_v2 = vld [vmem:[%s5855_s10 + $0xa4] ss:$8 sps:$4 sm:$0xff]  }
 0xdcc   :  { %v2542_v42 = vpop.f32.mrf.mxu0  ;;  %v4359_v59 = vld [vmem:[%s5855_s10 + $0x84] ss:$8 sps:$4 sm:$0xff]  }
 0xdcd   :  { %v2563_v54 = vmul.f32 %v4940_v49, %v2542_v42  ;;  %v4356_v42 = vld [vmem:[%s5855_s10 + $0x94] ss:$8 sps:$4 sm:$0xff]  }
 0xdce   :  { %v4136_v51 = vpop.f32.mrf.mxu0 }
 0xdcf   :  { %v2565_v31 = vadd.f32 %v2563_v54, %v2561_v38  ;;  %v2568_v28 = vmul.f32 %v4136_v51, %v4951_v0  ;;  %v4357_v54 = vld [vmem:[%s5855_s10 + $0x80] ss:$8 sps:$4 sm:$0xff]  }
 0xdd0   :  { %v2545_v50 = vpop.f32.mrf.mxu0 }
 0xdd1   :  { %v2564_v44 = vmul.f32 %v4940_v49, %v2545_v50  ;;  %v2569_v52 = vadd.f32 %v2567_v41, %v2565_v31 }
 0xdd3   :  { %v2566_v10 = vadd.f32 %v2564_v44, %v2562_v30 }
 0xdd5   :  { %v2570_v53 = vadd.f32 %v2568_v28, %v2566_v10 }
 0xdd7   :  { %v2572_v20 = vpack.c.bf16 %v2570_v53, %v2569_v52 }
 0xdd9   :  { %4154 = vmatmul.mubr.bf16.vlgmr.msra.gmra.mxu1 %v2572_v20 }
 0xe99   :  { %v4155_v25 = vpop.f32.mrf.mxu1 }
 0xe9a   :  { %v2689_v58 = vadd.f32 %v4155_v25, %v3750_v40 }
 0xe9b   :  { %v2680_v47 = vpop.f32.mrf.mxu1 }
 0xe9c   :  { %v2681_v1 = vadd.f32 %v3750_v40, %v2680_v47  ;;  %v2697_v22 = vadd.f32 %v2689_v58, %v5404_v34 }
 0xe9d   :  { %v4156_v12 = vpop.f32.mrf.mxu1 }
 0xe9e   :  { %v2695_v49 = vadd.f32 %v2681_v1, %v5395_v13  ;;  %v2692_v0 = vadd.f32 %v4156_v12, %v3750_v40  ;;  %v4338_v13 = vld [vmem:[%s5855_s10 + $0xf4] ss:$8 sps:$4 sm:$0xff]  }
 0xe9f   :  { %v2683_v57 = vpop.f32.mrf.mxu1  ;;  %2879 = vmatprep.subr.bf16.mxu0 %v4338_v13 }
 0xea0   :  { %v2684_v26 = vadd.f32 %v3750_v40, %v2683_v57  ;;  %2703 = vadd.xlane.f32.xlu0 %v2695_v49  ;;  %v2698_v29 = vadd.f32 %v2692_v0, %v5406_v33  ;;  %2880 = vmatpush1.bf16.msra.mxu0 %v4336_v16  ;;  %v3761_v40 = vld [vmem:[%s5853_s8 + $0x1] ss:$0 sm:$0xff] }
 0xea1   :  { %2881 = vmatprep.subr.bf16.mxu0 %v4341_v60  ;;  %v4373_v60 = vld [vmem:[#allocation4 + $0x88] sm:$0xff]  }
 0xea2   :  { %v2696_v21 = vadd.f32 %v2684_v26, %v5397_v48 }
 0xea4   :  { %2705 = vadd.xlane.f32.xlu1 %v2696_v21  ;;  %2707 = vadd.xlane.f32.xlu0 %v2697_v22 }
 0xea5   :  { %2882 = vmatpush1.bf16.msra.mxu0 %v4339_v61  ;;  %v4374_v61 = vld [vmem:[#allocation4 + $0xc0] sm:$0xff]  }
 0xea6   :  { %2883 = vmatprep.subr.bf16.mxu0 %v4344_v18  ;;  %v4375_v18 = vld [vmem:[#allocation4 + $0x80] sm:$0xff]  }
 0xea8   :  { %2709 = vadd.xlane.f32.xlu1 %v2698_v29 }
 0xea9   :  { %2884 = vmatpush1.bf16.msra.mxu0 %v4342_v37  ;;  %v3779_v37 = vld [vmem:[%s5856_s11 + $0x2] sm:$0x3] }
 0xeaa   :  { %2885 = vmatprep.subr.bf16.mxu0 %v4347_v5  ;;  %v2792_v5 = vrot.slane %v3779_v37, %v4911_v15 }
 0xead   :  { %2886 = vmatpush1.bf16.msra.mxu0 %v4345_v63  ;;  %v2796_v63 = vrot.slane %v3779_v37, %v4920_v19 }
 0xeae   :  { %2887 = vmatprep.subr.bf16.mxu0 %v4350_v23 }
 0xeb1   :  { %2888 = vmatpush1.bf16.msra.mxu0 %v4348_v35 }
 0xeb2   :  { %2889 = vmatprep.subr.bf16.mxu0 %v4353_v2 }
 0xeb5   :  { %2890 = vmatpush1.bf16.msra.mxu0 %v4351_v46 }
 0xeb6   :  { %2891 = vmatprep.subr.bf16.mxu0 %v4356_v42 }
 0xeb9   :  { %2892 = vmatpush1.bf16.msra.mxu0 %v4354_v43 }
 0xeba   :  { %2893 = vmatprep.subr.bf16.mxu0 %v4359_v59 }
 0xebd   :  { %2894 = vmatpush1.bf16.msra.mxu0 %v4357_v54 }
 0xebe   :  { %4157 = vmatprep.subr.mxu0 %v4668_v24 }
 0xf29   :  { %v2704_v6 = vpop.xlane.xlu0 %2703 }
 0xf2a   :  { %v2711_v56 = vmul.f32 0.0078125, %v2704_v6 }
 0xf2c   :  { %v5651_v48 = vsub.f32 %v2695_v49, %v2711_v56  ;;  %v3762_v49 = vld [vmem:[%s5854_s9 + $0x1] ss:$0 sm:$0xff] }
 0xf2d   :  { %v2706_v34 = vpop.xlane.xlu1 %2705  ;;  %v2708_v8 = vpop.xlane.xlu0 %2707 }
 0xf2e   :  { %v2712_v62 = vmul.f32 0.0078125, %v2706_v34  ;;  %v2713_v36 = vmul.f32 0.0078125, %v2708_v8  ;;  %v2719_v33 = vmul.f32 %v5651_v48, %v5651_v48  ;;  %v4360_v8 = vld [vmem:[#allocation4 + $0xf8] sm:$0xff]  }
 0xf2f   :  { %3946 = vmatprep.subr.bf16.mxu1 %v4360_v8 }
 0xf30   :  { %v2716_v27 = vsub.f32 %v2696_v21, %v2712_v62  ;;  %v5655_v11 = vsub.f32 %v2697_v22, %v2713_v36  ;;  %2723 = vadd.xlane.f32.xlu0 %v2719_v33  ;;  %v4361_v62 = vld [vmem:[#allocation4 + $0xb8] sm:$0xff]   ;;  %v4362_v36 = vld [vmem:[#allocation4 + $0xf0] sm:$0xff]  }
 0xf31   :  { %v2710_v9 = vpop.xlane.xlu1 %2709  ;;  %3947 = vmatpush3.bf16.msra.mxu1 %v4361_v62  ;;  %v4363_v33 = vld [vmem:[#allocation4 + $0xb0] sm:$0xff]  }
 0xf32   :  { %v2714_v55 = vmul.f32 0.0078125, %v2710_v9  ;;  %v2720_v7 = vmul.f32 %v2716_v27, %v2716_v27  ;;  %v2721_v3 = vmul.f32 %v5655_v11, %v5655_v11  ;;  %3948 = vmatprep.subr.bf16.mxu1 %v4362_v36  ;;  %v4367_v9 = vld [vmem:[#allocation4 + $0xa0] sm:$0xff]  }
 0xf34   :  { %v5659_v4 = vsub.f32 %v2698_v29, %v2714_v55  ;;  %2725 = vadd.xlane.f32.xlu1 %v2720_v7  ;;  %2727 = vadd.xlane.f32.xlu0 %v2721_v3  ;;  %v4368_v55 = vld [vmem:[#allocation4 + $0xd8] sm:$0xff]   ;;  %v4370_v3 = vld [vmem:[#allocation4 + $0xd0] sm:$0xff]  }
 0xf35   :  { %3949 = vmatpush3.bf16.msra.mxu1 %v4363_v33  ;;  %v4369_v7 = vld [vmem:[#allocation4 + $0x98] sm:$0xff]  }
 0xf36   :  { %v2722_v45 = vmul.f32 %v5659_v4, %v5659_v4 }
 0xf38   :  { %2729 = vadd.xlane.f32.xlu1 %v2722_v45  ;;  %v4372_v45 = vld [vmem:[#allocation4 + $0xc8] sm:$0xff]  }
 0xfb9   :  { %v2724_v51 = vpop.xlane.xlu0 %2723 }
 0xfba   :  { %v2731_v38 = vmul.f32 0.0078125, %v2724_v51 }
 0xfbc   :  { %v2735_v32 = vadd.f32 1e-05, %v2731_v38 }
 0xfbd   :  { %v2726_v50 = vpop.xlane.xlu1 %2725  ;;  %v2728_v30 = vpop.xlane.xlu0 %2727 }
 0xfbe   :  { %4560 = vrsqrt.f32 %v2735_v32  ;;  %v2732_v31 = vmul.f32 0.0078125, %v2726_v50  ;;  %v2733_v44 = vmul.f32 0.0078125, %v2728_v30 }
 0xfc0   :  { %v2736_v41 = vadd.f32 1e-05, %v2732_v31  ;;  %v2737_v28 = vadd.f32 1e-05, %v2733_v44 }
 0xfc1   :  { %v2730_v10 = vpop.xlane.xlu1 %2729 }
 0xfc2   :  { %4562 = vrsqrt.f32 %v2736_v41  ;;  %v2734_v52 = vmul.f32 0.0078125, %v2730_v10 }
 0xfc3   :  { %4564 = vrsqrt.f32 %v2737_v28 }
 0xfc4   :  { %v2738_v53 = vadd.f32 1e-05, %v2734_v52 }
 0xfc6   :  { %4566 = vrsqrt.f32 %v2738_v53 }
 0xfcb   :  { %v4561_v20 = vpop.eup %4560 }
 0xfcc   :  { %v2743_v25 = vmul.f32 %v4561_v20, %v5651_v48 }
 0xfce   :  { %v2753_v12 = vmul.f32 %v3761_v40, %v2743_v25 }
 0xfcf   :  { %v4563_v47 = vpop.eup %4562 }
 0xfd0   :  { %v2744_v1 = vmul.f32 %v4563_v47, %v2716_v27  ;;  %v4565_v58 = vpop.eup %4564  ;;  %v5713_v0 = vadd.f32 %v3762_v49, %v2753_v12  ;;  %v4364_v27 = vld [vmem:[#allocation4 + $0xe8] sm:$0xff]  }
 0xfd1   :  { %v2745_v22 = vmul.f32 %v4565_v58, %v5655_v11  ;;  %v4365_v11 = vld [vmem:[#allocation4 + $0xa8] sm:$0xff]   ;;  %3950 = vmatprep.subr.bf16.mxu1 %v4364_v27 }
 0xfd2   :  { %v2754_v57 = vmul.f32 %v3761_v40, %v2744_v1  ;;  %3951 = vmatpush3.bf16.msra.mxu1 %v4365_v11 }
 0xfd3   :  { %v4567_v26 = vpop.eup %4566  ;;  %v2755_v6 = vmul.f32 %v3761_v40, %v2745_v22 }
 0xfd4   :  { %v5715_v21 = vadd.f32 %v3762_v49, %v2754_v57  ;;  %v2746_v29 = vmul.f32 %v4567_v26, %v5659_v4  ;;  %v4371_v4 = vld [vmem:[#allocation4 + $0x90] sm:$0xff]  }
 0xfd5   :  { %v5724_v48 = vadd.f32 %v3762_v49, %v2755_v6 }
 0xfd6   :  { %v2767_v16 = vpack.c.bf16 %v5715_v21, %v5713_v0  ;;  %v2756_v13 = vmul.f32 %v3761_v40, %v2746_v29 }
 0xfd8   :  { %2912 = vmatmul.mubr.bf16.vlgmr.msra.gmra.mxu0 %v2767_v16  ;;  %v5722_v56 = vadd.f32 %v3762_v49, %v2756_v13 }
 0xfd9   :  { %2921 = vmatprep.mubr.bf16.mxu0 %v4667_v39  ;;  %v4366_v39 = vld [vmem:[#allocation4 + $0xe0] sm:$0xff]  }
 0xfda   :  { %v2768_v34 = vpack.c.bf16 %v5722_v56, %v5724_v48  ;;  %3952 = vmatprep.subr.bf16.mxu1 %v4366_v39 }
 0xfdb   :  { %3953 = vmatpush3.bf16.msra.mxu1 %v4367_v9 }
 0xfdc   :  { %3954 = vmatprep.subr.bf16.mxu1 %v4368_v55 }
 0xfdf   :  { %3955 = vmatpush3.bf16.msra.mxu1 %v4369_v7 }
 0xfe0   :  { %2922 = vmatmul.mubr.bf16.gmra.mxu0 %v2768_v34  ;;  %3956 = vmatprep.subr.bf16.mxu1 %v4370_v3 }
 0xfe1   :  { %4165 = vmatprep.mubr.msk.f32.mxu0 %vm4669_vm9, %v4668_v24 }
 0xfe3   :  { %3957 = vmatpush3.bf16.msra.mxu1 %v4371_v4 }
 0xfe4   :  { %3958 = vmatprep.subr.bf16.mxu1 %v4372_v45 }
 0xfe7   :  { %3959 = vmatpush3.bf16.msra.mxu1 %v4373_v60 }
 0xfe8   :  { %3960 = vmatprep.subr.bf16.mxu1 %v4374_v61 }
 0xfeb   :  { %3961 = vmatpush3.bf16.msra.mxu1 %v4375_v18 }
 0xfec   :  { %4188 = vmatprep.subr.bf16.mxu1 %v4668_v24 }
0x1098   :  { %v2913_v23 = vpop.f32.mrf.mxu0 }
0x1099   :  { %v5734_v35 = vadd.f32 %v2913_v23, %v2792_v5 }
0x109a   :  { %v2915_v2 = vpop.f32.mrf.mxu0 }
0x109b   :  { %v2940_v46 = vmul.f32 0.044715, %v5734_v35  ;;  %v5737_v42 = vadd.f32 %v2915_v2, %v2796_v63 }
0x109c   :  { %v2917_v43 = vpop.f32.mrf.mxu0 }
0x109d   :  { %v2948_v59 = vmul.f32 %v2940_v46, %v5734_v35  ;;  %v2941_v54 = vmul.f32 0.044715, %v5737_v42  ;;  %v2918_v51 = vadd.f32 %v2917_v43, %v2792_v5 }
0x109e   :  { %v2919_v38 = vpop.f32.mrf.mxu0 }
0x109f   :  { %v2956_v32 = vmul.f32 %v2948_v59, %v5734_v35  ;;  %v2949_v15 = vmul.f32 %v2941_v54, %v5737_v42  ;;  %v2942_v19 = vmul.f32 0.044715, %v2918_v51  ;;  %v2920_v50 = vadd.f32 %v2919_v38, %v2796_v63 }
0x10a0   :  { %v2923_v30 = vpop.f32.mrf.mxu0  ;;  %v2934_v54 = vmul.f32 0.5, %v2918_v51 }
0x10a1   :  { %v2964_v31 = vadd.f32 %v2956_v32, %v5734_v35  ;;  %v2957_v44 = vmul.f32 %v2949_v15, %v5737_v42  ;;  %v2950_v41 = vmul.f32 %v2942_v19, %v2918_v51  ;;  %v2943_v28 = vmul.f32 0.044715, %v2920_v50 }
0x10a2   :  { %v5745_v10 = vadd.f32 %v2923_v30, %v2792_v5  ;;  %v2925_v52 = vpop.f32.mrf.mxu0  ;;  %v2933_v32 = vmul.f32 0.5, %v5737_v42  ;;  %v2935_v15 = vmul.f32 0.5, %v2920_v50  ;;  %v2932_v30 = vmul.f32 0.5, %v5734_v35 }
0x10a3   :  { %v2972_v53 = vmul.f32 0.7978846, %v2964_v31  ;;  %v2958_v20 = vmul.f32 %v2950_v41, %v2918_v51  ;;  %v2951_v25 = vmul.f32 %v2943_v28, %v2920_v50  ;;  %v5747_v40 = vadd.f32 %v2925_v52, %v2796_v63 }
0x10a4   :  { %v2944_v47 = vmul.f32 0.044715, %v5745_v10  ;;  %v2927_v1 = vpop.f32.mrf.mxu0  ;;  %v2965_v12 = vadd.f32 %v2957_v44, %v5737_v42 }
0x10a5   :  { %v2966_v58 = vadd.f32 %v2958_v20, %v2918_v51  ;;  %v2959_v49 = vmul.f32 %v2951_v25, %v2920_v50  ;;  %v2945_v57 = vmul.f32 0.044715, %v5747_v40  ;;  %4568 = vtanh.f32 %v2972_v53 }
0x10a6   :  { %v2952_v26 = vmul.f32 %v2944_v47, %v5745_v10  ;;  %v2928_v22 = vadd.f32 %v2927_v1, %v2792_v5  ;;  %v2929_v29 = vpop.f32.mrf.mxu0  ;;  %v2973_v16 = vmul.f32 0.7978846, %v2965_v12 }
0x10a7   :  { %v2974_v13 = vmul.f32 0.7978846, %v2966_v58  ;;  %v2953_v6 = vmul.f32 %v2945_v57, %v5747_v40  ;;  %v2930_v34 = vadd.f32 %v2929_v29, %v2796_v63  ;;  %v2967_v8 = vadd.f32 %v2959_v49, %v2920_v50 }
0x10a8   :  { %v2960_v62 = vmul.f32 %v2952_v26, %v5745_v10  ;;  %v2946_v36 = vmul.f32 0.044715, %v2928_v22  ;;  %4570 = vtanh.f32 %v2973_v16  ;;  %v2938_v51 = vmul.f32 0.5, %v2928_v22 }
0x10a9   :  { %4572 = vtanh.f32 %v2974_v13  ;;  %v2961_v33 = vmul.f32 %v2953_v6, %v5747_v40  ;;  %v2947_v27 = vmul.f32 0.044715, %v2930_v34  ;;  %v2975_v11 = vmul.f32 0.7978846, %v2967_v8 }
0x10aa   :  { %v2954_v39 = vmul.f32 %v2946_v36, %v2928_v22  ;;  %v2968_v9 = vadd.f32 %v2960_v62, %v5745_v10  ;;  %v2937_v50 = vmul.f32 0.5, %v5747_v40  ;;  %v2939_v49 = vmul.f32 0.5, %v2930_v34 }
0x10ab   :  { %v2955_v55 = vmul.f32 %v2947_v27, %v2930_v34  ;;  %4574 = vtanh.f32 %v2975_v11  ;;  %v2969_v7 = vadd.f32 %v2961_v33, %v5747_v40  ;;  %v2936_v57 = vmul.f32 0.5, %v5745_v10  ;;  %v3797_v10 = vld [vmem:[%s5858_s13 + $0x1] ss:$0 sm:$0xff] }
0x10ac   :  { %v2962_v3 = vmul.f32 %v2954_v39, %v2928_v22  ;;  %v2976_v4 = vmul.f32 0.7978846, %v2968_v9 }
0x10ad   :  { %v2963_v45 = vmul.f32 %v2955_v55, %v2930_v34  ;;  %v2977_v60 = vmul.f32 0.7978846, %v2969_v7 }
0x10ae   :  { %v2970_v61 = vadd.f32 %v2962_v3, %v2928_v22 }
0x10af   :  { %v2971_v18 = vadd.f32 %v2963_v45, %v2930_v34  ;;  %4576 = vtanh.f32 %v2977_v60 }
0x10b0   :  { %v2978_v37 = vmul.f32 0.7978846, %v2970_v61  ;;  %4578 = vtanh.f32 %v2976_v4 }
0x10b1   :  { %v2979_v5 = vmul.f32 0.7978846, %v2971_v18 }
0x10b2   :  { %4580 = vtanh.f32 %v2978_v37  ;;  %v4569_v63 = vpop.eup %4568 }
0x10b3   :  { %4582 = vtanh.f32 %v2979_v5  ;;  %v2988_v38 = vadd.f32 1.0, %v4569_v63 }
0x10b5   :  { %v4571_v23 = vpop.eup %4570  ;;  %v2996_v52 = vmul.f32 %v2988_v38, %v2932_v30 }
0x10b6   :  { %v4573_v2 = vpop.eup %4572  ;;  %v2989_v46 = vadd.f32 1.0, %v4571_v23 }
0x10b7   :  { %v2990_v43 = vadd.f32 1.0, %v4573_v2 }
0x10b8   :  { %v4575_v59 = vpop.eup %4574  ;;  %v2997_v44 = vmul.f32 %v2989_v46, %v2933_v32 }
0x10b9   :  { %v2991_v19 = vadd.f32 1.0, %v4575_v59  ;;  %v2998_v31 = vmul.f32 %v2990_v43, %v2934_v54 }
0x10bb   :  { %v2999_v41 = vmul.f32 %v2991_v19, %v2935_v15  ;;  %v3004_v25 = vpack.c.bf16 %v2998_v31, %v2996_v52 }
0x10bc   :  { %v4577_v28 = vpop.eup %4576 }
0x10bd   :  { %v4579_v53 = vpop.eup %4578  ;;  %v3005_v20 = vpack.c.bf16 %v2999_v41, %v2997_v44  ;;  %v2993_v1 = vadd.f32 1.0, %v4577_v28 }
0x10be   :  { %v2992_v58 = vadd.f32 1.0, %v4579_v53 }
0x10bf   :  { %v4581_v47 = vpop.eup %4580  ;;  %3177 = vmatprep.mubr.bf16.mxu1 %v3005_v20  ;;  %v3001_v29 = vmul.f32 %v2993_v1, %v2937_v50 }
0x10c0   :  { %v4583_v12 = vpop.eup %4582  ;;  %3178 = vmatmul.mubr.bf16.vlgmr.msra.gmra.mxu1 %v3004_v25  ;;  %v2994_v42 = vadd.f32 1.0, %v4581_v47  ;;  %v3000_v13 = vmul.f32 %v2992_v58, %v2936_v57 }
0x10c1   :  { %v2995_v35 = vadd.f32 1.0, %v4583_v12 }
0x10c2   :  { %v3002_v26 = vmul.f32 %v2994_v42, %v2938_v51 }
0x10c3   :  { %v3003_v16 = vmul.f32 %v2995_v35, %v2939_v49  ;;  %v3816_v49 = vld [vmem:[%s5859_s14 + $0x1] ss:$0 sm:$0xff] }
0x10c4   :  { %v3006_v8 = vpack.c.bf16 %v3002_v26, %v3000_v13 }
0x10c5   :  { %v3007_v6 = vpack.c.bf16 %v3003_v16, %v3001_v29 }
0x10c7   :  { %3185 = vmatprep.mubr.bf16.mxu1 %v3007_v6  ;;  %v3817_v6 = vld [vmem:[%s5860_s15 + $0x1] ss:$0 sm:$0xff] }
0x10c8   :  { %3186 = vmatmul.mubr.bf16.gmra.mxu1 %v3006_v8  ;;  %v3268_v8 = vmul.u32 16, %v4908_v14  ;;  %v4376_v14 = vld [vmem:[%s5861_s16 + $0x38] sm:$0xff]  }
0x10c9   :  { %4204 = vmatprep.mubr.msk.bf16.mxu1 %vm4669_vm9, %v4668_v24 }
0x10ca   :  { %vm3269_vm10 = vcmp.eq.s32.totalorder %v4916_v17, %v3268_v8 }
0x1180   :  { %v3962_v62 = vpop.f32.mrf.mxu1 }
0x1182   :  { %v3963_v36 = vpop.f32.mrf.mxu1 }
0x1183   :  { %v3964_v39 = vadd.f32 %v3963_v36, %v3962_v62 }
0x1184   :  { %v3965_v33 = vpop.f32.mrf.mxu1 }
0x1185   :  { %v3180_v7 = vadd.f32 %v3964_v39, %v3797_v10 }
0x1186   :  { %v3966_v22 = vpop.f32.mrf.mxu1 }
0x1187   :  { %v3967_v3 = vadd.f32 %v3966_v22, %v3965_v33  ;;  %v3194_v37 = vadd.f32 %v3180_v7, %v5713_v0  ;;  %v4381_v7 = vld [vmem:[%s5861_s16 + $0x10] sm:$0xff]  }
0x1188   :  { %v3968_v27 = vpop.f32.mrf.mxu1 }
0x1189   :  { %v3183_v61 = vadd.f32 %v3967_v3, %v3797_v10  ;;  %v4382_v3 = vld [vmem:[%s5861_s16 + $0x8] sm:$0xff]  }
0x118a   :  { %v3969_v11 = vpop.f32.mrf.mxu1 }
0x118b   :  { %v3970_v40 = vadd.f32 %v3969_v11, %v3968_v27  ;;  %v3195_v5 = vadd.f32 %v3183_v61, %v5715_v21  ;;  %v4386_v61 = vld [vmem:[#allocation6 + $0x28] sm:$0xff]  }
0x118c   :  { %v3971_v34 = vpop.f32.mrf.mxu1 }
0x118d   :  { %v3188_v9 = vadd.f32 %v3970_v40, %v3797_v10  ;;  %v3818_v40 = vsel %vm3269_vm10, 1.0, %v4668_v24 }
0x118e   :  { %v3972_v55 = vpop.f32.mrf.mxu1 }
0x118f   :  { %v3973_v4 = vadd.f32 %v3972_v55, %v3971_v34  ;;  %v3196_v45 = vadd.f32 %v3188_v9, %v5724_v48  ;;  %v4378_v34 = vld [vmem:[%s5861_s16 + $0x28] sm:$0xff]   ;;  %v4379_v9 = vld [vmem:[%s5861_s16 + $0x20] sm:$0xff]   ;;  %v4380_v55 = vld [vmem:[%s5861_s16 + $0x18] sm:$0xff]  }
0x1191   :  { %v3191_v60 = vadd.f32 %v3973_v4, %v3797_v10  ;;  %3206 = vadd.xlane.f32.xlu1 %v3196_v45  ;;  %v4377_v10 = vld [vmem:[%s5861_s16 + $0x30] sm:$0xff]   ;;  %v4383_v4 = vld [vmem:[%s5861_s16] sm:$0xff]  }
0x1193   :  { %v3197_v18 = vadd.f32 %v3191_v60, %v5722_v56  ;;  %v4385_v60 = vld [vmem:[#allocation6 + $0x30] sm:$0xff]  }
0x1195   :  { %3208 = vadd.xlane.f32.xlu0 %v3197_v18  ;;  %3202 = vadd.xlane.f32.xlu1 %v3194_v37 }
0x1199   :  { %3204 = vadd.xlane.f32.xlu0 %v3195_v5 }
0x121a   :  { %v3207_v63 = vpop.xlane.xlu1 %3206 }
0x121b   :  { %v3212_v23 = vmul.f32 0.0078125, %v3207_v63  ;;  %v4387_v63 = vld [vmem:[#allocation6 + $0x20] sm:$0xff]  }
0x121d   :  { %v3216_v2 = vsub.f32 %v3196_v45, %v3212_v23  ;;  %v4384_v45 = vld [vmem:[#allocation6 + $0x38] sm:$0xff]  }
0x121e   :  { %v3209_v46 = vpop.xlane.xlu0 %3208  ;;  %v3203_v43 = vpop.xlane.xlu1 %3202  ;;  %4189 = vmatpush3.bf16.msra.mxu1 %v4384_v45  ;;  %v4388_v23 = vld [vmem:[#allocation6 + $0x18] sm:$0xff]  }
0x121f   :  { %v3213_v59 = vmul.f32 0.0078125, %v3209_v46  ;;  %v3210_v54 = vmul.f32 0.0078125, %v3203_v43  ;;  %v3220_v48 = vmul.f32 %v3216_v2, %v3216_v2  ;;  %4190 = vmatprep.subr.bf16.mxu1 %v4668_v24  ;;  %v4390_v46 = vld [vmem:[#allocation6 + $0x8] sm:$0xff]   ;;  %v4391_v43 = vld [vmem:[#allocation6] sm:$0xff]  }
0x1221   :  { %v3217_v38 = vsub.f32 %v3197_v18, %v3213_v59  ;;  %v3214_v32 = vsub.f32 %v3194_v37, %v3210_v54  ;;  %3226 = vadd.xlane.f32.xlu1 %v3220_v48  ;;  %v3820_v59 = vld [vmem:[%s5862_s17] ss:$0 sm:$0xff] }
0x1222   :  { %v3205_v15 = vpop.xlane.xlu0 %3204  ;;  %4191 = vmatpush3.bf16.msra.mxu1 %v4385_v60 }
0x1223   :  { %v3211_v56 = vmul.f32 0.0078125, %v3205_v15  ;;  %v3221_v19 = vmul.f32 %v3217_v38, %v3217_v38  ;;  %v3218_v0 = vmul.f32 %v3214_v32, %v3214_v32  ;;  %4192 = vmatprep.subr.bf16.mxu1 %v4668_v24 }
0x1225   :  { %v3215_v30 = vsub.f32 %v3195_v5, %v3211_v56  ;;  %3228 = vadd.xlane.f32.xlu0 %v3221_v19  ;;  %3222 = vadd.xlane.f32.xlu1 %v3218_v0  ;;  %v3829_v0 = vld [vmem:[%s5864_s19] ss:$0 sm:$0xff] }
0x1226   :  { %4193 = vmatpush3.bf16.msra.mxu1 %v4386_v61 }
0x1227   :  { %v3219_v21 = vmul.f32 %v3215_v30, %v3215_v30  ;;  %4194 = vmatprep.subr.bf16.mxu1 %v4668_v24 }
0x1229   :  { %3224 = vadd.xlane.f32.xlu0 %v3219_v21 }
0x122a   :  { %4195 = vmatpush3.bf16.msra.mxu1 %v4387_v63 }
0x122b   :  { %4196 = vmatprep.subr.bf16.mxu1 %v4668_v24 }
0x122e   :  { %4197 = vmatpush3.bf16.msra.mxu1 %v4388_v23 }
0x122f   :  { %4198 = vmatprep.subr.bf16.mxu1 %v4668_v24 }
0x12aa   :  { %v3227_v31 = vpop.xlane.xlu1 %3226 }
0x12ab   :  { %v3232_v44 = vmul.f32 0.0078125, %v3227_v31 }
0x12ad   :  { %v3236_v41 = vadd.f32 1e-05, %v3232_v44 }
0x12ae   :  { %v3229_v28 = vpop.xlane.xlu0 %3228  ;;  %v3223_v52 = vpop.xlane.xlu1 %3222 }
0x12af   :  { %4584 = vrsqrt.f32 %v3236_v41  ;;  %v3233_v53 = vmul.f32 0.0078125, %v3229_v28  ;;  %v3230_v20 = vmul.f32 0.0078125, %v3223_v52 }
0x12b1   :  { %v3237_v25 = vadd.f32 1e-05, %v3233_v53  ;;  %v3234_v47 = vadd.f32 1e-05, %v3230_v20 }
0x12b2   :  { %v3225_v1 = vpop.xlane.xlu0 %3224 }
0x12b3   :  { %4586 = vrsqrt.f32 %v3237_v25  ;;  %v3231_v12 = vmul.f32 0.0078125, %v3225_v1 }
0x12b4   :  { %4588 = vrsqrt.f32 %v3234_v47 }
0x12b5   :  { %v3235_v51 = vadd.f32 1e-05, %v3231_v12 }
0x12b7   :  { %4590 = vrsqrt.f32 %v3235_v51 }
0x12bc   :  { %v4585_v58 = vpop.eup %4584 }
0x12bd   :  { %v3244_v42 = vmul.f32 %v4585_v58, %v3216_v2  ;;  %v4389_v2 = vld [vmem:[#allocation6 + $0x10] sm:$0xff]  }
0x12be   :  { %4199 = vmatpush3.bf16.msra.mxu1 %v4389_v2 }
0x12bf   :  { %v3254_v29 = vmul.f32 %v3816_v49, %v3244_v42  ;;  %4200 = vmatprep.subr.bf16.mxu1 %v4668_v24 }
0x12c0   :  { %v4587_v50 = vpop.eup %4586 }
0x12c1   :  { %v4589_v35 = vpop.eup %4588  ;;  %v3245_v57 = vmul.f32 %v4587_v50, %v3217_v38  ;;  %v3264_v33 = vadd.f32 %v3817_v6, %v3254_v29 }
0x12c2   :  { %v3242_v16 = vmul.f32 %v4589_v35, %v3214_v32  ;;  %4201 = vmatpush3.bf16.msra.mxu1 %v4390_v46 }
0x12c3   :  { %v3255_v26 = vmul.f32 %v3816_v49, %v3245_v57  ;;  %4202 = vmatprep.subr.bf16.mxu1 %v4668_v24 }
0x12c4   :  { %v4591_v13 = vpop.eup %4590  ;;  %v3252_v27 = vmul.f32 %v3816_v49, %v3242_v16 }
0x12c5   :  { %v3265_v62 = vadd.f32 %v3817_v6, %v3255_v26  ;;  %v3243_v36 = vmul.f32 %v4591_v13, %v3215_v30 }
0x12c6   :  { %v3262_v39 = vadd.f32 %v3817_v6, %v3252_v27  ;;  %4203 = vmatpush3.bf16.msra.mxu1 %v4391_v43 }
0x12c7   :  { %4158 = vmatpush3.msra.mxu0 %v3265_v62  ;;  %v3253_v22 = vmul.f32 %v3816_v49, %v3243_v36 }
0x12c8   :  { %4159 = vmatprep.subr.mxu0 %v4668_v24 }
0x12c9   :  { %4160 = vmatpush3.msra.mxu0 %v3264_v33  ;;  %v3263_v11 = vadd.f32 %v3817_v6, %v3253_v22 }
0x12ca   :  { %4161 = vmatprep.subr.mxu0 %v4668_v24 }
0x12cb   :  { %4162 = vmatpush3.msra.mxu0 %v3263_v11 }
0x12cc   :  { %4163 = vmatprep.subr.mxu0 %v4668_v24 }
0x12cd   :  { %4164 = vmatpush3.msra.mxu0 %v3262_v39 }
0x12ce   :  { %4166 = vmatmul.mubr.msk.f32.vlgmr.msra.gmra.mxu0 %vm3272_vm11, %v3818_v40  ;;  %4168 = vmatprep.subr.bf16.mxu0 %v4668_v24 }
0x12cf   :  { %4169 = vmatpush3.bf16.msra.mxu0 %v4376_v14  ;;  %4184 = vmatprep.mubr.msk.bf16.mxu0 %vm4669_vm9, %v4668_v24 }
0x12d0   :  { %4170 = vmatprep.subr.bf16.mxu0 %v4668_v24 }
0x12d3   :  { %4171 = vmatpush3.bf16.msra.mxu0 %v4377_v10 }
0x12d4   :  { %4172 = vmatprep.subr.bf16.mxu0 %v4668_v24 }
0x12d7   :  { %4173 = vmatpush3.bf16.msra.mxu0 %v4378_v34 }
0x12d8   :  { %4174 = vmatprep.subr.bf16.mxu0 %v4668_v24 }
0x12db   :  { %4175 = vmatpush3.bf16.msra.mxu0 %v4379_v9 }
0x12dc   :  { %4176 = vmatprep.subr.bf16.mxu0 %v4668_v24 }
0x12df   :  { %4177 = vmatpush3.bf16.msra.mxu0 %v4380_v55 }
0x12e0   :  { %4178 = vmatprep.subr.bf16.mxu0 %v4668_v24 }
0x12e3   :  { %4179 = vmatpush3.bf16.msra.mxu0 %v4381_v7 }
0x12e4   :  { %4180 = vmatprep.subr.bf16.mxu0 %v4668_v24 }
0x12e7   :  { %4181 = vmatpush3.bf16.msra.mxu0 %v4382_v3 }
0x12e8   :  { %4182 = vmatprep.subr.bf16.mxu0 %v4668_v24 }
0x12eb   :  { %4183 = vmatpush3.bf16.msra.mxu0 %v4383_v4 }
0x138e   :  { %v3342_v18 = vpop.f32.mrf.mxu0 }
0x138f   :  { %v3346_v37 = vpack.c.bf16 %v3342_v18, %v3342_v18 }
0x1390   :  { %v4167_v5 = vpop.f32.mrf.mxu0 }
0x1391   :  { %4185 = vmatmul.mubr.bf16.vlgmr.msra.gmra.mxu0 %v3346_v37 }
0x1451   :  { %v3452_v54 = vpop.f32.mrf.mxu0 }
0x1452   :  { %v3453_v48 = vadd.f32 %v3820_v59, %v3452_v54 }
0x1453   :  { %v4186_v38 = vpop.f32.mrf.mxu0 }
0x1454   :  { %4592 = vtanh.f32 %v3453_v48 }
0x1455   :  { %v3455_v32 = vpop.f32.mrf.mxu0 }
0x1457   :  { %v4187_v15 = vpop.f32.mrf.mxu0 }
0x1461   :  { %v4593_v56 = vpop.eup %4592 }
0x1462   :  { %v3459_v19 = vpack.c.bf16 %v4593_v56, %v4593_v56 }
0x1464   :  { %4205 = vmatmul.mubr.bf16.vlgmr.msra.gmra.mxu1 %v3459_v19 }
0x1524   :  { %v3565_v24 = vpop.f32.mrf.mxu1 }
0x1525   :  { %v3566_v30 = vadd.f32 %v3829_v0, %v3565_v24 }
0x1526   :  { %v4206_v21 = vpop.f32.mrf.mxu1 }
0x1527   :  { %v3572_v31 = vsel %vm3571_vm12, %v3566_v30, -1e+30 }
0x1528   :  { %v3574_v44 = vsel %vm3573_vm13, %v3572_v31, -inf  ;;  %v3568_v41 = vpop.f32.mrf.mxu1 }
0x1529   :  { %3575 = vmax.xlane.f32.xlu0 %v3574_v44 }
0x152a   :  { %v4207_v28 = vpop.f32.mrf.mxu1 }
0x15b2   :  { %v3576_v52 = vpop.xlane.xlu0 %3575 }
0x15b3   :  { %v3577_v53 = vsub.f32 %v3572_v31, %v3576_v52 }
0x15b5   :  { %v3578_v20 = vmul.f32 1.442695, %v3577_v53 }
0x15b7   :  { %4594 = vpow2.f32 %v3578_v20 }
0x15c4   :  { %v4595_v25 = vpop.eup %4594 }
0x15c5   :  { %v3580_v47 = vsel %vm3571_vm12, %v4595_v25, 0.0 }
0x15c6   :  { %v3581_v1 = vsel %vm3573_vm13, %v3580_v47, 0.0 }
0x15c7   :  { %3582 = vadd.xlane.f32.xlu1 %v3581_v1 }
0x1650   :  { %v3583_v12 = vpop.xlane.xlu1 %3582 }
0x1651   :  { %4596 = vlog2.f32 %v3583_v12 }
0x165e   :  { %v4597_v51 = vpop.eup %4596 }
0x165f   :  { %v3585_v58 = vmul.f32 0.6931472, %v4597_v51 }
0x1661   :  { %v3586_v42 = vadd.f32 %v3585_v58, %v3576_v52 }
0x1663   :  { %v3587_v50 = vsub.f32 %v3566_v30, %v3586_v42 }
0x1665   :  { %v3588_v49 = vsel %vm3571_vm12, %v3587_v50, 0.0 }
0x1666   :  { %v3589_v35 = vsel %vm3573_vm13, %v3588_v49, 0.0 }
0x1667   :  { %3590 = vadd.xlane.f32.xlu0 %v3589_v35 }
0x16f0   :  { %v3591_v57 = vpop.xlane.xlu0 %3590 }
0x16f1   :  { %v3592_v26 = vmul.f32 0.5, %v3591_v57 }
0x16f3   :  { %3593 = vst [vmem:[%s5865_s20] sm:$0x3] %v3592_v26 }
0x16f4   :  { %3598 = vsyncpa [#allocation3], 1 }
0x16f5   :  { %3599 = vsyncpa [#allocation5], 1 }

</bundles_post_ra>
